<compile_context>
chip_gen: v5e
topology: v5e:2x2
jax: 0.10.0
libtpu: 0.0.40
codegen_flags: <defaults>
</compile_context>

<pallas_src>
import math

import jax
import jax.numpy as jnp
from jax.experimental import pallas as pl
from jax.experimental.pallas import tpu as pltpu

# ----------------------------- model config ---------------------------------
B = 2            # batch
C = 3            # image channels
IMG = 16         # image height == width
PATCH = 8        # patch size (conv1 kernel == stride)
GH = GW = IMG // PATCH
P = GH * GW              # number of patches per image (4)
N = P + 1                # real sequence length (cls + patches) = 5
NP = 8                   # padded sequence length (sublane-aligned)
D = 128                  # transformer width (lane-dense)
HEADS = 2
DH = D // HEADS          # head dim (64, same as real CLIP)
MLP = 4 * D
LAYERS = 2
EPS = 1e-5
CK = C * PATCH * PATCH   # patchified feature size (192)
CKP = 256                # zero-padded K for the patchify matmul
DTYPE = jnp.bfloat16     # TPU stand-in for torch.half
F32 = jnp.float32
NEG = -1e30              # additive mask for padded key columns


# ------------------------------- kernel --------------------------------------
def _layernorm(x, g, b):
    mu = jnp.mean(x, axis=-1, keepdims=True)
    var = jnp.mean(jnp.square(x - mu), axis=-1, keepdims=True)
    return (x - mu) * jax.lax.rsqrt(var + EPS) * g + b


def clip_vit_kernel(patches_ref, wpatch_ref, emb_ref,
                    lnpre_g_ref, lnpre_b_ref,
                    ln1g_ref, ln1b_ref, wqkv_ref, bqkv_ref, wo_ref, bo_ref,
                    ln2g_ref, ln2b_ref, w1_ref, b1_ref, w2_ref, b2_ref,
                    lnpost_g_ref, lnpost_b_ref, o_ref):
    # conv1 (stride == kernel) as a patchify matmul, bf16 @ bf16 -> f32.
    # patches row 0 (cls placeholder) and rows N..NP-1 (padding) are zero.
    pe = jnp.dot(patches_ref[0], wpatch_ref[...],
                 preferred_element_type=F32)                   # (NP, D) f32

    # emb: row 0 = cls + pos[0], rows 1..P = pos[1..P], padded rows = 0.
    x = pe + emb_ref[...].astype(F32)                          # (NP, D) f32

    # ln_pre
    x = _layernorm(x, lnpre_g_ref[...].astype(F32), lnpre_b_ref[...].astype(F32))

    # additive mask: padded key columns (col >= N) -> -inf before softmax
    col = jax.lax.broadcasted_iota(jnp.int32, (NP, NP), 1)
    key_bias = jnp.where(col < N, 0.0, NEG).astype(F32)        # (NP, NP)

    for l in range(LAYERS):                                    # static unroll
        # ---------------- multi-head self-attention ----------------
        h = _layernorm(x, ln1g_ref[l].astype(F32), ln1b_ref[l].astype(F32))
        # fused QKV: one (NP,128) @ (128,384) matmul (scale folded into q)
        qkv = jnp.dot(h.astype(DTYPE), wqkv_ref[l],
                      preferred_element_type=F32) + bqkv_ref[l].astype(F32)

        heads_out = []
        for hh in range(HEADS):                                # static unroll
            qh = qkv[:, hh * DH:(hh + 1) * DH].astype(DTYPE)           # (NP,DH)
            kh = qkv[:, D + hh * DH:D + (hh + 1) * DH].astype(DTYPE)
            vh = qkv[:, 2 * D + hh * DH:2 * D + (hh + 1) * DH].astype(DTYPE)

            s = jax.lax.dot_general(qh, kh, (((1,), (1,)), ((), ())),
                                    preferred_element_type=F32) + key_bias
            m = jnp.max(s, axis=-1, keepdims=True)
            e = jnp.exp(s - m)
            p = e * pl.reciprocal(jnp.sum(e, axis=-1, keepdims=True),
                                  approx=True)
            heads_out.append(jnp.dot(p.astype(DTYPE), vh,
                                     preferred_element_type=F32))      # (NP,DH)

        # lane-concat heads -> single K=128 output projection
        att = jnp.concatenate(heads_out, axis=-1).astype(DTYPE)        # (NP,D)
        x = x + jnp.dot(att, wo_ref[l], preferred_element_type=F32) \
              + bo_ref[l].astype(F32)                          # residual in f32

        # ---------------- MLP (Linear -> QuickGELU -> Linear) ----------------
        h = _layernorm(x, ln2g_ref[l].astype(F32), ln2b_ref[l].astype(F32))
        h1 = jnp.dot(h.astype(DTYPE), w1_ref[l],
                     preferred_element_type=F32) + b1_ref[l].astype(F32)
        h1 = h1 * jax.nn.sigmoid(1.702 * h1)                   # QuickGELU (f32)
        x = x + jnp.dot(h1.astype(DTYPE), w2_ref[l],
                        preferred_element_type=F32) + b2_ref[l].astype(F32)

    # ln_post on the full (padded) slab; only row 0 (cls) is read out by the
    # wrapper, but full-slab LN keeps the output store fully dense.
    y = _layernorm(x, lnpost_g_ref[...].astype(F32), lnpost_b_ref[...].astype(F32))
    o_ref[0] = y.astype(o_ref.dtype)                           # (NP, D)


# ---------------------------- pallas wrapper ----------------------------------
def clip_vit_forward(x, params):
    """x: (B, C, H, W) float32 (NCHW, like PyTorch). Returns (B, D) bf16."""
    x = x.astype(DTYPE)  # fp16_enabled -> half precision

    # conv1 (stride == kernel) rewritten as patchify (pure layout, host glue);
    # row 0 reserved for the cls token, rows N..NP-1 and cols CK..CKP-1 zero.
    p = (x.reshape(B, C, GH, PATCH, GW, PATCH)
           .transpose(0, 2, 4, 1, 3, 5)
           .reshape(B, P, CK))
    patches = jnp.zeros((B, NP, CKP), DTYPE).at[:, 1:P + 1, :CK].set(p)

    args = (patches, params["w_patch"], params["emb"],
            params["ln_pre_g"], params["ln_pre_b"],
            params["ln1_g"], params["ln1_b"], params["wqkv"], params["bqkv"],
            params["wo"], params["bo"], params["ln2_g"], params["ln2_b"],
            params["w1"], params["b1"], params["w2"], params["b2"],
            params["ln_post_g"], params["ln_post_b"])

    def const_spec(a):  # full block, fetched once (constant index map)
        return pl.BlockSpec(a.shape, lambda b, n=a.ndim: (0,) * n)

    in_specs = [pl.BlockSpec((1, NP, CKP), lambda b: (b, 0, 0))]
    in_specs += [const_spec(a) for a in args[1:]]

    out = pl.pallas_call(
        clip_vit_kernel,
        out_shape=jax.ShapeDtypeStruct((B, NP, D), DTYPE),
        grid=(B,),
        in_specs=in_specs,
        out_specs=pl.BlockSpec((1, NP, D), lambda b: (b, 0, 0)),
        compiler_params=pltpu.CompilerParams(
            dimension_semantics=("parallel",),   # v7x: one batch per TensorCore
            vmem_limit_bytes=32 * 1024 * 1024),
    )(*args)
    return out[:, 0, :]                         # cls-token features (B, D)


# ------------------------------ parameters ------------------------------------
def init_params(key):
    # Random stand-ins for a CLIP visual checkpoint, laid out host-side in the
    # shapes the fused kernel consumes (QKV fused + scale folded, conv weight
    # folded & padded, cls+pos merged into one padded embedding slab).
    def nrm(k, shape, scale=0.02):
        return (scale * jax.random.normal(k, shape, jnp.float32)).astype(DTYPE)

    ks = jax.random.split(key, 16)
    scale = 1.0 / math.sqrt(DH)

    # conv1 weight folded into a (CK, D) matmul weight, zero-padded K -> CKP
    conv1_w = nrm(ks[0], (D, C, PATCH, PATCH))
    w_patch = jnp.zeros((CKP, D), DTYPE).at[:CK, :].set(conv1_w.reshape(D, CK).T)

    # class_embedding + positional_embedding merged into a padded (NP, D) slab
    cls = nrm(ks[1], (1, D))
    pos = nrm(ks[2], (N, D))
    emb = jnp.zeros((NP, D), DTYPE)
    emb = emb.at[0:1, :].set(cls + pos[0:1, :])
    emb = emb.at[1:N, :].set(pos[1:N, :])

    # fused QKV weights: wqkv[l] == concat([Wq.T * 1/sqrt(DH), Wk.T, Wv.T], -1)
    wq = nrm(ks[3], (LAYERS, D, D)) * scale
    wk = nrm(ks[4], (LAYERS, D, D))
    wv = nrm(ks[5], (LAYERS, D, D))
    bq = nrm(ks[6], (LAYERS, 1, D), 0.01) * scale
    bk = nrm(ks[7], (LAYERS, 1, D), 0.01)
    bv = nrm(ks[8], (LAYERS, 1, D), 0.01)

    return {
        "w_patch": w_patch,
        "emb": emb,
        "ln_pre_g": jnp.ones((1, D), DTYPE), "ln_pre_b": jnp.zeros((1, D), DTYPE),
        "ln_post_g": jnp.ones((1, D), DTYPE), "ln_post_b": jnp.zeros((1, D), DTYPE),
        "ln1_g": jnp.ones((LAYERS, 1, D), DTYPE),
        "ln1_b": jnp.zeros((LAYERS, 1, D), DTYPE),
        "wqkv": jnp.concatenate([wq, wk, wv], axis=-1).astype(DTYPE),
        "bqkv": jnp.concatenate([bq, bk, bv], axis=-1).astype(DTYPE),
        "wo": nrm(ks[9], (LAYERS, D, D)),        # out_proj.weight.T
        "bo": nrm(ks[10], (LAYERS, 1, D), 0.01),
        "ln2_g": jnp.ones((LAYERS, 1, D), DTYPE),
        "ln2_b": jnp.zeros((LAYERS, 1, D), DTYPE),
        "w1": nrm(ks[11], (LAYERS, D, MLP)),
        "b1": nrm(ks[12], (LAYERS, 1, MLP), 0.01),
        "w2": nrm(ks[13], (LAYERS, MLP, D)),
        "b2": nrm(ks[14], (LAYERS, 1, D), 0.01),
    }


# --------------------------------- main ----------------------------------------
if __name__ == "__main__":
    key = jax.random.PRNGKey(0)
    params = init_params(key)
    x = jax.random.normal(jax.random.fold_in(key, 999), (B, C, IMG, IMG), jnp.float32)

    fwd = jax.jit(clip_vit_forward)
    feats = jax.block_until_ready(fwd(x, params))

    assert feats.shape == (B, D) and feats.dtype == DTYPE
    assert bool(jnp.all(jnp.isfinite(feats.astype(jnp.float32))))
    print("KERNEL_OK")
</pallas_src>

<mosaic_0001>
module attributes {stable_mosaic.version = 11 : i64} {
  func.func @clip_vit_kernel(%arg0: i32, %arg1: memref<1x8x256xbf16, #tpu.memory_space<vmem>>, %arg2: memref<256x128xbf16, #tpu.memory_space<vmem>>, %arg3: memref<8x128xbf16, #tpu.memory_space<vmem>>, %arg4: memref<1x128xbf16, #tpu.memory_space<vmem>>, %arg5: memref<1x128xbf16, #tpu.memory_space<vmem>>, %arg6: memref<2x1x128xbf16, #tpu.memory_space<vmem>>, %arg7: memref<2x1x128xbf16, #tpu.memory_space<vmem>>, %arg8: memref<2x128x384xbf16, #tpu.memory_space<vmem>>, %arg9: memref<2x1x384xbf16, #tpu.memory_space<vmem>>, %arg10: memref<2x128x128xbf16, #tpu.memory_space<vmem>>, %arg11: memref<2x1x128xbf16, #tpu.memory_space<vmem>>, %arg12: memref<2x1x128xbf16, #tpu.memory_space<vmem>>, %arg13: memref<2x1x128xbf16, #tpu.memory_space<vmem>>, %arg14: memref<2x128x512xbf16, #tpu.memory_space<vmem>>, %arg15: memref<2x1x512xbf16, #tpu.memory_space<vmem>>, %arg16: memref<2x512x128xbf16, #tpu.memory_space<vmem>>, %arg17: memref<2x1x128xbf16, #tpu.memory_space<vmem>>, %arg18: memref<1x128xbf16, #tpu.memory_space<vmem>>, %arg19: memref<1x128xbf16, #tpu.memory_space<vmem>>, %arg20: memref<1x8x128xbf16, #tpu.memory_space<vmem>>) attributes {dimension_semantics = [#tpu.dimension_semantics<parallel>], iteration_bounds = array<i64: 2>, scalar_prefetch = 0 : i64, scratch_operands = 0 : i64, tpu.core_type = #tpu.core_type<tc>, window_params = [{transform_indices = @transform_0, window_bounds = array<i64: 1, 8, 256>}, {pipeline_mode = #tpu.pipeline_mode<synchronous>, transform_indices = @transform_1, window_bounds = array<i64: 256, 128>}, {pipeline_mode = #tpu.pipeline_mode<synchronous>, transform_indices = @transform_2, window_bounds = array<i64: 8, 128>}, {pipeline_mode = #tpu.pipeline_mode<synchronous>, transform_indices = @transform_3, window_bounds = array<i64: 1, 128>}, {pipeline_mode = #tpu.pipeline_mode<synchronous>, transform_indices = @transform_4, window_bounds = array<i64: 1, 128>}, {pipeline_mode = #tpu.pipeline_mode<synchronous>, transform_indices = @transform_5, window_bounds = array<i64: 2, 1, 128>}, {pipeline_mode = #tpu.pipeline_mode<synchronous>, transform_indices = @transform_6, window_bounds = array<i64: 2, 1, 128>}, {pipeline_mode = #tpu.pipeline_mode<synchronous>, transform_indices = @transform_7, window_bounds = array<i64: 2, 128, 384>}, {pipeline_mode = #tpu.pipeline_mode<synchronous>, transform_indices = @transform_8, window_bounds = array<i64: 2, 1, 384>}, {pipeline_mode = #tpu.pipeline_mode<synchronous>, transform_indices = @transform_9, window_bounds = array<i64: 2, 128, 128>}, {pipeline_mode = #tpu.pipeline_mode<synchronous>, transform_indices = @transform_10, window_bounds = array<i64: 2, 1, 128>}, {pipeline_mode = #tpu.pipeline_mode<synchronous>, transform_indices = @transform_11, window_bounds = array<i64: 2, 1, 128>}, {pipeline_mode = #tpu.pipeline_mode<synchronous>, transform_indices = @transform_12, window_bounds = array<i64: 2, 1, 128>}, {pipeline_mode = #tpu.pipeline_mode<synchronous>, transform_indices = @transform_13, window_bounds = array<i64: 2, 128, 512>}, {pipeline_mode = #tpu.pipeline_mode<synchronous>, transform_indices = @transform_14, window_bounds = array<i64: 2, 1, 512>}, {pipeline_mode = #tpu.pipeline_mode<synchronous>, transform_indices = @transform_15, window_bounds = array<i64: 2, 512, 128>}, {pipeline_mode = #tpu.pipeline_mode<synchronous>, transform_indices = @transform_16, window_bounds = array<i64: 2, 1, 128>}, {pipeline_mode = #tpu.pipeline_mode<synchronous>, transform_indices = @transform_17, window_bounds = array<i64: 1, 128>}, {pipeline_mode = #tpu.pipeline_mode<synchronous>, transform_indices = @transform_18, window_bounds = array<i64: 1, 128>}, {transform_indices = @transform_19, window_bounds = array<i64: 1, 8, 128>}]} {
    %c0 = arith.constant 0 : index
    %c0_0 = arith.constant 0 : index
    %c0_1 = arith.constant 0 : index
    %0 = vector.load %arg1[%c0, %c0_0, %c0_1] : memref<1x8x256xbf16, #tpu.memory_space<vmem>>, vector<1x8x256xbf16>
    %1 = vector.shape_cast %0 : vector<1x8x256xbf16> to vector<8x256xbf16>
    %c0_2 = arith.constant 0 : index
    %c0_3 = arith.constant 0 : index
    %2 = vector.load %arg2[%c0_2, %c0_3] : memref<256x128xbf16, #tpu.memory_space<vmem>>, vector<256x128xbf16>
    %cst = arith.constant dense<0.000000e+00> : vector<8x128xf32>
    %3 = tpu.matmul %1, %2, %cst {dimension_numbers = #tpu.dot_dimension_numbers<[1], [0], [0], [1], [0, 0, 1, 1], [], []>} : vector<8x256xbf16>, vector<256x128xbf16>, vector<8x128xf32> -> vector<8x128xf32>
    %c0_4 = arith.constant 0 : index
    %c0_5 = arith.constant 0 : index
    %4 = vector.load %arg3[%c0_4, %c0_5] : memref<8x128xbf16, #tpu.memory_space<vmem>>, vector<8x128xbf16>
    %5 = arith.extf %4 : vector<8x128xbf16> to vector<8x128xf32>
    %6 = arith.addf %3, %5 : vector<8x128xf32>
    %c0_6 = arith.constant 0 : index
    %c0_7 = arith.constant 0 : index
    %7 = vector.load %arg4[%c0_6, %c0_7] : memref<1x128xbf16, #tpu.memory_space<vmem>>, vector<1x128xbf16>
    %8 = arith.extf %7 : vector<1x128xbf16> to vector<1x128xf32>
    %c0_8 = arith.constant 0 : index
    %c0_9 = arith.constant 0 : index
    %9 = vector.load %arg5[%c0_8, %c0_9] : memref<1x128xbf16, #tpu.memory_space<vmem>>, vector<1x128xbf16>
    %10 = arith.extf %9 : vector<1x128xbf16> to vector<1x128xf32>
    %cst_10 = arith.constant dense<0.000000e+00> : vector<8xf32>
    %11 = vector.multi_reduction <add>, %6, %cst_10 [1] : vector<8x128xf32> to vector<8xf32>
    %12 = vector.shape_cast %11 : vector<8xf32> to vector<8x1xf32>
    %cst_11 = arith.constant 1.280000e+02 : f32
    %13 = vector.broadcast %cst_11 : f32 to vector<8x1xf32>
    %14 = arith.divf %12, %13 : vector<8x1xf32>
    %15 = vector.broadcast %14 : vector<8x1xf32> to vector<8x128xf32>
    %16 = arith.subf %6, %15 : vector<8x128xf32>
    %17 = arith.mulf %16, %16 : vector<8x128xf32>
    %cst_12 = arith.constant dense<0.000000e+00> : vector<8xf32>
    %18 = vector.multi_reduction <add>, %17, %cst_12 [1] : vector<8x128xf32> to vector<8xf32>
    %19 = vector.shape_cast %18 : vector<8xf32> to vector<8x1xf32>
    %cst_13 = arith.constant 1.280000e+02 : f32
    %20 = vector.broadcast %cst_13 : f32 to vector<8x1xf32>
    %21 = arith.divf %19, %20 : vector<8x1xf32>
    %22 = vector.broadcast %14 : vector<8x1xf32> to vector<8x128xf32>
    %23 = arith.subf %6, %22 : vector<8x128xf32>
    %cst_14 = arith.constant 9.99999974E-6 : f32
    %24 = vector.broadcast %cst_14 : f32 to vector<8x1xf32>
    %25 = arith.addf %21, %24 : vector<8x1xf32>
    %26 = math.rsqrt %25 : vector<8x1xf32>
    %27 = vector.broadcast %26 : vector<8x1xf32> to vector<8x128xf32>
    %28 = arith.mulf %23, %27 : vector<8x128xf32>
    %29 = vector.broadcast %8 : vector<1x128xf32> to vector<8x128xf32>
    %30 = arith.mulf %28, %29 : vector<8x128xf32>
    %31 = vector.broadcast %10 : vector<1x128xf32> to vector<8x128xf32>
    %32 = arith.addf %30, %31 : vector<8x128xf32>
    %33 = tpu.iota {dimensions = array<i32: 1>} : vector<8x8xi32>
    %c5_i32 = arith.constant 5 : i32
    %34 = vector.broadcast %c5_i32 : i32 to vector<8x8xi32>
    %35 = arith.cmpi slt, %33, %34 : vector<8x8xi32>
    %cst_15 = arith.constant 0.000000e+00 : f32
    %cst_16 = arith.constant -1.000000e+30 : f32
    %36 = vector.broadcast %cst_15 : f32 to vector<8x8xf32>
    %37 = vector.broadcast %cst_16 : f32 to vector<8x8xf32>
    %38 = arith.select %35, %36, %37 : vector<8x8xi1>, vector<8x8xf32>
    %c0_17 = arith.constant 0 : index
    %c0_18 = arith.constant 0 : index
    %c0_19 = arith.constant 0 : index
    %39 = vector.load %arg6[%c0_17, %c0_18, %c0_19] : memref<2x1x128xbf16, #tpu.memory_space<vmem>>, vector<1x1x128xbf16>
    %40 = vector.shape_cast %39 : vector<1x1x128xbf16> to vector<1x128xbf16>
    %41 = arith.extf %40 : vector<1x128xbf16> to vector<1x128xf32>
    %c0_20 = arith.constant 0 : index
    %c0_21 = arith.constant 0 : index
    %c0_22 = arith.constant 0 : index
    %42 = vector.load %arg7[%c0_20, %c0_21, %c0_22] : memref<2x1x128xbf16, #tpu.memory_space<vmem>>, vector<1x1x128xbf16>
    %43 = vector.shape_cast %42 : vector<1x1x128xbf16> to vector<1x128xbf16>
    %44 = arith.extf %43 : vector<1x128xbf16> to vector<1x128xf32>
    %cst_23 = arith.constant dense<0.000000e+00> : vector<8xf32>
    %45 = vector.multi_reduction <add>, %32, %cst_23 [1] : vector<8x128xf32> to vector<8xf32>
    %46 = vector.shape_cast %45 : vector<8xf32> to vector<8x1xf32>
    %cst_24 = arith.constant 1.280000e+02 : f32
    %47 = vector.broadcast %cst_24 : f32 to vector<8x1xf32>
    %48 = arith.divf %46, %47 : vector<8x1xf32>
    %49 = vector.broadcast %48 : vector<8x1xf32> to vector<8x128xf32>
    %50 = arith.subf %32, %49 : vector<8x128xf32>
    %51 = arith.mulf %50, %50 : vector<8x128xf32>
    %cst_25 = arith.constant dense<0.000000e+00> : vector<8xf32>
    %52 = vector.multi_reduction <add>, %51, %cst_25 [1] : vector<8x128xf32> to vector<8xf32>
    %53 = vector.shape_cast %52 : vector<8xf32> to vector<8x1xf32>
    %cst_26 = arith.constant 1.280000e+02 : f32
    %54 = vector.broadcast %cst_26 : f32 to vector<8x1xf32>
    %55 = arith.divf %53, %54 : vector<8x1xf32>
    %56 = vector.broadcast %48 : vector<8x1xf32> to vector<8x128xf32>
    %57 = arith.subf %32, %56 : vector<8x128xf32>
    %cst_27 = arith.constant 9.99999974E-6 : f32
    %58 = vector.broadcast %cst_27 : f32 to vector<8x1xf32>
    %59 = arith.addf %55, %58 : vector<8x1xf32>
    %60 = math.rsqrt %59 : vector<8x1xf32>
    %61 = vector.broadcast %60 : vector<8x1xf32> to vector<8x128xf32>
    %62 = arith.mulf %57, %61 : vector<8x128xf32>
    %63 = vector.broadcast %41 : vector<1x128xf32> to vector<8x128xf32>
    %64 = arith.mulf %62, %63 : vector<8x128xf32>
    %65 = vector.broadcast %44 : vector<1x128xf32> to vector<8x128xf32>
    %66 = arith.addf %64, %65 : vector<8x128xf32>
    %67 = arith.truncf %66 : vector<8x128xf32> to vector<8x128xbf16>
    %c0_28 = arith.constant 0 : index
    %c0_29 = arith.constant 0 : index
    %c0_30 = arith.constant 0 : index
    %68 = vector.load %arg8[%c0_28, %c0_29, %c0_30] : memref<2x128x384xbf16, #tpu.memory_space<vmem>>, vector<1x128x384xbf16>
    %69 = vector.shape_cast %68 : vector<1x128x384xbf16> to vector<128x384xbf16>
    %cst_31 = arith.constant dense<0.000000e+00> : vector<8x384xf32>
    %70 = tpu.matmul %67, %69, %cst_31 {dimension_numbers = #tpu.dot_dimension_numbers<[1], [0], [0], [1], [0, 0, 1, 1], [], []>} : vector<8x128xbf16>, vector<128x384xbf16>, vector<8x384xf32> -> vector<8x384xf32>
    %c0_32 = arith.constant 0 : index
    %c0_33 = arith.constant 0 : index
    %c0_34 = arith.constant 0 : index
    %71 = vector.load %arg9[%c0_32, %c0_33, %c0_34] : memref<2x1x384xbf16, #tpu.memory_space<vmem>>, vector<1x1x384xbf16>
    %72 = vector.shape_cast %71 : vector<1x1x384xbf16> to vector<1x384xbf16>
    %73 = arith.extf %72 : vector<1x384xbf16> to vector<1x384xf32>
    %74 = vector.broadcast %73 : vector<1x384xf32> to vector<8x384xf32>
    %75 = arith.addf %70, %74 : vector<8x384xf32>
    %76 = vector.extract_strided_slice %75 {offsets = [0, 0], sizes = [8, 64], strides = [1, 1]} : vector<8x384xf32> to vector<8x64xf32>
    %77 = arith.truncf %76 : vector<8x64xf32> to vector<8x64xbf16>
    %78 = vector.extract_strided_slice %75 {offsets = [0, 128], sizes = [8, 64], strides = [1, 1]} : vector<8x384xf32> to vector<8x64xf32>
    %79 = arith.truncf %78 : vector<8x64xf32> to vector<8x64xbf16>
    %80 = vector.extract_strided_slice %75 {offsets = [0, 256], sizes = [8, 64], strides = [1, 1]} : vector<8x384xf32> to vector<8x64xf32>
    %81 = arith.truncf %80 : vector<8x64xf32> to vector<8x64xbf16>
    %cst_35 = arith.constant dense<0.000000e+00> : vector<8x8xf32>
    %82 = tpu.matmul %77, %79, %cst_35 {dimension_numbers = #tpu.dot_dimension_numbers<[1], [1], [0], [0], [0, 0, 1, 0], [], []>} : vector<8x64xbf16>, vector<8x64xbf16>, vector<8x8xf32> -> vector<8x8xf32>
    %83 = arith.addf %82, %38 : vector<8x8xf32>
    %cst_36 = arith.constant dense<0xFF800000> : vector<8xf32>
    %84 = vector.multi_reduction <maximumf>, %83, %cst_36 [1] : vector<8x8xf32> to vector<8xf32>
    %85 = vector.shape_cast %84 : vector<8xf32> to vector<8x1xf32>
    %86 = vector.broadcast %85 : vector<8x1xf32> to vector<8x8xf32>
    %87 = arith.subf %83, %86 : vector<8x8xf32>
    %88 = math.exp %87 : vector<8x8xf32>
    %cst_37 = arith.constant dense<0.000000e+00> : vector<8xf32>
    %89 = vector.multi_reduction <add>, %88, %cst_37 [1] : vector<8x8xf32> to vector<8xf32>
    %90 = vector.shape_cast %89 : vector<8xf32> to vector<8x1xf32>
    %91 = tpu.reciprocal %90 {approx = true} : vector<8x1xf32> -> vector<8x1xf32>
    %92 = vector.broadcast %91 : vector<8x1xf32> to vector<8x8xf32>
    %93 = arith.mulf %88, %92 : vector<8x8xf32>
    %94 = arith.truncf %93 : vector<8x8xf32> to vector<8x8xbf16>
    %cst_38 = arith.constant dense<0.000000e+00> : vector<8x64xf32>
    %95 = tpu.matmul %94, %81, %cst_38 {dimension_numbers = #tpu.dot_dimension_numbers<[1], [0], [0], [1], [0, 0, 1, 1], [], []>} : vector<8x8xbf16>, vector<8x64xbf16>, vector<8x64xf32> -> vector<8x64xf32>
    %96 = vector.extract_strided_slice %75 {offsets = [0, 64], sizes = [8, 64], strides = [1, 1]} : vector<8x384xf32> to vector<8x64xf32>
    %97 = arith.truncf %96 : vector<8x64xf32> to vector<8x64xbf16>
    %98 = vector.extract_strided_slice %75 {offsets = [0, 192], sizes = [8, 64], strides = [1, 1]} : vector<8x384xf32> to vector<8x64xf32>
    %99 = arith.truncf %98 : vector<8x64xf32> to vector<8x64xbf16>
    %100 = vector.extract_strided_slice %75 {offsets = [0, 320], sizes = [8, 64], strides = [1, 1]} : vector<8x384xf32> to vector<8x64xf32>
    %101 = arith.truncf %100 : vector<8x64xf32> to vector<8x64xbf16>
    %cst_39 = arith.constant dense<0.000000e+00> : vector<8x8xf32>
    %102 = tpu.matmul %97, %99, %cst_39 {dimension_numbers = #tpu.dot_dimension_numbers<[1], [1], [0], [0], [0, 0, 1, 0], [], []>} : vector<8x64xbf16>, vector<8x64xbf16>, vector<8x8xf32> -> vector<8x8xf32>
    %103 = arith.addf %102, %38 : vector<8x8xf32>
    %cst_40 = arith.constant dense<0xFF800000> : vector<8xf32>
    %104 = vector.multi_reduction <maximumf>, %103, %cst_40 [1] : vector<8x8xf32> to vector<8xf32>
    %105 = vector.shape_cast %104 : vector<8xf32> to vector<8x1xf32>
    %106 = vector.broadcast %105 : vector<8x1xf32> to vector<8x8xf32>
    %107 = arith.subf %103, %106 : vector<8x8xf32>
    %108 = math.exp %107 : vector<8x8xf32>
    %cst_41 = arith.constant dense<0.000000e+00> : vector<8xf32>
    %109 = vector.multi_reduction <add>, %108, %cst_41 [1] : vector<8x8xf32> to vector<8xf32>
    %110 = vector.shape_cast %109 : vector<8xf32> to vector<8x1xf32>
    %111 = tpu.reciprocal %110 {approx = true} : vector<8x1xf32> -> vector<8x1xf32>
    %112 = vector.broadcast %111 : vector<8x1xf32> to vector<8x8xf32>
    %113 = arith.mulf %108, %112 : vector<8x8xf32>
    %114 = arith.truncf %113 : vector<8x8xf32> to vector<8x8xbf16>
    %cst_42 = arith.constant dense<0.000000e+00> : vector<8x64xf32>
    %115 = tpu.matmul %114, %101, %cst_42 {dimension_numbers = #tpu.dot_dimension_numbers<[1], [0], [0], [1], [0, 0, 1, 1], [], []>} : vector<8x8xbf16>, vector<8x64xbf16>, vector<8x64xf32> -> vector<8x64xf32>
    %116 = tpu.concatenate %95, %115 in 1 : vector<8x64xf32>, vector<8x64xf32> -> vector<8x128xf32>
    %117 = arith.truncf %116 : vector<8x128xf32> to vector<8x128xbf16>
    %c0_43 = arith.constant 0 : index
    %c0_44 = arith.constant 0 : index
    %c0_45 = arith.constant 0 : index
    %118 = vector.load %arg10[%c0_43, %c0_44, %c0_45] : memref<2x128x128xbf16, #tpu.memory_space<vmem>>, vector<1x128x128xbf16>
    %119 = vector.shape_cast %118 : vector<1x128x128xbf16> to vector<128x128xbf16>
    %cst_46 = arith.constant dense<0.000000e+00> : vector<8x128xf32>
    %120 = tpu.matmul %117, %119, %cst_46 {dimension_numbers = #tpu.dot_dimension_numbers<[1], [0], [0], [1], [0, 0, 1, 1], [], []>} : vector<8x128xbf16>, vector<128x128xbf16>, vector<8x128xf32> -> vector<8x128xf32>
    %121 = arith.addf %32, %120 : vector<8x128xf32>
    %c0_47 = arith.constant 0 : index
    %c0_48 = arith.constant 0 : index
    %c0_49 = arith.constant 0 : index
    %122 = vector.load %arg11[%c0_47, %c0_48, %c0_49] : memref<2x1x128xbf16, #tpu.memory_space<vmem>>, vector<1x1x128xbf16>
    %123 = vector.shape_cast %122 : vector<1x1x128xbf16> to vector<1x128xbf16>
    %124 = arith.extf %123 : vector<1x128xbf16> to vector<1x128xf32>
    %125 = vector.broadcast %124 : vector<1x128xf32> to vector<8x128xf32>
    %126 = arith.addf %121, %125 : vector<8x128xf32>
    %c0_50 = arith.constant 0 : index
    %c0_51 = arith.constant 0 : index
    %c0_52 = arith.constant 0 : index
    %127 = vector.load %arg12[%c0_50, %c0_51, %c0_52] : memref<2x1x128xbf16, #tpu.memory_space<vmem>>, vector<1x1x128xbf16>
    %128 = vector.shape_cast %127 : vector<1x1x128xbf16> to vector<1x128xbf16>
    %129 = arith.extf %128 : vector<1x128xbf16> to vector<1x128xf32>
    %c0_53 = arith.constant 0 : index
    %c0_54 = arith.constant 0 : index
    %c0_55 = arith.constant 0 : index
    %130 = vector.load %arg13[%c0_53, %c0_54, %c0_55] : memref<2x1x128xbf16, #tpu.memory_space<vmem>>, vector<1x1x128xbf16>
    %131 = vector.shape_cast %130 : vector<1x1x128xbf16> to vector<1x128xbf16>
    %132 = arith.extf %131 : vector<1x128xbf16> to vector<1x128xf32>
    %cst_56 = arith.constant dense<0.000000e+00> : vector<8xf32>
    %133 = vector.multi_reduction <add>, %126, %cst_56 [1] : vector<8x128xf32> to vector<8xf32>
    %134 = vector.shape_cast %133 : vector<8xf32> to vector<8x1xf32>
    %cst_57 = arith.constant 1.280000e+02 : f32
    %135 = vector.broadcast %cst_57 : f32 to vector<8x1xf32>
    %136 = arith.divf %134, %135 : vector<8x1xf32>
    %137 = vector.broadcast %136 : vector<8x1xf32> to vector<8x128xf32>
    %138 = arith.subf %126, %137 : vector<8x128xf32>
    %139 = arith.mulf %138, %138 : vector<8x128xf32>
    %cst_58 = arith.constant dense<0.000000e+00> : vector<8xf32>
    %140 = vector.multi_reduction <add>, %139, %cst_58 [1] : vector<8x128xf32> to vector<8xf32>
    %141 = vector.shape_cast %140 : vector<8xf32> to vector<8x1xf32>
    %cst_59 = arith.constant 1.280000e+02 : f32
    %142 = vector.broadcast %cst_59 : f32 to vector<8x1xf32>
    %143 = arith.divf %141, %142 : vector<8x1xf32>
    %144 = vector.broadcast %136 : vector<8x1xf32> to vector<8x128xf32>
    %145 = arith.subf %126, %144 : vector<8x128xf32>
    %cst_60 = arith.constant 9.99999974E-6 : f32
    %146 = vector.broadcast %cst_60 : f32 to vector<8x1xf32>
    %147 = arith.addf %143, %146 : vector<8x1xf32>
    %148 = math.rsqrt %147 : vector<8x1xf32>
    %149 = vector.broadcast %148 : vector<8x1xf32> to vector<8x128xf32>
    %150 = arith.mulf %145, %149 : vector<8x128xf32>
    %151 = vector.broadcast %129 : vector<1x128xf32> to vector<8x128xf32>
    %152 = arith.mulf %150, %151 : vector<8x128xf32>
    %153 = vector.broadcast %132 : vector<1x128xf32> to vector<8x128xf32>
    %154 = arith.addf %152, %153 : vector<8x128xf32>
    %155 = arith.truncf %154 : vector<8x128xf32> to vector<8x128xbf16>
    %c0_61 = arith.constant 0 : index
    %c0_62 = arith.constant 0 : index
    %c0_63 = arith.constant 0 : index
    %156 = vector.load %arg14[%c0_61, %c0_62, %c0_63] : memref<2x128x512xbf16, #tpu.memory_space<vmem>>, vector<1x128x512xbf16>
    %157 = vector.shape_cast %156 : vector<1x128x512xbf16> to vector<128x512xbf16>
    %cst_64 = arith.constant dense<0.000000e+00> : vector<8x512xf32>
    %158 = tpu.matmul %155, %157, %cst_64 {dimension_numbers = #tpu.dot_dimension_numbers<[1], [0], [0], [1], [0, 0, 1, 1], [], []>} : vector<8x128xbf16>, vector<128x512xbf16>, vector<8x512xf32> -> vector<8x512xf32>
    %c0_65 = arith.constant 0 : index
    %c0_66 = arith.constant 0 : index
    %c0_67 = arith.constant 0 : index
    %159 = vector.load %arg15[%c0_65, %c0_66, %c0_67] : memref<2x1x512xbf16, #tpu.memory_space<vmem>>, vector<1x1x512xbf16>
    %160 = vector.shape_cast %159 : vector<1x1x512xbf16> to vector<1x512xbf16>
    %161 = arith.extf %160 : vector<1x512xbf16> to vector<1x512xf32>
    %162 = vector.broadcast %161 : vector<1x512xf32> to vector<8x512xf32>
    %163 = arith.addf %158, %162 : vector<8x512xf32>
    %cst_68 = arith.constant 1.702000e+00 : f32
    %164 = vector.broadcast %cst_68 : f32 to vector<8x512xf32>
    %165 = arith.mulf %164, %163 : vector<8x512xf32>
    %166 = arith.negf %165 : vector<8x512xf32>
    %167 = math.exp %166 : vector<8x512xf32>
    %cst_69 = arith.constant 1.000000e+00 : f32
    %168 = vector.broadcast %cst_69 : f32 to vector<8x512xf32>
    %169 = arith.addf %168, %167 : vector<8x512xf32>
    %170 = arith.divf %168, %169 : vector<8x512xf32>
    %171 = arith.mulf %163, %170 : vector<8x512xf32>
    %172 = arith.truncf %171 : vector<8x512xf32> to vector<8x512xbf16>
    %c0_70 = arith.constant 0 : index
    %c0_71 = arith.constant 0 : index
    %c0_72 = arith.constant 0 : index
    %173 = vector.load %arg16[%c0_70, %c0_71, %c0_72] : memref<2x512x128xbf16, #tpu.memory_space<vmem>>, vector<1x512x128xbf16>
    %174 = vector.shape_cast %173 : vector<1x512x128xbf16> to vector<512x128xbf16>
    %cst_73 = arith.constant dense<0.000000e+00> : vector<8x128xf32>
    %175 = tpu.matmul %172, %174, %cst_73 {dimension_numbers = #tpu.dot_dimension_numbers<[1], [0], [0], [1], [0, 0, 1, 1], [], []>} : vector<8x512xbf16>, vector<512x128xbf16>, vector<8x128xf32> -> vector<8x128xf32>
    %176 = arith.addf %126, %175 : vector<8x128xf32>
    %c0_74 = arith.constant 0 : index
    %c0_75 = arith.constant 0 : index
    %c0_76 = arith.constant 0 : index
    %177 = vector.load %arg17[%c0_74, %c0_75, %c0_76] : memref<2x1x128xbf16, #tpu.memory_space<vmem>>, vector<1x1x128xbf16>
    %178 = vector.shape_cast %177 : vector<1x1x128xbf16> to vector<1x128xbf16>
    %179 = arith.extf %178 : vector<1x128xbf16> to vector<1x128xf32>
    %180 = vector.broadcast %179 : vector<1x128xf32> to vector<8x128xf32>
    %181 = arith.addf %176, %180 : vector<8x128xf32>
    %c1 = arith.constant 1 : index
    %c0_77 = arith.constant 0 : index
    %c0_78 = arith.constant 0 : index
    %182 = vector.load %arg6[%c1, %c0_77, %c0_78] : memref<2x1x128xbf16, #tpu.memory_space<vmem>>, vector<1x1x128xbf16>
    %183 = vector.shape_cast %182 : vector<1x1x128xbf16> to vector<1x128xbf16>
    %184 = arith.extf %183 : vector<1x128xbf16> to vector<1x128xf32>
    %c1_79 = arith.constant 1 : index
    %c0_80 = arith.constant 0 : index
    %c0_81 = arith.constant 0 : index
    %185 = vector.load %arg7[%c1_79, %c0_80, %c0_81] : memref<2x1x128xbf16, #tpu.memory_space<vmem>>, vector<1x1x128xbf16>
    %186 = vector.shape_cast %185 : vector<1x1x128xbf16> to vector<1x128xbf16>
    %187 = arith.extf %186 : vector<1x128xbf16> to vector<1x128xf32>
    %cst_82 = arith.constant dense<0.000000e+00> : vector<8xf32>
    %188 = vector.multi_reduction <add>, %181, %cst_82 [1] : vector<8x128xf32> to vector<8xf32>
    %189 = vector.shape_cast %188 : vector<8xf32> to vector<8x1xf32>
    %cst_83 = arith.constant 1.280000e+02 : f32
    %190 = vector.broadcast %cst_83 : f32 to vector<8x1xf32>
    %191 = arith.divf %189, %190 : vector<8x1xf32>
    %192 = vector.broadcast %191 : vector<8x1xf32> to vector<8x128xf32>
    %193 = arith.subf %181, %192 : vector<8x128xf32>
    %194 = arith.mulf %193, %193 : vector<8x128xf32>
    %cst_84 = arith.constant dense<0.000000e+00> : vector<8xf32>
    %195 = vector.multi_reduction <add>, %194, %cst_84 [1] : vector<8x128xf32> to vector<8xf32>
    %196 = vector.shape_cast %195 : vector<8xf32> to vector<8x1xf32>
    %cst_85 = arith.constant 1.280000e+02 : f32
    %197 = vector.broadcast %cst_85 : f32 to vector<8x1xf32>
    %198 = arith.divf %196, %197 : vector<8x1xf32>
    %199 = vector.broadcast %191 : vector<8x1xf32> to vector<8x128xf32>
    %200 = arith.subf %181, %199 : vector<8x128xf32>
    %cst_86 = arith.constant 9.99999974E-6 : f32
    %201 = vector.broadcast %cst_86 : f32 to vector<8x1xf32>
    %202 = arith.addf %198, %201 : vector<8x1xf32>
    %203 = math.rsqrt %202 : vector<8x1xf32>
    %204 = vector.broadcast %203 : vector<8x1xf32> to vector<8x128xf32>
    %205 = arith.mulf %200, %204 : vector<8x128xf32>
    %206 = vector.broadcast %184 : vector<1x128xf32> to vector<8x128xf32>
    %207 = arith.mulf %205, %206 : vector<8x128xf32>
    %208 = vector.broadcast %187 : vector<1x128xf32> to vector<8x128xf32>
    %209 = arith.addf %207, %208 : vector<8x128xf32>
    %210 = arith.truncf %209 : vector<8x128xf32> to vector<8x128xbf16>
    %c1_87 = arith.constant 1 : index
    %c0_88 = arith.constant 0 : index
    %c0_89 = arith.constant 0 : index
    %211 = vector.load %arg8[%c1_87, %c0_88, %c0_89] : memref<2x128x384xbf16, #tpu.memory_space<vmem>>, vector<1x128x384xbf16>
    %212 = vector.shape_cast %211 : vector<1x128x384xbf16> to vector<128x384xbf16>
    %cst_90 = arith.constant dense<0.000000e+00> : vector<8x384xf32>
    %213 = tpu.matmul %210, %212, %cst_90 {dimension_numbers = #tpu.dot_dimension_numbers<[1], [0], [0], [1], [0, 0, 1, 1], [], []>} : vector<8x128xbf16>, vector<128x384xbf16>, vector<8x384xf32> -> vector<8x384xf32>
    %c1_91 = arith.constant 1 : index
    %c0_92 = arith.constant 0 : index
    %c0_93 = arith.constant 0 : index
    %214 = vector.load %arg9[%c1_91, %c0_92, %c0_93] : memref<2x1x384xbf16, #tpu.memory_space<vmem>>, vector<1x1x384xbf16>
    %215 = vector.shape_cast %214 : vector<1x1x384xbf16> to vector<1x384xbf16>
    %216 = arith.extf %215 : vector<1x384xbf16> to vector<1x384xf32>
    %217 = vector.broadcast %216 : vector<1x384xf32> to vector<8x384xf32>
    %218 = arith.addf %213, %217 : vector<8x384xf32>
    %219 = vector.extract_strided_slice %218 {offsets = [0, 0], sizes = [8, 64], strides = [1, 1]} : vector<8x384xf32> to vector<8x64xf32>
    %220 = arith.truncf %219 : vector<8x64xf32> to vector<8x64xbf16>
    %221 = vector.extract_strided_slice %218 {offsets = [0, 128], sizes = [8, 64], strides = [1, 1]} : vector<8x384xf32> to vector<8x64xf32>
    %222 = arith.truncf %221 : vector<8x64xf32> to vector<8x64xbf16>
    %223 = vector.extract_strided_slice %218 {offsets = [0, 256], sizes = [8, 64], strides = [1, 1]} : vector<8x384xf32> to vector<8x64xf32>
    %224 = arith.truncf %223 : vector<8x64xf32> to vector<8x64xbf16>
    %cst_94 = arith.constant dense<0.000000e+00> : vector<8x8xf32>
    %225 = tpu.matmul %220, %222, %cst_94 {dimension_numbers = #tpu.dot_dimension_numbers<[1], [1], [0], [0], [0, 0, 1, 0], [], []>} : vector<8x64xbf16>, vector<8x64xbf16>, vector<8x8xf32> -> vector<8x8xf32>
    %226 = arith.addf %225, %38 : vector<8x8xf32>
    %cst_95 = arith.constant dense<0xFF800000> : vector<8xf32>
    %227 = vector.multi_reduction <maximumf>, %226, %cst_95 [1] : vector<8x8xf32> to vector<8xf32>
    %228 = vector.shape_cast %227 : vector<8xf32> to vector<8x1xf32>
    %229 = vector.broadcast %228 : vector<8x1xf32> to vector<8x8xf32>
    %230 = arith.subf %226, %229 : vector<8x8xf32>
    %231 = math.exp %230 : vector<8x8xf32>
    %cst_96 = arith.constant dense<0.000000e+00> : vector<8xf32>
    %232 = vector.multi_reduction <add>, %231, %cst_96 [1] : vector<8x8xf32> to vector<8xf32>
    %233 = vector.shape_cast %232 : vector<8xf32> to vector<8x1xf32>
    %234 = tpu.reciprocal %233 {approx = true} : vector<8x1xf32> -> vector<8x1xf32>
    %235 = vector.broadcast %234 : vector<8x1xf32> to vector<8x8xf32>
    %236 = arith.mulf %231, %235 : vector<8x8xf32>
    %237 = arith.truncf %236 : vector<8x8xf32> to vector<8x8xbf16>
    %cst_97 = arith.constant dense<0.000000e+00> : vector<8x64xf32>
    %238 = tpu.matmul %237, %224, %cst_97 {dimension_numbers = #tpu.dot_dimension_numbers<[1], [0], [0], [1], [0, 0, 1, 1], [], []>} : vector<8x8xbf16>, vector<8x64xbf16>, vector<8x64xf32> -> vector<8x64xf32>
    %239 = vector.extract_strided_slice %218 {offsets = [0, 64], sizes = [8, 64], strides = [1, 1]} : vector<8x384xf32> to vector<8x64xf32>
    %240 = arith.truncf %239 : vector<8x64xf32> to vector<8x64xbf16>
    %241 = vector.extract_strided_slice %218 {offsets = [0, 192], sizes = [8, 64], strides = [1, 1]} : vector<8x384xf32> to vector<8x64xf32>
    %242 = arith.truncf %241 : vector<8x64xf32> to vector<8x64xbf16>
    %243 = vector.extract_strided_slice %218 {offsets = [0, 320], sizes = [8, 64], strides = [1, 1]} : vector<8x384xf32> to vector<8x64xf32>
    %244 = arith.truncf %243 : vector<8x64xf32> to vector<8x64xbf16>
    %cst_98 = arith.constant dense<0.000000e+00> : vector<8x8xf32>
    %245 = tpu.matmul %240, %242, %cst_98 {dimension_numbers = #tpu.dot_dimension_numbers<[1], [1], [0], [0], [0, 0, 1, 0], [], []>} : vector<8x64xbf16>, vector<8x64xbf16>, vector<8x8xf32> -> vector<8x8xf32>
    %246 = arith.addf %245, %38 : vector<8x8xf32>
    %cst_99 = arith.constant dense<0xFF800000> : vector<8xf32>
    %247 = vector.multi_reduction <maximumf>, %246, %cst_99 [1] : vector<8x8xf32> to vector<8xf32>
    %248 = vector.shape_cast %247 : vector<8xf32> to vector<8x1xf32>
    %249 = vector.broadcast %248 : vector<8x1xf32> to vector<8x8xf32>
    %250 = arith.subf %246, %249 : vector<8x8xf32>
    %251 = math.exp %250 : vector<8x8xf32>
    %cst_100 = arith.constant dense<0.000000e+00> : vector<8xf32>
    %252 = vector.multi_reduction <add>, %251, %cst_100 [1] : vector<8x8xf32> to vector<8xf32>
    %253 = vector.shape_cast %252 : vector<8xf32> to vector<8x1xf32>
    %254 = tpu.reciprocal %253 {approx = true} : vector<8x1xf32> -> vector<8x1xf32>
    %255 = vector.broadcast %254 : vector<8x1xf32> to vector<8x8xf32>
    %256 = arith.mulf %251, %255 : vector<8x8xf32>
    %257 = arith.truncf %256 : vector<8x8xf32> to vector<8x8xbf16>
    %cst_101 = arith.constant dense<0.000000e+00> : vector<8x64xf32>
    %258 = tpu.matmul %257, %244, %cst_101 {dimension_numbers = #tpu.dot_dimension_numbers<[1], [0], [0], [1], [0, 0, 1, 1], [], []>} : vector<8x8xbf16>, vector<8x64xbf16>, vector<8x64xf32> -> vector<8x64xf32>
    %259 = tpu.concatenate %238, %258 in 1 : vector<8x64xf32>, vector<8x64xf32> -> vector<8x128xf32>
    %260 = arith.truncf %259 : vector<8x128xf32> to vector<8x128xbf16>
    %c1_102 = arith.constant 1 : index
    %c0_103 = arith.constant 0 : index
    %c0_104 = arith.constant 0 : index
    %261 = vector.load %arg10[%c1_102, %c0_103, %c0_104] : memref<2x128x128xbf16, #tpu.memory_space<vmem>>, vector<1x128x128xbf16>
    %262 = vector.shape_cast %261 : vector<1x128x128xbf16> to vector<128x128xbf16>
    %cst_105 = arith.constant dense<0.000000e+00> : vector<8x128xf32>
    %263 = tpu.matmul %260, %262, %cst_105 {dimension_numbers = #tpu.dot_dimension_numbers<[1], [0], [0], [1], [0, 0, 1, 1], [], []>} : vector<8x128xbf16>, vector<128x128xbf16>, vector<8x128xf32> -> vector<8x128xf32>
    %264 = arith.addf %181, %263 : vector<8x128xf32>
    %c1_106 = arith.constant 1 : index
    %c0_107 = arith.constant 0 : index
    %c0_108 = arith.constant 0 : index
    %265 = vector.load %arg11[%c1_106, %c0_107, %c0_108] : memref<2x1x128xbf16, #tpu.memory_space<vmem>>, vector<1x1x128xbf16>
    %266 = vector.shape_cast %265 : vector<1x1x128xbf16> to vector<1x128xbf16>
    %267 = arith.extf %266 : vector<1x128xbf16> to vector<1x128xf32>
    %268 = vector.broadcast %267 : vector<1x128xf32> to vector<8x128xf32>
    %269 = arith.addf %264, %268 : vector<8x128xf32>
    %c1_109 = arith.constant 1 : index
    %c0_110 = arith.constant 0 : index
    %c0_111 = arith.constant 0 : index
    %270 = vector.load %arg12[%c1_109, %c0_110, %c0_111] : memref<2x1x128xbf16, #tpu.memory_space<vmem>>, vector<1x1x128xbf16>
    %271 = vector.shape_cast %270 : vector<1x1x128xbf16> to vector<1x128xbf16>
    %272 = arith.extf %271 : vector<1x128xbf16> to vector<1x128xf32>
    %c1_112 = arith.constant 1 : index
    %c0_113 = arith.constant 0 : index
    %c0_114 = arith.constant 0 : index
    %273 = vector.load %arg13[%c1_112, %c0_113, %c0_114] : memref<2x1x128xbf16, #tpu.memory_space<vmem>>, vector<1x1x128xbf16>
    %274 = vector.shape_cast %273 : vector<1x1x128xbf16> to vector<1x128xbf16>
    %275 = arith.extf %274 : vector<1x128xbf16> to vector<1x128xf32>
    %cst_115 = arith.constant dense<0.000000e+00> : vector<8xf32>
    %276 = vector.multi_reduction <add>, %269, %cst_115 [1] : vector<8x128xf32> to vector<8xf32>
    %277 = vector.shape_cast %276 : vector<8xf32> to vector<8x1xf32>
    %cst_116 = arith.constant 1.280000e+02 : f32
    %278 = vector.broadcast %cst_116 : f32 to vector<8x1xf32>
    %279 = arith.divf %277, %278 : vector<8x1xf32>
    %280 = vector.broadcast %279 : vector<8x1xf32> to vector<8x128xf32>
    %281 = arith.subf %269, %280 : vector<8x128xf32>
    %282 = arith.mulf %281, %281 : vector<8x128xf32>
    %cst_117 = arith.constant dense<0.000000e+00> : vector<8xf32>
    %283 = vector.multi_reduction <add>, %282, %cst_117 [1] : vector<8x128xf32> to vector<8xf32>
    %284 = vector.shape_cast %283 : vector<8xf32> to vector<8x1xf32>
    %cst_118 = arith.constant 1.280000e+02 : f32
    %285 = vector.broadcast %cst_118 : f32 to vector<8x1xf32>
    %286 = arith.divf %284, %285 : vector<8x1xf32>
    %287 = vector.broadcast %279 : vector<8x1xf32> to vector<8x128xf32>
    %288 = arith.subf %269, %287 : vector<8x128xf32>
    %cst_119 = arith.constant 9.99999974E-6 : f32
    %289 = vector.broadcast %cst_119 : f32 to vector<8x1xf32>
    %290 = arith.addf %286, %289 : vector<8x1xf32>
    %291 = math.rsqrt %290 : vector<8x1xf32>
    %292 = vector.broadcast %291 : vector<8x1xf32> to vector<8x128xf32>
    %293 = arith.mulf %288, %292 : vector<8x128xf32>
    %294 = vector.broadcast %272 : vector<1x128xf32> to vector<8x128xf32>
    %295 = arith.mulf %293, %294 : vector<8x128xf32>
    %296 = vector.broadcast %275 : vector<1x128xf32> to vector<8x128xf32>
    %297 = arith.addf %295, %296 : vector<8x128xf32>
    %298 = arith.truncf %297 : vector<8x128xf32> to vector<8x128xbf16>
    %c1_120 = arith.constant 1 : index
    %c0_121 = arith.constant 0 : index
    %c0_122 = arith.constant 0 : index
    %299 = vector.load %arg14[%c1_120, %c0_121, %c0_122] : memref<2x128x512xbf16, #tpu.memory_space<vmem>>, vector<1x128x512xbf16>
    %300 = vector.shape_cast %299 : vector<1x128x512xbf16> to vector<128x512xbf16>
    %cst_123 = arith.constant dense<0.000000e+00> : vector<8x512xf32>
    %301 = tpu.matmul %298, %300, %cst_123 {dimension_numbers = #tpu.dot_dimension_numbers<[1], [0], [0], [1], [0, 0, 1, 1], [], []>} : vector<8x128xbf16>, vector<128x512xbf16>, vector<8x512xf32> -> vector<8x512xf32>
    %c1_124 = arith.constant 1 : index
    %c0_125 = arith.constant 0 : index
    %c0_126 = arith.constant 0 : index
    %302 = vector.load %arg15[%c1_124, %c0_125, %c0_126] : memref<2x1x512xbf16, #tpu.memory_space<vmem>>, vector<1x1x512xbf16>
    %303 = vector.shape_cast %302 : vector<1x1x512xbf16> to vector<1x512xbf16>
    %304 = arith.extf %303 : vector<1x512xbf16> to vector<1x512xf32>
    %305 = vector.broadcast %304 : vector<1x512xf32> to vector<8x512xf32>
    %306 = arith.addf %301, %305 : vector<8x512xf32>
    %cst_127 = arith.constant 1.702000e+00 : f32
    %307 = vector.broadcast %cst_127 : f32 to vector<8x512xf32>
    %308 = arith.mulf %307, %306 : vector<8x512xf32>
    %309 = arith.negf %308 : vector<8x512xf32>
    %310 = math.exp %309 : vector<8x512xf32>
    %cst_128 = arith.constant 1.000000e+00 : f32
    %311 = vector.broadcast %cst_128 : f32 to vector<8x512xf32>
    %312 = arith.addf %311, %310 : vector<8x512xf32>
    %313 = arith.divf %311, %312 : vector<8x512xf32>
    %314 = arith.mulf %306, %313 : vector<8x512xf32>
    %315 = arith.truncf %314 : vector<8x512xf32> to vector<8x512xbf16>
    %c1_129 = arith.constant 1 : index
    %c0_130 = arith.constant 0 : index
    %c0_131 = arith.constant 0 : index
    %316 = vector.load %arg16[%c1_129, %c0_130, %c0_131] : memref<2x512x128xbf16, #tpu.memory_space<vmem>>, vector<1x512x128xbf16>
    %317 = vector.shape_cast %316 : vector<1x512x128xbf16> to vector<512x128xbf16>
    %cst_132 = arith.constant dense<0.000000e+00> : vector<8x128xf32>
    %318 = tpu.matmul %315, %317, %cst_132 {dimension_numbers = #tpu.dot_dimension_numbers<[1], [0], [0], [1], [0, 0, 1, 1], [], []>} : vector<8x512xbf16>, vector<512x128xbf16>, vector<8x128xf32> -> vector<8x128xf32>
    %319 = arith.addf %269, %318 : vector<8x128xf32>
    %c1_133 = arith.constant 1 : index
    %c0_134 = arith.constant 0 : index
    %c0_135 = arith.constant 0 : index
    %320 = vector.load %arg17[%c1_133, %c0_134, %c0_135] : memref<2x1x128xbf16, #tpu.memory_space<vmem>>, vector<1x1x128xbf16>
    %321 = vector.shape_cast %320 : vector<1x1x128xbf16> to vector<1x128xbf16>
    %322 = arith.extf %321 : vector<1x128xbf16> to vector<1x128xf32>
    %323 = vector.broadcast %322 : vector<1x128xf32> to vector<8x128xf32>
    %324 = arith.addf %319, %323 : vector<8x128xf32>
    %c0_136 = arith.constant 0 : index
    %c0_137 = arith.constant 0 : index
    %325 = vector.load %arg18[%c0_136, %c0_137] : memref<1x128xbf16, #tpu.memory_space<vmem>>, vector<1x128xbf16>
    %326 = arith.extf %325 : vector<1x128xbf16> to vector<1x128xf32>
    %c0_138 = arith.constant 0 : index
    %c0_139 = arith.constant 0 : index
    %327 = vector.load %arg19[%c0_138, %c0_139] : memref<1x128xbf16, #tpu.memory_space<vmem>>, vector<1x128xbf16>
    %328 = arith.extf %327 : vector<1x128xbf16> to vector<1x128xf32>
    %cst_140 = arith.constant dense<0.000000e+00> : vector<8xf32>
    %329 = vector.multi_reduction <add>, %324, %cst_140 [1] : vector<8x128xf32> to vector<8xf32>
    %330 = vector.shape_cast %329 : vector<8xf32> to vector<8x1xf32>
    %cst_141 = arith.constant 1.280000e+02 : f32
    %331 = vector.broadcast %cst_141 : f32 to vector<8x1xf32>
    %332 = arith.divf %330, %331 : vector<8x1xf32>
    %333 = vector.broadcast %332 : vector<8x1xf32> to vector<8x128xf32>
    %334 = arith.subf %324, %333 : vector<8x128xf32>
    %335 = arith.mulf %334, %334 : vector<8x128xf32>
    %cst_142 = arith.constant dense<0.000000e+00> : vector<8xf32>
    %336 = vector.multi_reduction <add>, %335, %cst_142 [1] : vector<8x128xf32> to vector<8xf32>
    %337 = vector.shape_cast %336 : vector<8xf32> to vector<8x1xf32>
    %cst_143 = arith.constant 1.280000e+02 : f32
    %338 = vector.broadcast %cst_143 : f32 to vector<8x1xf32>
    %339 = arith.divf %337, %338 : vector<8x1xf32>
    %340 = vector.broadcast %332 : vector<8x1xf32> to vector<8x128xf32>
    %341 = arith.subf %324, %340 : vector<8x128xf32>
    %cst_144 = arith.constant 9.99999974E-6 : f32
    %342 = vector.broadcast %cst_144 : f32 to vector<8x1xf32>
    %343 = arith.addf %339, %342 : vector<8x1xf32>
    %344 = math.rsqrt %343 : vector<8x1xf32>
    %345 = vector.broadcast %344 : vector<8x1xf32> to vector<8x128xf32>
    %346 = arith.mulf %341, %345 : vector<8x128xf32>
    %347 = vector.broadcast %326 : vector<1x128xf32> to vector<8x128xf32>
    %348 = arith.mulf %346, %347 : vector<8x128xf32>
    %349 = vector.broadcast %328 : vector<1x128xf32> to vector<8x128xf32>
    %350 = arith.addf %348, %349 : vector<8x128xf32>
    %351 = arith.truncf %350 : vector<8x128xf32> to vector<8x128xbf16>
    %c0_145 = arith.constant 0 : index
    %c0_146 = arith.constant 0 : index
    %c0_147 = arith.constant 0 : index
    %352 = vector.load %arg20[%c0_145, %c0_146, %c0_147] : memref<1x8x128xbf16, #tpu.memory_space<vmem>>, vector<1x8x128xbf16>
    %353 = vector.shape_cast %352 : vector<1x8x128xbf16> to vector<8x128xbf16>
    %354 = vector.shape_cast %351 : vector<8x128xbf16> to vector<1x8x128xbf16>
    tpu.vector_store %arg20[%c0_145, %c0_146, %c0_147], %354 {strides = array<i32>} : memref<1x8x128xbf16, #tpu.memory_space<vmem>>, vector<1x8x128xbf16>,
    return
  }
  func.func @transform_0(%arg0: i32) -> (i32, i32, i32) {
    %c0_i32 = arith.constant 0 : i32
    %c0_i32_0 = arith.constant 0 : i32
    %c0_i32_1 = arith.constant 0 : i32
    return %arg0, %c0_i32, %c0_i32_0 : i32, i32, i32
  }
  func.func @transform_1(%arg0: i32) -> (i32, i32) {
    %c0_i32 = arith.constant 0 : i32
    %c0_i32_0 = arith.constant 0 : i32
    %c0_i32_1 = arith.constant 0 : i32
    return %c0_i32, %c0_i32_0 : i32, i32
  }
  func.func @transform_2(%arg0: i32) -> (i32, i32) {
    %c0_i32 = arith.constant 0 : i32
    %c0_i32_0 = arith.constant 0 : i32
    %c0_i32_1 = arith.constant 0 : i32
    return %c0_i32, %c0_i32_0 : i32, i32
  }
  func.func @transform_3(%arg0: i32) -> (i32, i32) {
    %c0_i32 = arith.constant 0 : i32
    %c0_i32_0 = arith.constant 0 : i32
    %c0_i32_1 = arith.constant 0 : i32
    return %c0_i32, %c0_i32_0 : i32, i32
  }
  func.func @transform_4(%arg0: i32) -> (i32, i32) {
    %c0_i32 = arith.constant 0 : i32
    %c0_i32_0 = arith.constant 0 : i32
    %c0_i32_1 = arith.constant 0 : i32
    return %c0_i32, %c0_i32_0 : i32, i32
  }
  func.func @transform_5(%arg0: i32) -> (i32, i32, i32) {
    %c0_i32 = arith.constant 0 : i32
    %c0_i32_0 = arith.constant 0 : i32
    %c0_i32_1 = arith.constant 0 : i32
    %c0_i32_2 = arith.constant 0 : i32
    return %c0_i32, %c0_i32_0, %c0_i32_1 : i32, i32, i32
  }
  func.func @transform_6(%arg0: i32) -> (i32, i32, i32) {
    %c0_i32 = arith.constant 0 : i32
    %c0_i32_0 = arith.constant 0 : i32
    %c0_i32_1 = arith.constant 0 : i32
    %c0_i32_2 = arith.constant 0 : i32
    return %c0_i32, %c0_i32_0, %c0_i32_1 : i32, i32, i32
  }
  func.func @transform_7(%arg0: i32) -> (i32, i32, i32) {
    %c0_i32 = arith.constant 0 : i32
    %c0_i32_0 = arith.constant 0 : i32
    %c0_i32_1 = arith.constant 0 : i32
    %c0_i32_2 = arith.constant 0 : i32
    return %c0_i32, %c0_i32_0, %c0_i32_1 : i32, i32, i32
  }
  func.func @transform_8(%arg0: i32) -> (i32, i32, i32) {
    %c0_i32 = arith.constant 0 : i32
    %c0_i32_0 = arith.constant 0 : i32
    %c0_i32_1 = arith.constant 0 : i32
    %c0_i32_2 = arith.constant 0 : i32
    return %c0_i32, %c0_i32_0, %c0_i32_1 : i32, i32, i32
  }
  func.func @transform_9(%arg0: i32) -> (i32, i32, i32) {
    %c0_i32 = arith.constant 0 : i32
    %c0_i32_0 = arith.constant 0 : i32
    %c0_i32_1 = arith.constant 0 : i32
    %c0_i32_2 = arith.constant 0 : i32
    return %c0_i32, %c0_i32_0, %c0_i32_1 : i32, i32, i32
  }
  func.func @transform_10(%arg0: i32) -> (i32, i32, i32) {
    %c0_i32 = arith.constant 0 : i32
    %c0_i32_0 = arith.constant 0 : i32
    %c0_i32_1 = arith.constant 0 : i32
    %c0_i32_2 = arith.constant 0 : i32
    return %c0_i32, %c0_i32_0, %c0_i32_1 : i32, i32, i32
  }
  func.func @transform_11(%arg0: i32) -> (i32, i32, i32) {
    %c0_i32 = arith.constant 0 : i32
    %c0_i32_0 = arith.constant 0 : i32
    %c0_i32_1 = arith.constant 0 : i32
    %c0_i32_2 = arith.constant 0 : i32
    return %c0_i32, %c0_i32_0, %c0_i32_1 : i32, i32, i32
  }
  func.func @transform_12(%arg0: i32) -> (i32, i32, i32) {
    %c0_i32 = arith.constant 0 : i32
    %c0_i32_0 = arith.constant 0 : i32
    %c0_i32_1 = arith.constant 0 : i32
    %c0_i32_2 = arith.constant 0 : i32
    return %c0_i32, %c0_i32_0, %c0_i32_1 : i32, i32, i32
  }
  func.func @transform_13(%arg0: i32) -> (i32, i32, i32) {
    %c0_i32 = arith.constant 0 : i32
    %c0_i32_0 = arith.constant 0 : i32
    %c0_i32_1 = arith.constant 0 : i32
    %c0_i32_2 = arith.constant 0 : i32
    return %c0_i32, %c0_i32_0, %c0_i32_1 : i32, i32, i32
  }
  func.func @transform_14(%arg0: i32) -> (i32, i32, i32) {
    %c0_i32 = arith.constant 0 : i32
    %c0_i32_0 = arith.constant 0 : i32
    %c0_i32_1 = arith.constant 0 : i32
    %c0_i32_2 = arith.constant 0 : i32
    return %c0_i32, %c0_i32_0, %c0_i32_1 : i32, i32, i32
  }
  func.func @transform_15(%arg0: i32) -> (i32, i32, i32) {
    %c0_i32 = arith.constant 0 : i32
    %c0_i32_0 = arith.constant 0 : i32
    %c0_i32_1 = arith.constant 0 : i32
    %c0_i32_2 = arith.constant 0 : i32
    return %c0_i32, %c0_i32_0, %c0_i32_1 : i32, i32, i32
  }
  func.func @transform_16(%arg0: i32) -> (i32, i32, i32) {
    %c0_i32 = arith.constant 0 : i32
    %c0_i32_0 = arith.constant 0 : i32
    %c0_i32_1 = arith.constant 0 : i32
    %c0_i32_2 = arith.constant 0 : i32
    return %c0_i32, %c0_i32_0, %c0_i32_1 : i32, i32, i32
  }
  func.func @transform_17(%arg0: i32) -> (i32, i32) {
    %c0_i32 = arith.constant 0 : i32
    %c0_i32_0 = arith.constant 0 : i32
    %c0_i32_1 = arith.constant 0 : i32
    return %c0_i32, %c0_i32_0 : i32, i32
  }
  func.func @transform_18(%arg0: i32) -> (i32, i32) {
    %c0_i32 = arith.constant 0 : i32
    %c0_i32_0 = arith.constant 0 : i32
    %c0_i32_1 = arith.constant 0 : i32
    return %c0_i32, %c0_i32_0 : i32, i32
  }
  func.func @transform_19(%arg0: i32) -> (i32, i32, i32) {
    %c0_i32 = arith.constant 0 : i32
    %c0_i32_0 = arith.constant 0 : i32
    %c0_i32_1 = arith.constant 0 : i32
    return %arg0, %c0_i32, %c0_i32_0 : i32, i32, i32
  }
}

</mosaic_0001>

<bundles_post_ra>
// kernel: clip_vit_forward.1
= control target key start
LH: loop header
LB: loop body
LE: loop exit
PB: predicated region body
PF: predicated region fallthrough
CT: control target
= control target key end

     0   :  { %s5412_s0 = inlined_call_operand.vmem [shape: bf16[2,8,256], index: 0, kind: input, shape index: {}]   ;;  %s5413_s1 = inlined_call_operand.hbm [shape: bf16[256,128], index: 1, kind: input, shape index: {}]   ;;  %s5414_s2 = inlined_call_operand.vmem [shape: bf16[8,128], index: 2, kind: input, shape index: {}]   ;;  %s5415_s3 = inlined_call_operand.vmem [shape: bf16[1,128], index: 3, kind: input, shape index: {}]   ;;  %s5416_s4 = inlined_call_operand.vmem [shape: bf16[1,128], index: 4, kind: input, shape index: {}]   ;;  %s5417_s5 = inlined_call_operand.vmem [shape: bf16[2,1,128], index: 5, kind: input, shape index: {}]   ;;  %s5418_s6 = inlined_call_operand.vmem [shape: bf16[2,1,128], index: 6, kind: input, shape index: {}]   ;;  %s5419_s7 = inlined_call_operand.hbm [shape: bf16[2,128,384], index: 7, kind: input, shape index: {}]   ;;  %s5420_s8 = inlined_call_operand.vmem [shape: bf16[2,1,384], index: 8, kind: input, shape index: {}]   ;;  %s5421_s9 = inlined_call_operand.hbm [shape: bf16[2,128,128], index: 9, kind: input, shape index: {}]   ;;  %s5422_s10 = inlined_call_operand.vmem [shape: bf16[2,1,128], index: 10, kind: input, shape index: {}]   ;;  %s5423_s11 = inlined_call_operand.vmem [shape: bf16[2,1,128], index: 11, kind: input, shape index: {}]   ;;  %s5424_s12 = inlined_call_operand.vmem [shape: bf16[2,1,128], index: 12, kind: input, shape index: {}]   ;;  %s5425_s13 = inlined_call_operand.vmem [shape: bf16[2,128,512], index: 13, kind: input, shape index: {}]   ;;  %s5426_s14 = inlined_call_operand.vmem [shape: bf16[2,1,512], index: 14, kind: input, shape index: {}]   ;;  %s5427_s15 = inlined_call_operand.hbm [shape: bf16[2,512,128], index: 15, kind: input, shape index: {}]   ;;  %s5428_s16 = inlined_call_operand.vmem [shape: bf16[2,1,128], index: 16, kind: input, shape index: {}]   ;;  %s5429_s17 = inlined_call_operand.vmem [shape: bf16[1,128], index: 17, kind: input, shape index: {}]   ;;  %s5430_s18 = inlined_call_operand.vmem [shape: bf16[1,128], index: 18, kind: input, shape index: {}]   ;;  %s5431_s19 = inlined_call_operand.vmem [shape: bf16[2,8,128], index: 19, kind: output, shape index: {}]  }
   0x1   :  { %5433 = sst [smem:[#allocation13_spill]] %s5412_s0 }
   0x2   :  { %5434 = sst [smem:[#allocation14_spill]] %s5413_s1 }
   0x3   :  { %5435 = sst [smem:[#allocation15_spill]] %s5414_s2 }
   0x4   :  { %5436 = sst [smem:[#allocation16_spill]] %s5415_s3 }
   0x5   :  { %5437 = sst [smem:[#allocation17_spill]] %s5419_s7 }
   0x6   :  { %5438 = sst [smem:[#allocation18_spill]] %s5429_s17 }
   0x7   :  { %5439 = sst [smem:[#allocation19_spill]] %s5430_s18 }
   0x8   :  { %5440 = sst [smem:[#allocation20_spill]] %s5431_s19 }
   0x9   :  { %24 = vsyncpa [#allocation3], 0 }
   0xa   :  { %25 = vsyncpa [#allocation5], 0 }
   0xb   :  { %26 = vsyncpa [#allocation8], 0  ;;  %s4753_s0 = smov 0  }
   0xc LB: > { %5441 = sst [smem:[#allocation12_spill]] %s4640_s0  ;;  %s4762_s1 = sadd.s32 4294967295, %s4640_s0   ;;  %s4640_s0 = sphi %s4753_s0, %s32_s0  }
   0xd   : > { %s5442_s7 = sld [smem:[#allocation17_spill]]  ;;  %p3271_p0 = scmp.ge.s32.totalorder %s4640_s0, 1 }
   0xe   : > { %p467_p1 = scmp.lt.s32.totalorder %s4640_s0, 3  ;;  %p4413_p2 = scmp.eq.s32.totalorder %s4762_s1, 0 }
   0xf   : > { %s4642_s2 = smov [#allocation4]   ;;  %s5444_s3 = sld [smem:[#allocation14_spill]] }
  0x10   : > { %p4767_p3 = pnand %p3271_p0, %p467_p1  ;;  %s509_s23 = sshll.u32 %s4642_s2, 4  ;;  %s510_s23 = int_to_ptr.vmem [resolvable:$true] %s509_s23 }
  0x11   : > { %s4643_s28 = smov [#allocation2]   ;;  %s4644_s30 = smov 192  }
  0x12   : > { %p4400_p4 = pneg %p4767_p3  ;;  %s480_s29 = sshll.u32 %s4643_s28, 4  ;;  %s481_s29 = int_to_ptr.vmem [resolvable:$true] %s480_s29 }
  0x13   : > { %s507_s21 = sshll.u32 %s5442_s7, 4  ;;  %s4645_s20 = smov 12   ;;  %s508_s21 = int_to_ptr.hbm [resolvable:$true] %s507_s21 }
  0x14   : > { %p4778_p5 = pnand %p4413_p2, %p4400_p4  ;;  %s524_s25 = sshll.u32 %s5421_s9, 4  ;;  %s525_s25 = int_to_ptr.hbm [resolvable:$true] %s524_s25 }
  0x15   : > { %s478_s26 = sshll.u32 %s5444_s3, 4  ;;  %s4646_s3 = smov 64   ;;  %s479_s26 = int_to_ptr.hbm [resolvable:$true] %s478_s26 }
  0x16   : > { %4406 = dma.hbm_to_vmem [thread:$0]  (!%p4778_p5), %s508_s21, 6144, %s510_s23, [#allocation5], %s4644_s30, %s4644_s30, %s4645_s20  }
  0x17   : > { %s4647_s7 = smov 4   ;;  %s4648_s0 = smov [#allocation6]  }
  0x18   : > { %4403 = dma.hbm_to_vmem [thread:$0]  (!%p4778_p5), %s479_s26, 2048, %s481_s29, [#allocation3], %s4646_s3, %s4646_s3, %s4647_s7  }
  0x19   : > { %s526_s19 = sshll.u32 %s4648_s0, 4  ;;  %s553_s28 = sshll.u32 %s5427_s15, 4  ;;  %s527_s19 = int_to_ptr.vmem [resolvable:$true] %s526_s19  ;;  %s554_s28 = int_to_ptr.hbm [resolvable:$true] %s553_s28 }
  0x1a   : > { %4409 = dma.hbm_to_vmem [thread:$0]  (!%p4778_p5), %s525_s25, 2048, %s527_s19, [#allocation5], %s4646_s3, %s4646_s3, %s4647_s7  }
  0x1b   : > { %s4649_s21 = smov [#allocation7]   ;;  %588 = sbr.rel (%p4767_p3) target bundleno = 4734 (0x127e), region = 96 }
  0x1c   : > { %s555_s23 = sshll.u32 %s4649_s21, 4  ;;  %s556_s23 = int_to_ptr.vmem [resolvable:$true] %s555_s23 }
  0x1d   : > { %4412 = dma.hbm_to_vmem [thread:$0]  (!%p4778_p5), %s554_s28, 8192, %s556_s23, [#allocation8], %s4646_s3, %s4646_s3, %s4647_s7  }
  0x20   : > { %4627 = dma.done.wait (%p4413_p2), [#allocation3], 2048  }
  0x21   : > { %4629 = vsyncadd (%p4413_p2), [#allocation3], 4294965248 }
  0x22   : > { %4631 = dma.done.wait (%p4413_p2), [#allocation5], 8192  }
  0x23   : > { %4633 = vsyncadd (%p4413_p2), [#allocation5], 4294959104 }
  0x24   : > { %4635 = dma.done.wait (%p4413_p2), [#allocation8], 8192  }
  0x25   : > { %4637 = vsyncadd (%p4413_p2), [#allocation8], 4294959104  ;;  %v4183_v0 = vld [vmem:[#allocation2 + $0x38] sm:$0xff]  ;;  %v4182_v2 = vld [vmem:[#allocation2 + $0x30] sm:$0xff]  ;;  %p659_p6 = scmp.lt.s32.totalorder %s4762_s1, 1  ;;  %s5446_s19 = sld [smem:[#allocation13_spill]] }
  0x26   : > { %v4191_v1 = vld [vmem:[#allocation2 + $0x78] sm:$0xff]  ;;  %807 = vmatpush.bf16.msra.mxu0 %v4183_v0  ;;  %v4190_v3 = vld [vmem:[#allocation2 + $0x70] sm:$0xff]  ;;  %v4181_v4 = vld [vmem:[#allocation2 + $0x28] sm:$0xff]  ;;  %s5447_s27 = sld [smem:[#allocation15_spill]]  ;;  %v4650_v29 = vmov 128.0   ;;  %vm1151_vm7 = vcmask 1043456  }
  0x27   : > { %820 = vmatpush.bf16.msra.mxu1 %v4191_v1  ;;  %v4189_v5 = vld [vmem:[#allocation2 + $0x68] sm:$0xff]  ;;  %v4180_v6 = vld [vmem:[#allocation2 + $0x20] sm:$0xff]  ;;  %s5454_s1 = smov (!%p659_p6, %s4762_s1), 1  ;;  %v4179_v8 = vld [vmem:[#allocation2 + $0x18] sm:$0xff]  ;;  %4440 = vrcp.f32 %v4650_v29  ;;  %s5448_s20 = sld [smem:[#allocation16_spill]]  ;;  %vm1115_vm8 = vcmask 523264  }
  0x28   : > { %v4188_v7 = vld [vmem:[#allocation2 + $0x60] sm:$0xff]  ;;  %v4187_v9 = vld [vmem:[#allocation2 + $0x58] sm:$0xff]  ;;  %s4175_s7 = sshll.u32 %s5454_s1, 3  ;;  %v4178_v10 = vld [vmem:[#allocation2 + $0x10] sm:$0xff]  ;;  %s4651_s17 = smov 64   ;;  %vm1135_vm10 = vcmask 64512  }
  0x29   : > { %v4186_v11 = vld [vmem:[#allocation2 + $0x50] sm:$0xff]  ;;  %v4177_v12 = vld [vmem:[#allocation2 + $0x8] sm:$0xff]  ;;  %v4176_v17 = vld [vmem:[#allocation2] sm:$0xff]  ;;  %s5449_s26 = sld [smem:[#allocation18_spill]] }
  0x2a   : > { %808 = vmatpush.bf16.msra.mxu0 %v4182_v2  ;;  %v4185_v13 = vld [vmem:[#allocation2 + $0x48] sm:$0xff]  ;;  %v4184_v18 = vld [vmem:[#allocation2 + $0x40] sm:$0xff]  ;;  %v4214_v60 = vld [vmem:[#allocation4 + $0xb0] sm:$0xf0]  ;;  %s5450_s30 = sld [smem:[#allocation19_spill]] }
  0x2b   : > { %821 = vmatpush.bf16.msra.mxu1 %v4190_v3  ;;  %s663_s0 = scalar_lea.vmem %s5446_s19, %s4175_s7  ;;  %v835_v48 = vld [vmem:[%s5416_s4] sm:$0x1]  ;;  %v3435_v59 = vld [vmem:[#allocation4 + $0xa8] sm:$0xf]  ;;  %v4213_v61 = vld [vmem:[#allocation4 + $0xac] sm:$0xf] }
  0x2c   : > { %v669_v14 = vld [vmem:[%s663_s0] sm:$0xff]  ;;  %v836_v51 = vunpack.c.l.bf16 %v835_v48  ;;  %v3436_v62 = vor.u32 %v4214_v60, %v3435_v59  ;;  %v3437_v63 = vld [vmem:[#allocation4 + $0xb4] sm:$0xf0]  ;;  %v3443_v0 = vld [vmem:[#allocation4 + $0xb0] sm:$0xf]  ;;  %s5451_s24 = sld [smem:[#allocation20_spill]] }
  0x2d   : > { %v705_v15 = vunpack.c.l.b16 %v669_v14  ;;  %v706_v16 = vunpack.c.h.b16 %v669_v14  ;;  %v702_v21 = vld [vmem:[%s5447_s27] sm:$0xf]  ;;  %v4441_v30 = vpop.eup %4440  ;;  %v4215_v1 = vld [vmem:[#allocation4 + $0xb8] sm:$0xf0]  ;;  %v3440_v2 = vor.u32 %v4213_v61, %v3437_v63  ;;  %v4212_v14 = vld [vmem:[#allocation4 + $0xa0] sm:$0xf0] }
  0x2e   : > { %809 = vmatpush.bf16.msra.mxu0 %v4181_v4  ;;  %v703_v22 = vunpack.c.l.bf16 %v702_v21  ;;  %v840_v31 = vmul.f32 128.0, %v4441_v30  ;;  %vm844_vm0 = vweird.f32 %v4441_v30  ;;  %v833_v46 = vld [vmem:[%s5448_s20] sm:$0x1]  ;;  %v866_v56 = vperm.slane %v836_v51, 0  ;;  %1073 = vmatpush.bf16.msra.mxu2 %v3436_v62  ;;  %v3413_v21 = vld [vmem:[#allocation4 + $0x84] sm:$0xf0] }
  0x2f   : > { %822 = vmatpush.bf16.msra.mxu1 %v4189_v5  ;;  %v707_v19 = vpack.c.b16 %v705_v15, %v705_v15  ;;  %v708_v20 = vpack.c.b16 %v706_v16, %v706_v16  ;;  %v834_v49 = vunpack.c.l.bf16 %v833_v46  ;;  %v3444_v3 = vor.u32 %v4215_v1, %v3443_v0  ;;  %1086 = vmatpush.bf16.msra.mxu3 %v3440_v2  ;;  %v4199_v46 = vld [vmem:[#allocation4 + $0x38] sm:$0xf0]  ;;  %v4200_v51 = vld [vmem:[#allocation4 + $0x40] sm:$0xf0]  ;;  %v3365_v59 = vld [vmem:[#allocation4 + $0x24] sm:$0xf0] }
  0x30   : > { %v841_v32 = vsub.f32 1.0, %v840_v31  ;;  %v3407_v31 = vld [vmem:[#allocation4 + $0x68] sm:$0xf]  ;;  %v3371_v60 = vld [vmem:[#allocation4 + $0x20] sm:$0xf]  ;;  %s3284_s20 = sshll.u32 %s5454_s1, 2 }
  0x31   : > { %v864_v53 = vperm.slane %v834_v49, 0  ;;  %v3377_v49 = vld [vmem:[#allocation4 + $0x3c] sm:$0xf0]  ;;  %v4197_v61 = vld [vmem:[#allocation4 + $0x28] sm:$0xf0] }
  0x32   : > { %810 = vmatpush.bf16.msra.mxu0 %v4180_v6  ;;  %v842_v33 = vmul.f32 %v4441_v30, %v841_v32  ;;  %v4206_v32 = vld [vmem:[#allocation4 + $0x70] sm:$0xf0]  ;;  %v3372_v63 = vor.u32 %v4197_v61, %v3371_v60  ;;  %v3351_v0 = vld [vmem:[#allocation4] sm:$0xf]  ;;  %v4193_v1 = vld [vmem:[#allocation4 + $0x8] sm:$0xf0]  ;;  %s667_s25 = scalar_lea.vmem %s5451_s24, %s3284_s20 }
  0x33   : > { %823 = vmatpush.bf16.msra.mxu1 %v4188_v7  ;;  %v4192_v2 = vld [vmem:[#allocation4 + $0x4] sm:$0xf] }
  0x34   : > { %v843_v34 = vadd.f32 %v4441_v30, %v842_v33 }
  0x36   : > { %811 = vmatpush.bf16.msra.mxu0 %v4179_v8  ;;  %v4821_v35 = vsel %vm844_vm0, %v4441_v30, %v843_v34  ;;  %v3423_v8 = vld [vmem:[#allocation4 + $0x90] sm:$0xf]  ;;  %v3408_v34 = vor.u32 %v4206_v32, %v3407_v31 }
  0x37   : > { %824 = vmatpush.bf16.msra.mxu1 %v4187_v9  ;;  %v4211_v9 = vld [vmem:[#allocation4 + $0x98] sm:$0xf0]  ;;  %v3401_v30 = vld [vmem:[#allocation4 + $0x6c] sm:$0xf0] }
  0x3a   : > { %812 = vmatpush.bf16.msra.mxu0 %v4178_v10  ;;  %v4210_v10 = vld [vmem:[#allocation4 + $0x94] sm:$0xf] }
  0x3b   : > { %825 = vmatpush.bf16.msra.mxu1 %v4186_v11  ;;  %v3424_v11 = vor.u32 %v4211_v9, %v3423_v8 }
  0x3d   : > { %1074 = vmatpush.bf16.msra.mxu2 %v3424_v11 }
  0x3e   : > { %813 = vmatpush.bf16.msra.mxu0 %v4177_v12  ;;  %v3425_v12 = vld [vmem:[#allocation4 + $0x9c] sm:$0xf0] }
  0x3f   : > { %826 = vmatpush.bf16.msra.mxu1 %v4185_v13  ;;  %v3431_v13 = vld [vmem:[#allocation4 + $0x98] sm:$0xf]  ;;  %v3428_v15 = vor.u32 %v4210_v10, %v3425_v12 }
  0x40   : > { %v3432_v16 = vor.u32 %v4212_v14, %v3431_v13 }
  0x41   : > { %1087 = vmatpush.bf16.msra.mxu3 %v3428_v15 }
  0x42   : > { %814 = vmatpush.bf16.msra.mxu0 %v4176_v17  ;;  %v3411_v17 = vld [vmem:[#allocation4 + $0x78] sm:$0xf] }
  0x43   : > { %827 = vmatpush.bf16.msra.mxu1 %v4184_v18  ;;  %v4208_v18 = vld [vmem:[#allocation4 + $0x80] sm:$0xf0] }
  0x45   : > { %815 = vmatmul.bf16.vlgmr.msra.gmra.mxu0 %v707_v19  ;;  %v4207_v19 = vld [vmem:[#allocation4 + $0x7c] sm:$0xf] }
  0x46   : > { %828 = vmatmul.bf16.vlgmr.msra.gmra.mxu1 %v708_v20  ;;  %1099 = vmatpush.bf16.msrb.mxu0 %v3444_v3  ;;  %v3412_v20 = vor.u32 %v4208_v18, %v3411_v17  ;;  %v3352_v3 = vor.u32 %v4193_v1, %v3351_v0  ;;  %v874_v18 = vld [vmem:[%s5418_s6] sm:$0x1] }
  0x48   : > { %1075 = vmatpush.bf16.msra.mxu2 %v3412_v20 }
  0x4a   : > { %1100 = vmatpush.bf16.msrb.mxu0 %v3432_v16  ;;  %v872_v16 = vld [vmem:[%s5417_s5] sm:$0x1] }
  0xc2   : > { %v816_v23 = vpop.f32.mrf.mxu0 }
  0xc3   : > { %v829_v24 = vpop.f32.mrf.mxu1  ;;  %v817_v25 = vadd.f32 %v816_v23, %v703_v22  ;;  %v3419_v22 = vld [vmem:[#allocation4 + $0x80] sm:$0xf]  ;;  %v4209_v23 = vld [vmem:[#allocation4 + $0x88] sm:$0xf0] }
  0xc5   : > { %v830_v26 = vadd.f32 %v829_v24, %v817_v25  ;;  %v3416_v24 = vor.u32 %v4207_v19, %v3413_v21  ;;  %v3420_v25 = vor.u32 %v4209_v23, %v3419_v22  ;;  %v873_v19 = vunpack.c.l.bf16 %v872_v16 }
  0xc6   : > { %v875_v21 = vunpack.c.l.bf16 %v874_v18 }
  0xc7   : > { %837 = vadd.xlane.f32.xlu0 %v830_v26  ;;  %1088 = vmatpush.bf16.msra.mxu3 %v3416_v24  ;;  %v896_v23 = vperm.slane %v873_v19, 0 }
  0xc8   : > { %1101 = vmatpush.bf16.msrb.mxu0 %v3420_v25 }
  0xca   : > { %v818_v27 = vpop.f32.mrf.mxu0 }
  0xcb   : > { %v831_v28 = vpop.f32.mrf.mxu1  ;;  %v4205_v27 = vld [vmem:[#allocation4 + $0x68] sm:$0xf0] }
  0xcc   : > { %v4204_v28 = vld [vmem:[#allocation4 + $0x64] sm:$0xf]  ;;  %1102 = vmatpush.bf16.msrb.mxu0 %v3408_v34 }
  0xcd   : > { %v3404_v33 = vor.u32 %v4204_v28, %v3401_v30  ;;  %v933_v30 = vld [vmem:[%s5420_s8] sm:$0x7] }
  0xce   : > { %v934_v31 = vunpack.c.l.bf16 %v933_v30  ;;  %v4220_v30 = vld [vmem:[#allocation6 + $0x20] sm:$0xff] }
  0xcf   : > { %1089 = vmatpush.bf16.msra.mxu3 %v3404_v33 }
  0xd0   : > { %v938_v32 = vperm.slane %v934_v31, 4  ;;  %v936_v34 = vperm.slane %v934_v31, 0 }
  0xd2   : > { %v944_v33 = vperm.slane %v938_v32, 0  ;;  %v4218_v32 = vld [vmem:[#allocation6 + $0x10] sm:$0xff] }
 0x13a   : > { %v838_v36 = vpop.xlane.xlu0 %837 }
 0x13b   : > { %v846_v37 = vmul.f32 %v4821_v35, %v838_v36  ;;  %v3387_v36 = vld [vmem:[#allocation4 + $0x48] sm:$0xf] }
 0x13d   : > { %v847_v38 = vsub.f32 %v830_v26, %v846_v37  ;;  %v3399_v26 = vld [vmem:[#allocation4 + $0x60] sm:$0xf]  ;;  %v4202_v37 = vld [vmem:[#allocation4 + $0x50] sm:$0xf0] }
 0x13e   : > { %v3400_v29 = vor.u32 %v4205_v27, %v3399_v26  ;;  %v898_v26 = vperm.slane %v875_v21, 0 }
 0x13f   : > { %v848_v39 = vmul.f32 %v847_v38, %v847_v38 }
 0x140   : > { %1076 = vmatpush.bf16.msra.mxu2 %v3400_v29 }
 0x141   : > { %849 = vadd.xlane.f32.xlu0 %v848_v39  ;;  %v3388_v39 = vor.u32 %v4202_v37, %v3387_v36  ;;  %v937_v36 = vperm.slane %v934_v31, 2  ;;  %v4219_v31 = vld [vmem:[#allocation6 + $0x18] sm:$0xff] }
 0x144   : > { %1077 = vmatpush.bf16.msra.mxu2 %v3388_v39  ;;  %v942_v39 = vperm.slane %v936_v34, 0 }
 0x1b4   : > { %v850_v40 = vpop.xlane.xlu0 %849 }
 0x1b5   : > { %v851_v41 = vmul.f32 %v850_v40, %v4821_v35  ;;  %v3389_v40 = vld [vmem:[#allocation4 + $0x54] sm:$0xf0] }
 0x1b7   : > { %v852_v42 = vadd.f32 1e-05, %v851_v41  ;;  %v3395_v41 = vld [vmem:[#allocation4 + $0x50] sm:$0xf] }
 0x1b9   : > { %4442 = vrsqrt.f32 %v852_v42  ;;  %vm859_vm2 = vweird.f32 %v852_v42 }
 0x1bf   : > { %v4443_v43 = vpop.eup %4442 }
 0x1c0   : > { %v854_v44 = vmul.f32 %v4443_v43, %v852_v42  ;;  %vm860_vm1 = vweird.f32 %v4443_v43  ;;  %v4203_v42 = vld [vmem:[#allocation4 + $0x58] sm:$0xf0] }
 0x1c1   : > { %vm861_vm3 = vmor %vm859_vm2, %vm860_vm1 }
 0x1c2   : > { %v855_v45 = vmul.f32 %v4443_v43, %v854_v44  ;;  %v3396_v44 = vor.u32 %v4203_v42, %v3395_v41 }
 0x1c4   : > { %v856_v47 = vmul.f32 0.5, %v855_v45  ;;  %1103 = vmatpush.bf16.msrb.mxu0 %v3396_v44  ;;  %v3375_v45 = vld [vmem:[#allocation4 + $0x30] sm:$0xf] }
 0x1c5   : > { %v3376_v48 = vor.u32 %v4199_v46, %v3375_v45 }
 0x1c6   : > { %v857_v50 = vsub.f32 1.5, %v856_v47  ;;  %v4198_v47 = vld [vmem:[#allocation4 + $0x34] sm:$0xf] }
 0x1c7   : > { %1078 = vmatpush.bf16.msra.mxu2 %v3376_v48 }
 0x1c8   : > { %v858_v52 = vmul.f32 %v4443_v43, %v857_v50  ;;  %v3383_v50 = vld [vmem:[#allocation4 + $0x38] sm:$0xf] }
 0x1ca   : > { %v862_v54 = vsel %vm861_vm3, %v4443_v43, %v858_v52  ;;  %v3380_v52 = vor.u32 %v4198_v47, %v3377_v49 }
 0x1cb   : > { %v863_v55 = vmul.f32 %v862_v54, %v847_v38  ;;  %v4201_v38 = vld [vmem:[#allocation4 + $0x4c] sm:$0xf]  ;;  %v3363_v54 = vld [vmem:[#allocation4 + $0x18] sm:$0xf] }
 0x1cc   : > { %v3392_v43 = vor.u32 %v4201_v38, %v3389_v40 }
 0x1cd   : > { %v865_v57 = vmul.f32 %v864_v53, %v863_v55  ;;  %v3384_v53 = vor.u32 %v4200_v51, %v3383_v50  ;;  %v4196_v55 = vld [vmem:[#allocation4 + $0x20] sm:$0xf0] }
 0x1ce   : > { %1090 = vmatpush.bf16.msra.mxu3 %v3392_v43 }
 0x1cf   : > { %v4831_v58 = vadd.f32 %v866_v56, %v865_v57  ;;  %1104 = vmatpush.bf16.msrb.mxu0 %v3384_v53  ;;  %v4195_v56 = vld [vmem:[#allocation4 + $0x1c] sm:$0xf]  ;;  %v3364_v57 = vor.u32 %v4196_v55, %v3363_v54  ;;  %v868_v54 = vlaneseq }
 0x1d0   : > { %v3368_v62 = vor.u32 %v4195_v56, %v3365_v59  ;;  %v4652_v56 = vmov -1e+30  }
 0x1d1   : > { %876 = vadd.xlane.f32.xlu1 %v4831_v58  ;;  %1079 = vmatpush.bf16.msra.mxu2 %v3364_v57  ;;  %v869_v55 = vand.u32 127, %v868_v54 }
 0x1d2   : > { %1091 = vmatpush.bf16.msra.mxu3 %v3380_v52 }
 0x1d3   : > { %1105 = vmatpush.bf16.msrb.mxu0 %v3372_v63  ;;  %vm870_vm9 = vcmp.lt.s32.totalorder %v869_v55, 5  ;;  %v4253_v55 = vld [vmem:[%s5425_s13 + $0xec] sm:$0xf] }
 0x1d4   : > { %v4857_v57 = vsel %vm870_vm9, 0.0, %v4652_v56  ;;  %v3605_v56 = vld [vmem:[%s5425_s13 + $0xf8] sm:$0xf0] }
 0x1d5   : > { %1080 = vmatpush.bf16.msra.mxu2 %v3352_v3 }
 0x1d6   : > { %1092 = vmatpush.bf16.msra.mxu3 %v3368_v62 }
 0x244   : > { %v877_v4 = vpop.xlane.xlu1 %876 }
 0x245   : > { %v878_v5 = vmul.f32 %v877_v4, %v4821_v35  ;;  %v3353_v4 = vld [vmem:[#allocation4 + $0xc] sm:$0xf0] }
 0x246   : > { %v3356_v8 = vor.u32 %v4192_v2, %v3353_v4 }
 0x247   : > { %v4836_v6 = vsub.f32 %v4831_v58, %v878_v5  ;;  %v3359_v5 = vld [vmem:[#allocation4 + $0x8] sm:$0xf] }
 0x248   : > { %1093 = vmatpush.bf16.msra.mxu3 %v3356_v8 }
 0x249   : > { %v880_v7 = vmul.f32 %v4836_v6, %v4836_v6 }
 0x24b   : > { %881 = vadd.xlane.f32.xlu1 %v880_v7  ;;  %v4194_v7 = vld [vmem:[#allocation4 + $0x10] sm:$0xf0] }
 0x24c   : > { %v3360_v9 = vor.u32 %v4194_v7, %v3359_v5 }
 0x24e   : > { %1106 = vmatpush.bf16.msrb.mxu0 %v3360_v9 }
 0x2be   : > { %v882_v10 = vpop.xlane.xlu1 %881 }
 0x2bf   : > { %v883_v11 = vmul.f32 %v882_v10, %v4821_v35 }
 0x2c1   : > { %v884_v12 = vadd.f32 1e-05, %v883_v11 }
 0x2c3   : > { %4444 = vrsqrt.f32 %v884_v12  ;;  %vm891_vm5 = vweird.f32 %v884_v12 }
 0x2c9   : > { %v4445_v13 = vpop.eup %4444 }
 0x2ca   : > { %v886_v14 = vmul.f32 %v4445_v13, %v884_v12  ;;  %vm892_vm4 = vweird.f32 %v4445_v13 }
 0x2cb   : > { %vm893_vm6 = vmor %vm891_vm5, %vm892_vm4 }
 0x2cc   : > { %v887_v15 = vmul.f32 %v4445_v13, %v886_v14 }
 0x2ce   : > { %v888_v17 = vmul.f32 0.5, %v887_v15 }
 0x2d0   : > { %v889_v20 = vsub.f32 1.5, %v888_v17 }
 0x2d2   : > { %v890_v22 = vmul.f32 %v4445_v13, %v889_v20 }
 0x2d4   : > { %v894_v24 = vsel %vm893_vm6, %v4445_v13, %v890_v22 }
 0x2d5   : > { %v895_v25 = vmul.f32 %v894_v24, %v4836_v6  ;;  %v943_v6 = vperm.slane %v937_v36, 0 }
 0x2d7   : > { %v897_v27 = vmul.f32 %v896_v23, %v895_v25 }
 0x2d9   : > { %v899_v28 = vadd.f32 %v898_v26, %v897_v27  ;;  %v4223_v27 = vld [vmem:[#allocation6 + $0x38] sm:$0xff] }
 0x2da   : > { %1297 = vmatpush.bf16.msrb.mxu2 %v4223_v27  ;;  %v4240_v27 = vld [vmem:[%s5425_s13 + $0x84] sm:$0xf] }
 0x2db   : > { %v900_v29 = vpack.c.bf16 %v899_v28, %v899_v28  ;;  %v4222_v28 = vld [vmem:[#allocation6 + $0x30] sm:$0xff] }
 0x2dd   : > { %1081 = vmatmul.bf16.vlgmr.msra.gmra.mxu2 %v900_v29  ;;  %1094 = vmatmul.bf16.vlgmr.msra.gmra.mxu3 %v900_v29 }
 0x2de   : > { %1107 = vmatmul.bf16.vlgmr.msrb.gmra.mxu0 %v900_v29  ;;  %1298 = vmatpush.bf16.msrb.mxu2 %v4222_v28  ;;  %v4221_v29 = vld [vmem:[#allocation6 + $0x28] sm:$0xff] }
 0x2e2   : > { %1299 = vmatpush.bf16.msrb.mxu2 %v4221_v29  ;;  %v3549_v29 = vld [vmem:[%s5425_s13 + $0x90] sm:$0xf0] }
 0x2e6   : > { %1300 = vmatpush.bf16.msrb.mxu2 %v4220_v30  ;;  %v3555_v30 = vld [vmem:[%s5425_s13 + $0x88] sm:$0xf] }
 0x2ea   : > { %1301 = vmatpush.bf16.msrb.mxu2 %v4219_v31  ;;  %v4243_v31 = vld [vmem:[%s5425_s13 + $0x94] sm:$0xf0] }
 0x2ee   : > { %1302 = vmatpush.bf16.msrb.mxu2 %v4218_v32  ;;  %v3552_v32 = vor.u32 %v4240_v27, %v3549_v29 }
 0x35b   : > { %v1108_v37 = vpop.f32.mrf.mxu0 }
 0x35c   : > { %v1109_v38 = vadd.f32 %v1108_v37, %v944_v33  ;;  %v4217_v33 = vld [vmem:[#allocation6 + $0x8] sm:$0xff]  ;;  %v4216_v37 = vld [vmem:[#allocation6] sm:$0xff] }
 0x35d   : > { %1303 = vmatpush.bf16.msrb.mxu2 %v4217_v33  ;;  %v3556_v33 = vor.u32 %v4243_v31, %v3555_v30  ;;  %v1315_v31 = vld [vmem:[%s5423_s11] sm:$0x1] }
 0x35e   : > { %v1114_v40 = vpack.c.bf16 %v1109_v38, %v1109_v38 }
 0x360   : > { %v1082_v41 = vpop.f32.mrf.mxu2  ;;  %v1095_v42 = vpop.f32.mrf.mxu3  ;;  %v1153_v43 = vsel %vm1151_vm7, %v1114_v40, 0 }
 0x361   : > { %v1083_v44 = vadd.f32 %v1082_v41, %v942_v39  ;;  %v1096_v45 = vadd.f32 %v1095_v42, %v943_v6  ;;  %1162 = vmatpush.bf16.msrb.mxu3 %v1153_v43  ;;  %1304 = vmatpush.bf16.msrb.mxu2 %v4216_v37 }
 0x363   : > { %v1112_v46 = vpack.c.bf16 %v1083_v44, %v1083_v44  ;;  %v1113_v47 = vpack.c.bf16 %v1096_v45, %v1096_v45  ;;  %v1110_v48 = vpop.f32.mrf.mxu0 }
 0x364   : > { %v4254_v48 = vld [vmem:[%s5425_s13 + $0xec] sm:$0xf0] }
 0x365   : > { %1172 = vrot.lane.b32.xlu0 %v1113_v47, %s4651_s17  ;;  %1169 = vrot.lane.b32.xlu1 %v1112_v46, %s4651_s17  ;;  %v1120_v49 = vsel %vm1115_vm8, %v1113_v47, 0  ;;  %v3595_v47 = vld [vmem:[%s5425_s13 + $0xe0] sm:$0xf] }
 0x366   : > { %1129 = vmatpush.bf16.xpose.msrb.mxu1 %v1120_v49  ;;  %v4252_v49 = vld [vmem:[%s5425_s13 + $0xe4] sm:$0xf] }
 0x368   : > { %v1084_v50 = vpop.f32.mrf.mxu2  ;;  %v1097_v51 = vpop.f32.mrf.mxu3 }
 0x369   : > { %v3596_v50 = vor.u32 %v4254_v48, %v3595_v47  ;;  %v3603_v51 = vld [vmem:[%s5425_s13 + $0xe8] sm:$0xf]  ;;  %v4237_v47 = vld [vmem:[%s5425_s13 + $0x6c] sm:$0xf]  ;;  %v3541_v48 = vld [vmem:[%s5425_s13 + $0x78] sm:$0xf0] }
 0x36d   : > { %3445 = vmatmul.msk.bf16.vlgmr.msrb.gmra.mxu1 %vm1115_vm8, %v1112_v46 }
 0x3d7   : > { %v1173_v52 = vpop.permute.xlu0 %1172  ;;  %v1170_v9 = vpop.permute.xlu1 %1169 }
 0x3d8   : > { %v1178_v53 = vsel %vm1115_vm8, %v1173_v52, 0  ;;  %v4255_v52 = vld [vmem:[%s5425_s13 + $0xf4] sm:$0xf0] }
 0x3d9   : > { %1187 = vmatpush.bf16.xpose.msra.mxu3 %v1178_v53  ;;  %v3604_v54 = vor.u32 %v4255_v52, %v3603_v51  ;;  %v4232_v51 = vld [vmem:[%s5425_s13 + $0x44] sm:$0xf] }
 0x3ea   : > { %v1131_v59 = vpop.f32.mrf.mxu1 }
 0x3eb   : > { %v1132_v60 = vadd.f32 %v1131_v59, %v4857_v57  ;;  %v3608_v59 = vor.u32 %v4253_v55, %v3605_v56  ;;  %v4235_v55 = vld [vmem:[%s5425_s13 + $0x54] sm:$0xf0] }
 0x3ed   : > { %v1136_v61 = vsel %vm1135_vm10, %v1132_v60, -inf  ;;  %1590 = vmatpush.bf16.msra.mxu2 %v3608_v59 }
 0x3ee   : > { %1137 = vmax.xlane.f32.xlu2 %v1136_v61 }
 0x3f2   : > { %v1133_v62 = vpop.f32.mrf.mxu1 }
 0x461   : > { %v1138_v63 = vpop.xlane.xlu2 %1137 }
 0x462   : > { %v1139_v0 = vsub.f32 %v1132_v60, %v1138_v63 }
 0x464   : > { %v1140_v1 = vmul.f32 1.442695, %v1139_v0  ;;  %v3579_v0 = vld [vmem:[%s5425_s13 + $0xc0] sm:$0xf] }
 0x466   : > { %4446 = vpow2.f32 %v1140_v1  ;;  %v4250_v1 = vld [vmem:[%s5425_s13 + $0xcc] sm:$0xf0] }
 0x46c   : > { %v4447_v2 = vpop.eup %4446 }
 0x46d   : > { %v1142_v3 = vsel %vm1135_vm10, %v4447_v2, 0.0 }
 0x46e   : > { %1143 = vadd.xlane.f32.xlu2 %v1142_v3  ;;  %v3580_v3 = vor.u32 %v4250_v1, %v3579_v0  ;;  %v3499_v0 = vld [vmem:[%s5425_s13 + $0x20] sm:$0xf]  ;;  %v4230_v1 = vld [vmem:[%s5425_s13 + $0x2c] sm:$0xf0] }
 0x4e1   : > { %v1144_v4 = vpop.xlane.xlu2 %1143 }
 0x4e2   : > { %4448 = vrcp.f32 %v1144_v4  ;;  %v3581_v4 = vld [vmem:[%s5425_s13 + $0xd0] sm:$0xf0] }
 0x4e8   : > { %v4449_v5 = vpop.eup %4448 }
 0x4e9   : > { %v1146_v7 = vmul.f32 %v4449_v5, %v4447_v2  ;;  %v4248_v2 = vld [vmem:[%s5425_s13 + $0xc4] sm:$0xf]  ;;  %v3587_v5 = vld [vmem:[%s5425_s13 + $0xc8] sm:$0xf] }
 0x4eb   : > { %v1147_v8 = vpack.c.bf16 %v1146_v7, %v1146_v7  ;;  %v4251_v7 = vld [vmem:[%s5425_s13 + $0xd4] sm:$0xf0] }
 0x4ed   : > { %3446 = vmatmul.msk.bf16.vlgmr.msrb.gmra.mxu3 %vm1135_vm10, %v1147_v8  ;;  %v3584_v8 = vor.u32 %v4248_v2, %v3581_v4  ;;  %v4228_v2 = vld [vmem:[%s5425_s13 + $0x24] sm:$0xf]  ;;  %v3501_v4 = vld [vmem:[%s5425_s13 + $0x30] sm:$0xf0] }
 0x4ee   : > { %1551 = vmatpush.bf16.msrb.mxu3 %v3596_v50  ;;  %v3515_v50 = vld [vmem:[%s5425_s13 + $0x40] sm:$0xf] }
 0x4f2   : > { %1552 = vmatpush.bf16.msrb.mxu3 %v3580_v3  ;;  %v3500_v3 = vor.u32 %v4230_v1, %v3499_v0  ;;  %v4275_v0 = vld [vmem:[#allocation7 + $0x98] sm:$0xff] }
 0x4fd   : > { %3447 = vmatmul.msk.bf16.vlgmr.msra.gmra.mxu3 %vm1115_vm8, %v1170_v9  ;;  %v3588_v9 = vor.u32 %v4251_v7, %v3587_v5  ;;  %v3507_v5 = vld [vmem:[%s5425_s13 + $0x28] sm:$0xf]  ;;  %v4231_v7 = vld [vmem:[%s5425_s13 + $0x34] sm:$0xf0] }
 0x570   : > { %v1164_v10 = vpop.f32.mrf.mxu3 }
 0x578   : > { %v1166_v11 = vpop.f32.mrf.mxu3 }
 0x579   : > { %v3589_v11 = vld [vmem:[%s5425_s13 + $0xd8] sm:$0xf0] }
 0x580   : > { %v1189_v12 = vpop.f32.mrf.mxu3 }
 0x581   : > { %v1190_v13 = vadd.f32 %v1189_v12, %v4857_v57 }
 0x583   : > { %v1193_v14 = vsel %vm1135_vm10, %v1190_v13, -inf }
 0x584   : > { %1194 = vmax.xlane.f32.xlu2 %v1193_v14  ;;  %v4246_v14 = vld [vmem:[%s5425_s13 + $0xac] sm:$0xf0] }
 0x588   : > { %v1191_v15 = vpop.f32.mrf.mxu3 }
 0x589   : > { %v4244_v15 = vld [vmem:[%s5425_s13 + $0xa4] sm:$0xf] }
 0x5f7   : > { %v1195_v16 = vpop.xlane.xlu2 %1194 }
 0x5f8   : > { %v1196_v17 = vsub.f32 %v1190_v13, %v1195_v16  ;;  %v3563_v13 = vld [vmem:[%s5425_s13 + $0xa0] sm:$0xf] }
 0x5f9   : > { %v3564_v16 = vor.u32 %v4246_v14, %v3563_v13  ;;  %v4226_v14 = vld [vmem:[%s5425_s13 + $0xc] sm:$0xf0] }
 0x5fa   : > { %v1197_v18 = vmul.f32 1.442695, %v1196_v17  ;;  %v3565_v17 = vld [vmem:[%s5425_s13 + $0xb0] sm:$0xf0] }
 0x5fb   : > { %1553 = vmatpush.bf16.msrb.mxu3 %v3564_v16  ;;  %v3485_v16 = vld [vmem:[%s5425_s13 + $0x10] sm:$0xf0] }
 0x5fc   : > { %4450 = vpow2.f32 %v1197_v18  ;;  %v3571_v18 = vld [vmem:[%s5425_s13 + $0xa8] sm:$0xf] }
 0x602   : > { %v4451_v19 = vpop.eup %4450 }
 0x603   : > { %v1199_v20 = vsel %vm1135_vm10, %v4451_v19, 0.0 }
 0x604   : > { %1200 = vadd.xlane.f32.xlu2 %v1199_v20  ;;  %v3568_v20 = vor.u32 %v4244_v15, %v3565_v17  ;;  %v4224_v15 = vld [vmem:[%s5425_s13 + $0x4] sm:$0xf] }
 0x61c   : > { %1206 = vrot.lane.b32.xlu2 %v1114_v40, %s4651_s17  ;;  %v1311_v40 = vld [vmem:[%s5422_s10] sm:$0x1] }
 0x61d   : > { %v1312_v41 = vunpack.c.l.bf16 %v1311_v40 }
 0x61f   : > { %v1313_v42 = vperm.slane %v1312_v41, 0  ;;  %v3533_v41 = vld [vmem:[%s5425_s13 + $0x70] sm:$0xf0] }
 0x677   : > { %v1201_v21 = vpop.xlane.xlu2 %1200 }
 0x678   : > { %4452 = vrcp.f32 %v1201_v21 }
 0x67e   : > { %v4453_v22 = vpop.eup %4452 }
 0x67f   : > { %v1203_v23 = vmul.f32 %v4453_v22, %v4451_v19  ;;  %v1207_v24 = vpop.permute.xlu2 %1206  ;;  %v4247_v19 = vld [vmem:[%s5425_s13 + $0xb4] sm:$0xf0]  ;;  %v4245_v22 = vld [vmem:[%s5425_s13 + $0xac] sm:$0xf] }
 0x680   : > { %v1212_v25 = vsel %vm1151_vm7, %v1207_v24, 0  ;;  %v3572_v21 = vor.u32 %v4247_v19, %v3571_v18  ;;  %v3488_v18 = vor.u32 %v4224_v15, %v3485_v16  ;;  %v3491_v19 = vld [vmem:[%s5425_s13 + $0x8] sm:$0xf] }
 0x681   : > { %v1204_v26 = vpack.c.bf16 %v1203_v23, %v1203_v23  ;;  %1221 = vmatpush.bf16.msra.mxu1 %v1212_v25  ;;  %v3573_v23 = vld [vmem:[%s5425_s13 + $0xb8] sm:$0xf0]  ;;  %v3547_v25 = vld [vmem:[%s5425_s13 + $0x80] sm:$0xf] }
 0x682   : > { %v3576_v24 = vor.u32 %v4245_v22, %v3573_v23  ;;  %v3493_v23 = vld [vmem:[%s5425_s13 + $0x18] sm:$0xf0] }
 0x684   : > { %3448 = vmatmul.msk.bf16.vlgmr.msra.gmra.mxu1 %vm1135_vm10, %v1204_v26  ;;  %v4242_v26 = vld [vmem:[%s5425_s13 + $0x8c] sm:$0xf0] }
 0x685   : > { %1577 = vmatpush.bf16.msrb.mxu1 %v3604_v54  ;;  %v3548_v28 = vor.u32 %v4242_v26, %v3547_v25  ;;  %v3523_v54 = vld [vmem:[%s5425_s13 + $0x48] sm:$0xf] }
 0x686   : > { %v3524_v59 = vor.u32 %v4235_v55, %v3523_v54  ;;  %v1376_v54 = vld [vmem:[%s5426_s14] sm:$0xf] }
 0x687   : > { %1554 = vmatpush.bf16.msrb.mxu3 %v3548_v28  ;;  %v4268_v55 = vld [vmem:[#allocation7 + $0x60] sm:$0xff] }
 0x689   : > { %1578 = vmatpush.bf16.msrb.mxu1 %v3588_v9  ;;  %v3508_v9 = vor.u32 %v4231_v7, %v3507_v5  ;;  %v4266_v5 = vld [vmem:[#allocation7 + $0x50] sm:$0xff] }
 0x68a   : > { %v4274_v7 = vld [vmem:[#allocation7 + $0x90] sm:$0xff] }
 0x68d   : > { %1579 = vmatpush.bf16.msrb.mxu1 %v3572_v21  ;;  %v4225_v21 = vld [vmem:[%s5425_s13 + $0xc] sm:$0xf] }
 0x691   : > { %1580 = vmatpush.bf16.msrb.mxu1 %v3556_v33  ;;  %v1317_v33 = vld [vmem:[%s5424_s12] sm:$0x1] }
 0x701   : > { %v1223_v34 = vpop.f32.mrf.mxu1 }
 0x702   : > { %1228 = vrot.lane.b32.xlu0 %v1223_v34, %s4651_s17  ;;  %v4241_v34 = vld [vmem:[%s5425_s13 + $0x8c] sm:$0xf] }
 0x709   : > { %v1225_v36 = vpop.f32.mrf.mxu1 }
 0x70a   : > { %v3557_v36 = vld [vmem:[%s5425_s13 + $0x98] sm:$0xf0] }
 0x70b   : > { %v3560_v37 = vor.u32 %v4241_v34, %v3557_v36  ;;  %v1316_v34 = vunpack.c.l.bf16 %v1315_v31 }
 0x774   : > { %v1229_v38 = vpop.permute.xlu0 %1228 }
 0x775   : > { %v1231_v39 = vsel %vm1115_vm8, %v1164_v10, %v1229_v38  ;;  %v4249_v10 = vld [vmem:[%s5425_s13 + $0xcc] sm:$0xf]  ;;  %v3531_v38 = vld [vmem:[%s5425_s13 + $0x60] sm:$0xf] }
 0x776   : > { %v1232_v6 = vpack.c.bf16 %v1231_v39, %v1231_v39  ;;  %v3592_v12 = vor.u32 %v4249_v10, %v3589_v11  ;;  %v4238_v39 = vld [vmem:[%s5425_s13 + $0x6c] sm:$0xf0]  ;;  %v4229_v10 = vld [vmem:[%s5425_s13 + $0x2c] sm:$0xf]  ;;  %v3509_v11 = vld [vmem:[%s5425_s13 + $0x38] sm:$0xf0] }
 0x777   : > { %v3532_v40 = vor.u32 %v4238_v39, %v3531_v38  ;;  %v3512_v13 = vor.u32 %v4229_v10, %v3509_v11  ;;  %v1339_v39 = vperm.slane %v1316_v34, 0  ;;  %v4283_v10 = vld [vmem:[#allocation7 + $0xd8] sm:$0xff] }
 0x778   : > { %1305 = vmatmul.bf16.vlgmr.msrb.gmra.mxu2 %v1232_v6  ;;  %v4236_v6 = vld [vmem:[%s5425_s13 + $0x64] sm:$0xf] }
 0x779   : > { %1591 = vmatpush.bf16.msra.mxu2 %v3592_v12  ;;  %1555 = vmatpush.bf16.msrb.mxu3 %v3532_v40  ;;  %v3483_v12 = vld [vmem:[%s5425_s13] sm:$0xf] }
 0x77a   : > { %v3484_v17 = vor.u32 %v4226_v14, %v3483_v12  ;;  %v4273_v14 = vld [vmem:[#allocation7 + $0x88] sm:$0xff] }
 0x77d   : > { %1592 = vmatpush.bf16.msra.mxu2 %v3576_v24  ;;  %v3496_v24 = vor.u32 %v4225_v21, %v3493_v23 }
 0x781   : > { %1593 = vmatpush.bf16.msra.mxu2 %v3560_v37  ;;  %v1318_v37 = vunpack.c.l.bf16 %v1317_v33 }
 0x7fb   : > { %v1306_v43 = vpop.f32.mrf.mxu2 }
 0x7fc   : > { %v1310_v44 = vadd.f32 %v1306_v43, %v4831_v58  ;;  %v3597_v58 = vld [vmem:[%s5425_s13 + $0xf0] sm:$0xf0]  ;;  %v4239_v43 = vld [vmem:[%s5425_s13 + $0x74] sm:$0xf0] }
 0x7fd   : > { %v3600_v53 = vor.u32 %v4252_v49, %v3597_v58  ;;  %v3544_v49 = vor.u32 %v4237_v47, %v3541_v48  ;;  %v4234_v58 = vld [vmem:[%s5425_s13 + $0x4c] sm:$0xf0]  ;;  %v4279_v47 = vld [vmem:[#allocation7 + $0xb8] sm:$0xff] }
 0x7fe   : > { %v4876_v45 = vadd.f32 %v1313_v42, %v1310_v44  ;;  %v3539_v42 = vld [vmem:[%s5425_s13 + $0x68] sm:$0xf]  ;;  %v3536_v44 = vor.u32 %v4236_v6, %v3533_v41  ;;  %v3516_v52 = vor.u32 %v4234_v58, %v3515_v50  ;;  %v1341_v41 = vperm.slane %v1318_v37, 0  ;;  %v4270_v48 = vld [vmem:[#allocation7 + $0x70] sm:$0xff]  ;;  %v4263_v50 = vld [vmem:[#allocation7 + $0x38] sm:$0xff] }
 0x7ff   : > { %1564 = vmatpush.bf16.msra.mxu0 %v3600_v53  ;;  %1594 = vmatpush.bf16.msra.mxu2 %v3544_v49  ;;  %v3517_v53 = vld [vmem:[%s5425_s13 + $0x50] sm:$0xf0]  ;;  %v4287_v58 = vld [vmem:[#allocation7 + $0xf8] sm:$0xff] }
 0x800   : > { %1319 = vadd.xlane.f32.xlu1 %v4876_v45  ;;  %v3520_v56 = vor.u32 %v4232_v51, %v3517_v53  ;;  %1556 = vmatpush.bf16.msrb.mxu3 %v3516_v52  ;;  %v4278_v49 = vld [vmem:[#allocation7 + $0xb0] sm:$0xff]  ;;  %v4277_v51 = vld [vmem:[#allocation7 + $0xa8] sm:$0xff] }
 0x801   : > { %v4262_v52 = vld [vmem:[#allocation7 + $0x30] sm:$0xff] }
 0x802   : > { %v4286_v53 = vld [vmem:[#allocation7 + $0xf0] sm:$0xff] }
 0x803   : > { %v1308_v46 = vpop.f32.mrf.mxu2  ;;  %1565 = vmatpush.bf16.msra.mxu0 %v3584_v8  ;;  %v3504_v8 = vor.u32 %v4228_v2, %v3501_v4  ;;  %v4260_v2 = vld [vmem:[#allocation7 + $0x20] sm:$0xff] }
 0x804   : > { %v3540_v46 = vor.u32 %v4239_v43, %v3539_v42  ;;  %1557 = vmatpush.bf16.msrb.mxu3 %v3500_v3  ;;  %v4284_v3 = vld [vmem:[#allocation7 + $0xe0] sm:$0xff] }
 0x806   : > { %1581 = vmatpush.bf16.msrb.mxu1 %v3540_v46  ;;  %v4271_v46 = vld [vmem:[#allocation7 + $0x78] sm:$0xff] }
 0x807   : > { %1566 = vmatpush.bf16.msra.mxu0 %v3568_v20  ;;  %v4227_v20 = vld [vmem:[%s5425_s13 + $0x14] sm:$0xf0] }
 0x808   : > { %v3492_v22 = vor.u32 %v4227_v20, %v3491_v19  ;;  %1558 = vmatpush.bf16.msrb.mxu3 %v3484_v17  ;;  %v4258_v19 = vld [vmem:[#allocation7 + $0x10] sm:$0xff] }
 0x809   : > { %v4282_v20 = vld [vmem:[#allocation7 + $0xd0] sm:$0xff] }
 0x80a   : > { %1582 = vmatpush.bf16.msrb.mxu1 %v3524_v59  ;;  %v1377_v59 = vunpack.c.l.bf16 %v1376_v54 }
 0x80b   : > { %1567 = vmatpush.bf16.msra.mxu0 %v3552_v32 }
 0x80c   : > { %1947 = vmatpush.bf16.msra.mxu3 %v4263_v50  ;;  %v1380_v1 = vperm.slane %v1377_v59, 2  ;;  %v1381_v4 = vperm.slane %v1377_v59, 4  ;;  %v1379_v12 = vperm.slane %v1377_v59, 0  ;;  %v1382_v16 = vperm.slane %v1377_v59, 6 }
 0x80e   : > { %1583 = vmatpush.bf16.msrb.mxu1 %v3508_v9  ;;  %v4259_v9 = vld [vmem:[#allocation7 + $0x18] sm:$0xff]  ;;  %v1389_v11 = vperm.slane %v1381_v4, 0  ;;  %v1387_v23 = vperm.slane %v1379_v12, 0 }
 0x80f   : > { %1568 = vmatpush.bf16.msra.mxu0 %v3536_v44 }
 0x810   : > { %1948 = vmatpush.bf16.msra.mxu3 %v4262_v52 }
 0x812   : > { %1584 = vmatpush.bf16.msrb.mxu1 %v3492_v22 }
 0x813   : > { %1569 = vmatpush.bf16.msra.mxu0 %v3520_v56  ;;  %v4276_v56 = vld [vmem:[#allocation7 + $0xa0] sm:$0xff] }
 0x816   : > { %1973 = vmatpush.bf16.msra.mxu1 %v4279_v47 }
 0x817   : > { %1570 = vmatpush.bf16.msra.mxu0 %v3504_v8  ;;  %v1388_v8 = vperm.slane %v1380_v1, 0 }
 0x81a   : > { %1974 = vmatpush.bf16.msra.mxu1 %v4278_v49 }
 0x81b   : > { %1571 = vmatpush.bf16.msra.mxu0 %v3488_v18 }
 0x81e   : > { %1975 = vmatpush.bf16.msra.mxu1 %v4277_v51 }
 0x81f   : > { %1960 = vmatpush.bf16.msrb.mxu0 %v4271_v46 }
 0x822   : > { %1976 = vmatpush.bf16.msra.mxu1 %v4276_v56 }
 0x823   : > { %1961 = vmatpush.bf16.msrb.mxu0 %v4270_v48 }
 0x826   : > { %1977 = vmatpush.bf16.msra.mxu1 %v4275_v0 }
 0x82a   : > { %1978 = vmatpush.bf16.msra.mxu1 %v4274_v7 }
 0x82e   : > { %1979 = vmatpush.bf16.msra.mxu1 %v4273_v14 }
 0x873   : > { %v1320_v60 = vpop.xlane.xlu1 %1319 }
 0x874   : > { %v1321_v61 = vmul.f32 %v1320_v60, %v4821_v35  ;;  %v4233_v60 = vld [vmem:[%s5425_s13 + $0x4c] sm:$0xf] }
 0x876   : > { %v4905_v62 = vsub.f32 %v4876_v45, %v1321_v61  ;;  %v3525_v61 = vld [vmem:[%s5425_s13 + $0x58] sm:$0xf0] }
 0x878   : > { %v1323_v63 = vmul.f32 %v4905_v62, %v4905_v62 }
 0x87a   : > { %1324 = vadd.xlane.f32.xlu0 %v1323_v63  ;;  %v3528_v63 = vor.u32 %v4233_v60, %v3525_v61  ;;  %v4261_v60 = vld [vmem:[#allocation7 + $0x28] sm:$0xff] }
 0x87b   : > { %v4285_v61 = vld [vmem:[#allocation7 + $0xe8] sm:$0xff]  ;;  %1949 = vmatpush.bf16.msra.mxu3 %v4261_v60 }
 0x87c   : > { %1595 = vmatpush.bf16.msra.mxu2 %v3528_v63  ;;  %v4267_v63 = vld [vmem:[#allocation7 + $0x58] sm:$0xff] }
 0x87f   : > { %1950 = vmatpush.bf16.msra.mxu3 %v4260_v2 }
 0x880   : > { %1596 = vmatpush.bf16.msra.mxu2 %v3512_v13  ;;  %v4265_v13 = vld [vmem:[#allocation7 + $0x48] sm:$0xff] }
 0x883   : > { %1951 = vmatpush.bf16.msra.mxu3 %v4259_v9 }
 0x884   : > { %1597 = vmatpush.bf16.msra.mxu2 %v3496_v24  ;;  %v4264_v24 = vld [vmem:[#allocation7 + $0x40] sm:$0xff] }
 0x887   : > { %1952 = vmatpush.bf16.msra.mxu3 %v4258_v19 }
 0x888   : > { %1986 = vmatpush.bf16.msrb.mxu2 %v4287_v58 }
 0x88c   : > { %1987 = vmatpush.bf16.msrb.mxu2 %v4286_v53 }
 0x890   : > { %1988 = vmatpush.bf16.msrb.mxu2 %v4285_v61 }
 0x894   : > { %1989 = vmatpush.bf16.msrb.mxu2 %v4284_v3 }
 0x898   : > { %1990 = vmatpush.bf16.msrb.mxu2 %v4283_v10 }
 0x89c   : > { %1991 = vmatpush.bf16.msrb.mxu2 %v4282_v20 }
 0x8ed   : > { %v1325_v25 = vpop.xlane.xlu0 %1324 }
 0x8ee   : > { %v1326_v26 = vmul.f32 %v1325_v25, %v4821_v35  ;;  %v4272_v25 = vld [vmem:[#allocation7 + $0x80] sm:$0xff] }
 0x8ef   : > { %1980 = vmatpush.bf16.msra.mxu1 %v4272_v25 }
 0x8f0   : > { %v1327_v27 = vadd.f32 1e-05, %v1326_v26 }
 0x8f2   : > { %4454 = vrsqrt.f32 %v1327_v27  ;;  %vm1334_vm12 = vweird.f32 %v1327_v27 }
 0x8f8   : > { %v4455_v28 = vpop.eup %4454 }
 0x8f9   : > { %v1329_v29 = vmul.f32 %v4455_v28, %v1327_v27  ;;  %vm1335_vm11 = vweird.f32 %v4455_v28  ;;  %v1390_v27 = vperm.slane %v1382_v16, 0 }
 0x8fa   : > { %vm1336_vm13 = vmor %vm1334_vm12, %vm1335_vm11 }
 0x8fb   : > { %v1330_v30 = vmul.f32 %v4455_v28, %v1329_v29  ;;  %v4257_v29 = vld [vmem:[#allocation7 + $0x8] sm:$0xff] }
 0x8fc   : > { %1953 = vmatpush.bf16.msra.mxu3 %v4257_v29 }
 0x8fd   : > { %v1331_v32 = vmul.f32 0.5, %v1330_v30  ;;  %v4281_v30 = vld [vmem:[#allocation7 + $0xc8] sm:$0xff] }
 0x8fe   : > { %1992 = vmatpush.bf16.msrb.mxu2 %v4281_v30 }
 0x8ff   : > { %v1332_v36 = vsub.f32 1.5, %v1331_v32 }
 0x901   : > { %v1333_v38 = vmul.f32 %v4455_v28, %v1332_v36 }
 0x903   : > { %v1337_v6 = vsel %vm1336_vm13, %v4455_v28, %v1333_v38 }
 0x904   : > { %v1338_v40 = vmul.f32 %v1337_v6, %v4905_v62  ;;  %v4269_v62 = vld [vmem:[#allocation7 + $0x68] sm:$0xff]  ;;  %v4256_v6 = vld [vmem:[#allocation7] sm:$0xff] }
 0x905   : > { %1962 = vmatpush.bf16.msrb.mxu0 %v4269_v62  ;;  %1954 = vmatpush.bf16.msra.mxu3 %v4256_v6 }
 0x906   : > { %v1340_v42 = vmul.f32 %v1339_v39, %v1338_v40  ;;  %v4280_v40 = vld [vmem:[#allocation7 + $0xc0] sm:$0xff] }
 0x907   : > { %1993 = vmatpush.bf16.msrb.mxu2 %v4280_v40 }
 0x908   : > { %v1342_v43 = vadd.f32 %v1341_v41, %v1340_v42 }
 0x909   : > { %1963 = vmatpush.bf16.msrb.mxu0 %v4268_v55 }
 0x90a   : > { %v1343_v44 = vpack.c.bf16 %v1342_v43, %v1342_v43 }
 0x90c   : > { %1559 = vmatmul.bf16.vlgmr.msrb.gmra.mxu3 %v1343_v44  ;;  %1572 = vmatmul.bf16.vlgmr.msra.gmra.mxu0 %v1343_v44 }
 0x90d   : > { %1585 = vmatmul.bf16.vlgmr.msrb.gmra.mxu1 %v1343_v44  ;;  %1598 = vmatmul.bf16.vlgmr.msra.gmra.mxu2 %v1343_v44 }
 0x90e   : > { %1964 = vmatpush.bf16.msrb.mxu0 %v4267_v63 }
 0x912   : > { %1965 = vmatpush.bf16.msrb.mxu0 %v4266_v5 }
 0x916   : > { %1966 = vmatpush.bf16.msrb.mxu0 %v4265_v13 }
 0x91a   : > { %1967 = vmatpush.bf16.msrb.mxu0 %v4264_v24 }
 0x989   : > { %v1573_v15 = vpop.f32.mrf.mxu0 }
 0x98a   : > { %v5088_v17 = vadd.f32 %v1573_v15, %v1388_v8  ;;  %v1586_v18 = vpop.f32.mrf.mxu1 }
 0x98b   : > { %v5090_v21 = vadd.f32 %v1586_v18, %v1389_v11 }
 0x98c   : > { %v3610_v22 = vmul.f32 -1.702, %v5088_v17 }
 0x98d   : > { %v3611_v26 = vmul.f32 -1.702, %v5090_v21 }
 0x98e   : > { %v1613_v28 = vmul.f32 1.442695, %v3610_v22 }
 0x98f   : > { %v1615_v31 = vmul.f32 1.442695, %v3611_v26  ;;  %v1560_v32 = vpop.f32.mrf.mxu3 }
 0x990   : > { %4456 = vpow2.f32 %v1613_v28  ;;  %v5094_v33 = vadd.f32 %v1560_v32, %v1387_v23  ;;  %v1599_v34 = vpop.f32.mrf.mxu2 }
 0x991   : > { %4458 = vpow2.f32 %v1615_v31  ;;  %v5096_v36 = vadd.f32 %v1599_v34, %v1390_v27  ;;  %v1575_v37 = vpop.f32.mrf.mxu0 }
 0x992   : > { %v3609_v38 = vmul.f32 -1.702, %v5094_v33  ;;  %v1588_v39 = vpop.f32.mrf.mxu1 }
 0x993   : > { %v3612_v41 = vmul.f32 -1.702, %v5096_v36 }
 0x994   : > { %v1611_v42 = vmul.f32 1.442695, %v3609_v38 }
 0x995   : > { %v1617_v43 = vmul.f32 1.442695, %v3612_v41 }
 0x996   : > { %v4457_v44 = vpop.eup %4456  ;;  %4460 = vpow2.f32 %v1611_v42 }
 0x997   : > { %v4459_v46 = vpop.eup %4458  ;;  %v1620_v47 = vadd.f32 1.0, %v4457_v44  ;;  %4462 = vpow2.f32 %v1617_v43  ;;  %v1562_v48 = vpop.f32.mrf.mxu3 }
 0x998   : > { %v1621_v49 = vadd.f32 1.0, %v4459_v46  ;;  %v1601_v50 = vpop.f32.mrf.mxu2  ;;  %v2000_v48 = vld [vmem:[%s5428_s16] sm:$0x1] }
 0x999   : > { %4464 = vrcp.f32 %v1620_v47  ;;  %v1647_v60 = vand.u32 2147483647, %v1620_v47  ;;  %v1649_v61 = vand.u32 2147483648, %v1620_v47  ;;  %vm1643_vm15 = vweird.f32 %v1620_v47 }
 0x99a   : > { %4466 = vrcp.f32 %v1621_v49  ;;  %v1662_v0 = vand.u32 2147483647, %v1621_v49  ;;  %v1664_v1 = vand.u32 2147483648, %v1621_v49  ;;  %vm1658_vm0 = vweird.f32 %v1621_v49 }
 0x99b   : > { %vm1648_vm2 = vcmp.eq.f32.partialorder %v1647_v60, 8.507059e+37  ;;  %v1650_v8 = vor.u32 1.1754944e-38, %v1649_v61  ;;  %v4309_v60 = vld [vmem:[#allocation4 + $0x16c] sm:$0xf] }
 0x99c   : > { %v4461_v58 = vpop.eup %4460  ;;  %vm1663_vm4 = vcmp.eq.f32.partialorder %v1662_v0, 8.507059e+37  ;;  %v1665_v11 = vor.u32 1.1754944e-38, %v1664_v1  ;;  %v3838_v0 = vld [vmem:[#allocation4 + $0x170] sm:$0xf]  ;;  %v4311_v1 = vld [vmem:[#allocation4 + $0x178] sm:$0xf0] }
 0x99d   : > { %v4463_v62 = vpop.eup %4462  ;;  %v1619_v51 = vadd.f32 1.0, %v4461_v58 }
 0x99e   : > { %v5100_v52 = vadd.f32 1.0, %v4463_v62  ;;  %v2001_v62 = vunpack.c.l.bf16 %v2000_v48  ;;  %v4295_v48 = vld [vmem:[#allocation4 + $0xf8] sm:$0xf0] }
 0x99f   : > { %v4465_v53 = vpop.eup %4464  ;;  %4468 = vrcp.f32 %v1619_v51  ;;  %v1632_v15 = vand.u32 2147483647, %v1619_v51  ;;  %v1634_v16 = vand.u32 2147483648, %v1619_v51  ;;  %vm1628_vm11 = vweird.f32 %v1619_v51 }
 0x9a0   : > { %v4467_v54 = vpop.eup %4466  ;;  %v1639_v55 = vmul.f32 %v4465_v53, %v1620_v47  ;;  %4470 = vrcp.f32 %v5100_v52  ;;  %vm1644_vm14 = vweird.f32 %v4465_v53  ;;  %v1679_v22 = vand.u32 2147483648, %v5100_v52 }
 0x9a1   : > { %v1654_v56 = vmul.f32 %v4467_v54, %v1621_v49  ;;  %vm1659_vm1 = vweird.f32 %v4467_v54  ;;  %vm1645_vm3 = vmor %vm1643_vm15, %vm1644_vm14  ;;  %v1677_v28 = vand.u32 2147483647, %v5100_v52  ;;  %v1635_v32 = vor.u32 1.1754944e-38, %v1634_v16 }
 0x9a2   : > { %v1640_v59 = vsub.f32 1.0, %v1639_v55  ;;  %vm1660_vm5 = vmor %vm1658_vm0, %vm1659_vm1  ;;  %vm1673_vm13 = vweird.f32 %v5100_v52  ;;  %vm1633_vm14 = vcmp.eq.f32.partialorder %v1632_v15, 8.507059e+37 }
 0x9a3   : > { %v1655_v63 = vsub.f32 1.0, %v1654_v56  ;;  %vm1678_vm0 = vcmp.eq.f32.partialorder %v1677_v28, 8.507059e+37  ;;  %v3830_v56 = vld [vmem:[#allocation4 + $0x168] sm:$0xf]  ;;  %v3794_v28 = vld [vmem:[#allocation4 + $0x120] sm:$0xf] }
 0x9a4   : > { %v1641_v2 = vmul.f32 %v4465_v53, %v1640_v59  ;;  %v4310_v59 = vld [vmem:[#allocation4 + $0x170] sm:$0xf0] }
 0x9a5   : > { %v4469_v3 = vpop.eup %4468  ;;  %v1656_v4 = vmul.f32 %v4467_v54, %v1655_v63  ;;  %v3831_v61 = vor.u32 %v4310_v59, %v3830_v56  ;;  %v3832_v63 = vld [vmem:[#allocation4 + $0x174] sm:$0xf0]  ;;  %v3760_v59 = vld [vmem:[#allocation4 + $0xe4] sm:$0xf0] }
 0x9a6   : > { %v4471_v5 = vpop.eup %4470  ;;  %v1642_v7 = vadd.f32 %v4465_v53, %v1641_v2  ;;  %v1624_v9 = vmul.f32 %v4469_v3, %v1619_v51  ;;  %vm1629_vm6 = vweird.f32 %v4469_v3  ;;  %v3835_v2 = vor.u32 %v4309_v60, %v3832_v63  ;;  %v3766_v60 = vld [vmem:[#allocation4 + $0xe0] sm:$0xf] }
 0x9a7   : > { %v1657_v10 = vadd.f32 %v4467_v54, %v1656_v4  ;;  %v1669_v12 = vmul.f32 %v4471_v5, %v5100_v52  ;;  %vm1674_vm9 = vweird.f32 %v4471_v5  ;;  %vm1630_vm12 = vmor %vm1628_vm11, %vm1629_vm6  ;;  %v2002_v52 = vperm.slane %v2001_v62, 0  ;;  %2209 = vmatpush.bf16.msrb.mxu3 %v3831_v61  ;;  %v3778_v62 = vld [vmem:[#allocation4 + $0xf8] sm:$0xf]  ;;  %v4293_v61 = vld [vmem:[#allocation4 + $0xe8] sm:$0xf0] }
 0x9a8   : > { %v1646_v13 = vsel %vm1645_vm3, %v4465_v53, %v1642_v7  ;;  %v1625_v14 = vsub.f32 1.0, %v1624_v9  ;;  %vm1675_vm15 = vmor %vm1673_vm13, %vm1674_vm9  ;;  %2222 = vmatpush.bf16.msra.mxu0 %v3835_v2  ;;  %v4307_v9 = vld [vmem:[#allocation4 + $0x158] sm:$0xf0]  ;;  %v4289_v2 = vld [vmem:[#allocation4 + $0xc8] sm:$0xf0] }
 0x9a9   : > { %v1651_v18 = vsel %vm1648_vm2, %v1650_v8, %v1646_v13  ;;  %v1661_v19 = vsel %vm1660_vm5, %v4467_v54, %v1657_v10  ;;  %v1670_v20 = vsub.f32 1.0, %v1669_v12  ;;  %v3818_v8 = vld [vmem:[#allocation4 + $0x150] sm:$0xf]  ;;  %v4306_v10 = vld [vmem:[#allocation4 + $0x154] sm:$0xf] }
 0x9aa   : > { %v1684_v23 = vmul.f32 %v1651_v18, %v5088_v17  ;;  %v1666_v24 = vsel %vm1663_vm4, %v1665_v11, %v1661_v19  ;;  %v1626_v25 = vmul.f32 %v4469_v3, %v1625_v14  ;;  %v1680_v17 = vor.u32 1.1754944e-38, %v1679_v22  ;;  %v3820_v12 = vld [vmem:[#allocation4 + $0x15c] sm:$0xf0]  ;;  %v3826_v13 = vld [vmem:[#allocation4 + $0x158] sm:$0xf] }
 0x9ab   : > { %v1685_v26 = vmul.f32 %v1666_v24, %v5090_v21  ;;  %v1671_v27 = vmul.f32 %v4471_v5, %v1670_v20  ;;  %v3819_v11 = vor.u32 %v4307_v9, %v3818_v8  ;;  %v4308_v14 = vld [vmem:[#allocation4 + $0x160] sm:$0xf0]  ;;  %v3823_v15 = vor.u32 %v4306_v10, %v3820_v12  ;;  %v3806_v18 = vld [vmem:[#allocation4 + $0x138] sm:$0xf]  ;;  %v4303_v20 = vld [vmem:[#allocation4 + $0x13c] sm:$0xf] }
 0x9ac   : > { %v1688_v29 = vpack.c.bf16 %v1684_v23, %v1684_v23  ;;  %v1627_v30 = vadd.f32 %v4469_v3, %v1626_v25  ;;  %v3827_v16 = vor.u32 %v4308_v14, %v3826_v13  ;;  %v4304_v19 = vld [vmem:[#allocation4 + $0x140] sm:$0xf0]  ;;  %v3808_v23 = vld [vmem:[#allocation4 + $0x144] sm:$0xf0]  ;;  %v3814_v24 = vld [vmem:[#allocation4 + $0x140] sm:$0xf] }
 0x9ad   : > { %v1689_v31 = vpack.c.bf16 %v1685_v26, %v1685_v26  ;;  %v1672_v34 = vadd.f32 %v4471_v5, %v1671_v27  ;;  %2210 = vmatpush.bf16.msrb.mxu3 %v3819_v11  ;;  %2223 = vmatpush.bf16.msra.mxu0 %v3823_v15  ;;  %v3807_v22 = vor.u32 %v4304_v19, %v3806_v18  ;;  %v4305_v25 = vld [vmem:[#allocation4 + $0x148] sm:$0xf0]  ;;  %v3741_v18 = vld [vmem:[%s5417_s5 + $0x1] sm:$0x1] }
 0x9ae   : > { %v1631_v37 = vsel %vm1630_vm12, %v4469_v3, %v1627_v30  ;;  %1968 = vmatmul.bf16.vlgmr.msrb.gmra.mxu0 %v1688_v29  ;;  %v3839_v3 = vor.u32 %v4311_v1, %v3838_v0  ;;  %v3811_v26 = vor.u32 %v4303_v20, %v3808_v23  ;;  %v3815_v27 = vor.u32 %v4305_v25, %v3814_v24  ;;  %v4301_v29 = vld [vmem:[#allocation4 + $0x128] sm:$0xf0]  ;;  %v4300_v30 = vld [vmem:[#allocation4 + $0x124] sm:$0xf]  ;;  %v3746_v1 = vld [vmem:[#allocation4 + $0xc0] sm:$0xf] }
 0x9af   : > { %v1636_v38 = vsel %vm1633_vm14, %v1635_v32, %v1631_v37  ;;  %v1676_v21 = vsel %vm1675_vm15, %v4471_v5, %v1672_v34  ;;  %1981 = vmatmul.bf16.vlgmr.msra.gmra.mxu1 %v1689_v31  ;;  %v3795_v31 = vor.u32 %v4301_v29, %v3794_v28  ;;  %v3796_v32 = vld [vmem:[#allocation4 + $0x12c] sm:$0xf0]  ;;  %v3802_v34 = vld [vmem:[#allocation4 + $0x128] sm:$0xf]  ;;  %v4302_v37 = vld [vmem:[#allocation4 + $0x130] sm:$0xf0]  ;;  %v3767_v0 = vor.u32 %v4293_v61, %v3766_v60 }
 0x9b0   : > { %v1683_v39 = vmul.f32 %v1636_v38, %v5094_v33  ;;  %v1681_v6 = vsel %vm1678_vm0, %v1680_v17, %v1676_v21  ;;  %2235 = vmatpush.bf16.msrb.mxu1 %v3839_v3  ;;  %v3799_v17 = vor.u32 %v4300_v30, %v3796_v32  ;;  %v3803_v38 = vor.u32 %v4302_v37, %v3802_v34  ;;  %v3782_v21 = vld [vmem:[#allocation4 + $0x108] sm:$0xf]  ;;  %v4288_v3 = vld [vmem:[#allocation4 + $0xc4] sm:$0xf]  ;;  %v3742_v20 = vld [vmem:[%s5418_s6 + $0x1] sm:$0x1] }
 0x9b1   : > { %v1686_v40 = vmul.f32 %v1681_v6, %v5096_v36  ;;  %2211 = vmatpush.bf16.msrb.mxu3 %v3807_v22  ;;  %2224 = vmatpush.bf16.msra.mxu0 %v3811_v26  ;;  %v4297_v6 = vld [vmem:[#allocation4 + $0x10c] sm:$0xf]  ;;  %v3747_v8 = vor.u32 %v4289_v2, %v3746_v1  ;;  %v2006_v22 = vunpack.c.l.bf16 %v3741_v18  ;;  %v2009_v24 = vunpack.c.l.bf16 %v3742_v20  ;;  %v3743_v34 = vld [vmem:[%s5420_s8 + $0x3] sm:$0x7] }
 0x9b2   : > { %v1687_v41 = vpack.c.bf16 %v1683_v39, %v1683_v39  ;;  %v4298_v39 = vld [vmem:[#allocation4 + $0x110] sm:$0xf0]  ;;  %v2070_v37 = vunpack.c.l.bf16 %v3743_v34 }
 0x9b3   : > { %v1690_v42 = vpack.c.bf16 %v1686_v40, %v1686_v40  ;;  %v3783_v40 = vor.u32 %v4298_v39, %v3782_v21  ;;  %v2030_v26 = vperm.slane %v2006_v22, 0  ;;  %v2032_v29 = vperm.slane %v2009_v24, 0  ;;  %v4319_v24 = vld [vmem:[#allocation6 + $0x78] sm:$0xff] }
 0x9b4   : > { %1955 = vmatmul.bf16.vlgmr.msra.gmra.mxu3 %v1687_v41  ;;  %2236 = vmatpush.bf16.msrb.mxu1 %v3827_v16  ;;  %v3784_v41 = vld [vmem:[#allocation4 + $0x114] sm:$0xf0] }
 0x9b5   : > { %1994 = vmatmul.bf16.vlgmr.msrb.gmra.mxu2 %v1690_v42  ;;  %2212 = vmatpush.bf16.msrb.mxu3 %v3795_v31  ;;  %v3790_v42 = vld [vmem:[#allocation4 + $0x110] sm:$0xf] }
 0x9b6   : > { %2225 = vmatpush.bf16.msra.mxu0 %v3799_v17  ;;  %v2073_v17 = vperm.slane %v2070_v37, 2 }
 0x9b8   : > { %2237 = vmatpush.bf16.msrb.mxu1 %v3815_v27  ;;  %v2079_v21 = vperm.slane %v2073_v17, 0  ;;  %v4312_v17 = vld [vmem:[#allocation6 + $0x40] sm:$0xff] }
 0x9b9   : > { %2213 = vmatpush.bf16.msrb.mxu3 %v3783_v40 }
 0x9bc   : > { %2238 = vmatpush.bf16.msrb.mxu1 %v3803_v38  ;;  %v2074_v38 = vperm.slane %v2070_v37, 4 }
 0x9be   : > { %v2080_v39 = vperm.slane %v2074_v38, 0 }
 0xa2b   : > { %v1969_v43 = vpop.f32.mrf.mxu0 }
 0xa2c   : > { %v1982_v44 = vpop.f32.mrf.mxu1 }
 0xa33   : > { %v1971_v46 = vpop.f32.mrf.mxu0 }
 0xa34   : > { %v1984_v47 = vpop.f32.mrf.mxu1 }
 0xa35   : > { %v3770_v47 = vld [vmem:[#allocation4 + $0xf0] sm:$0xf] }
 0xa37   : > { %v1956_v49 = vpop.f32.mrf.mxu3 }
 0xa38   : > { %v1970_v50 = vadd.f32 %v1969_v43, %v1956_v49  ;;  %v1995_v58 = vpop.f32.mrf.mxu2  ;;  %v4299_v43 = vld [vmem:[#allocation4 + $0x118] sm:$0xf0]  ;;  %v4294_v49 = vld [vmem:[#allocation4 + $0xf4] sm:$0xf] }
 0xa39   : > { %v3791_v46 = vor.u32 %v4299_v43, %v3790_v42 }
 0xa3a   : > { %v1983_v33 = vadd.f32 %v1982_v44, %v1970_v50  ;;  %v3787_v44 = vor.u32 %v4297_v6, %v3784_v41  ;;  %v3771_v50 = vor.u32 %v4295_v48, %v3770_v47  ;;  %v2072_v6 = vperm.slane %v2070_v37, 0 }
 0xa3b   : > { %2239 = vmatpush.bf16.msrb.mxu1 %v3791_v46 }
 0xa3c   : > { %v1996_v51 = vadd.f32 %v1995_v58, %v1983_v33  ;;  %2226 = vmatpush.bf16.msra.mxu0 %v3787_v44  ;;  %v3772_v58 = vld [vmem:[#allocation4 + $0xfc] sm:$0xf0]  ;;  %v4296_v33 = vld [vmem:[#allocation4 + $0x100] sm:$0xf0]  ;;  %2214 = vmatpush.bf16.msrb.mxu3 %v3771_v50  ;;  %v2078_v44 = vperm.slane %v2072_v6, 0 }
 0xa3d   : > { %v3876_v6 = vld [vmem:[%s5422_s10 + $0x1] sm:$0x1] }
 0xa3e   : > { %v1999_v36 = vadd.f32 %v1996_v51, %v4876_v45  ;;  %v3775_v51 = vor.u32 %v4294_v49, %v3772_v58 }
 0xa3f   : > { %v1958_v53 = vpop.f32.mrf.mxu3 }
 0xa40   : > { %v1997_v54 = vpop.f32.mrf.mxu2  ;;  %v5115_v55 = vadd.f32 %v2002_v52, %v1999_v36  ;;  %v3779_v52 = vor.u32 %v4296_v33, %v3778_v62  ;;  %v3758_v36 = vld [vmem:[#allocation4 + $0xd8] sm:$0xf]  ;;  %v4292_v53 = vld [vmem:[#allocation4 + $0xe0] sm:$0xf0]  ;;  %2227 = vmatpush.bf16.msra.mxu0 %v3775_v51 }
 0xa41   : > { %v4291_v54 = vld [vmem:[#allocation4 + $0xdc] sm:$0xf]  ;;  %v3759_v56 = vor.u32 %v4292_v53, %v3758_v36 }
 0xa42   : > { %2010 = vadd.xlane.f32.xlu2 %v5115_v55  ;;  %2240 = vmatpush.bf16.msrb.mxu1 %v3779_v52  ;;  %v3763_v63 = vor.u32 %v4291_v54, %v3760_v59 }
 0xa43   : > { %2215 = vmatpush.bf16.msrb.mxu3 %v3759_v56 }
 0xa44   : > { %2228 = vmatpush.bf16.msra.mxu0 %v3763_v63 }
 0xa46   : > { %2241 = vmatpush.bf16.msrb.mxu1 %v3767_v0 }
 0xa47   : > { %2216 = vmatpush.bf16.msrb.mxu3 %v3747_v8 }
 0xab5   : > { %v2011_v4 = vpop.xlane.xlu2 %2010 }
 0xab6   : > { %v2012_v45 = vmul.f32 %v2011_v4, %v4821_v35  ;;  %v3748_v4 = vld [vmem:[#allocation4 + $0xcc] sm:$0xf0] }
 0xab7   : > { %v3751_v9 = vor.u32 %v4288_v3, %v3748_v4 }
 0xab8   : > { %v5120_v5 = vsub.f32 %v5115_v55, %v2012_v45  ;;  %v3754_v45 = vld [vmem:[#allocation4 + $0xc8] sm:$0xf] }
 0xab9   : > { %2229 = vmatpush.bf16.msra.mxu0 %v3751_v9 }
 0xaba   : > { %v2014_v7 = vmul.f32 %v5120_v5, %v5120_v5 }
 0xabc   : > { %2015 = vadd.xlane.f32.xlu1 %v2014_v7  ;;  %v4290_v7 = vld [vmem:[#allocation4 + $0xd0] sm:$0xf0] }
 0xabd   : > { %v3755_v10 = vor.u32 %v4290_v7, %v3754_v45 }
 0xabf   : > { %2242 = vmatpush.bf16.msrb.mxu1 %v3755_v10 }
 0xb2f   : > { %v2016_v11 = vpop.xlane.xlu1 %2015 }
 0xb30   : > { %v2017_v12 = vmul.f32 %v2016_v11, %v4821_v35 }
 0xb32   : > { %v2018_v13 = vadd.f32 1e-05, %v2017_v12 }
 0xb34   : > { %4472 = vrsqrt.f32 %v2018_v13  ;;  %vm2025_vm2 = vweird.f32 %v2018_v13 }
 0xb3a   : > { %v4473_v14 = vpop.eup %4472 }
 0xb3b   : > { %v2020_v15 = vmul.f32 %v4473_v14, %v2018_v13  ;;  %vm2026_vm1 = vweird.f32 %v4473_v14 }
 0xb3c   : > { %vm2027_vm3 = vmor %vm2025_vm2, %vm2026_vm1 }
 0xb3d   : > { %v2021_v16 = vmul.f32 %v4473_v14, %v2020_v15 }
 0xb3f   : > { %v2022_v19 = vmul.f32 0.5, %v2021_v16 }
 0xb41   : > { %v2023_v23 = vsub.f32 1.5, %v2022_v19 }
 0xb43   : > { %v2024_v25 = vmul.f32 %v4473_v14, %v2023_v23 }
 0xb45   : > { %v2028_v27 = vsel %vm2027_vm3, %v4473_v14, %v2024_v25  ;;  %v4318_v25 = vld [vmem:[#allocation6 + $0x70] sm:$0xff] }
 0xb46   : > { %v2029_v28 = vmul.f32 %v2028_v27, %v5120_v5 }
 0xb48   : > { %v2031_v30 = vmul.f32 %v2030_v26, %v2029_v28  ;;  %v4317_v26 = vld [vmem:[#allocation6 + $0x68] sm:$0xff]  ;;  %v4316_v28 = vld [vmem:[#allocation6 + $0x60] sm:$0xff] }
 0xb4a   : > { %v2033_v31 = vadd.f32 %v2032_v29, %v2031_v30  ;;  %v4315_v29 = vld [vmem:[#allocation6 + $0x58] sm:$0xff] }
 0xb4c   : > { %v2034_v32 = vpack.c.bf16 %v2033_v31, %v2033_v31  ;;  %v4314_v31 = vld [vmem:[#allocation6 + $0x50] sm:$0xff] }
 0xb4e   : > { %2217 = vmatmul.bf16.vlgmr.msrb.gmra.mxu3 %v2034_v32  ;;  %2230 = vmatmul.bf16.vlgmr.msra.gmra.mxu0 %v2034_v32 }
 0xb4f   : > { %2243 = vmatmul.bf16.vlgmr.msrb.gmra.mxu1 %v2034_v32  ;;  %v4313_v32 = vld [vmem:[#allocation6 + $0x48] sm:$0xff] }
 0xbcb   : > { %v2231_v40 = vpop.f32.mrf.mxu0 }
 0xbcc   : > { %v2232_v41 = vadd.f32 %v2231_v40, %v2079_v21  ;;  %v2244_v5 = vpop.f32.mrf.mxu1  ;;  %v2447_v40 = vunpack.c.l.bf16 %v3876_v6  ;;  %v3964_v6 = vld [vmem:[%s5425_s13 + $0x170] sm:$0xf0] }
 0xbcd   : > { %v2245_v42 = vadd.f32 %v2244_v5, %v2080_v39 }
 0xbce   : > { %v2249_v43 = vpack.c.bf16 %v2232_v41, %v2232_v41  ;;  %v2448_v41 = vperm.slane %v2447_v40, 0  ;;  %v3970_v40 = vld [vmem:[%s5425_s13 + $0x168] sm:$0xf] }
 0xbcf   : > { %v2250_v46 = vpack.c.bf16 %v2245_v42, %v2245_v42 }
 0xbd0   : > { %v2255_v47 = vsel %vm1115_vm8, %v2249_v43, 0  ;;  %2305 = vrot.lane.b32.xlu0 %v2249_v43, %s4651_s17 }
 0xbd1   : > { %v2286_v48 = vsel %vm1151_vm7, %v2250_v46, 0  ;;  %v2218_v49 = vpop.f32.mrf.mxu3  ;;  %2264 = vmatpush.bf16.xpose.msra.mxu2 %v2255_v47  ;;  %v4350_v47 = vld [vmem:[%s5425_s13 + $0x1ec] sm:$0xf0] }
 0xbd2   : > { %v2219_v50 = vadd.f32 %v2218_v49, %v2078_v44  ;;  %2295 = vmatpush.bf16.msra.mxu3 %v2286_v48  ;;  %v4348_v48 = vld [vmem:[%s5425_s13 + $0x1e4] sm:$0xf] }
 0xbd3   : > { %v2233_v58 = vpop.f32.mrf.mxu0 }
 0xbd4   : > { %v2248_v62 = vpack.c.bf16 %v2219_v50, %v2219_v50  ;;  %v2246_v33 = vpop.f32.mrf.mxu1  ;;  %v4034_v50 = vld [vmem:[%s5425_s13 + $0x1e8] sm:$0xf]  ;;  %v4351_v58 = vld [vmem:[%s5425_s13 + $0x1f4] sm:$0xf0] }
 0xbd5   : > { %v4035_v33 = vor.u32 %v4351_v58, %v4034_v50  ;;  %v3948_v58 = vld [vmem:[%s5425_s13 + $0x150] sm:$0xf0] }
 0xbd6   : > { %2302 = vrot.lane.b32.xlu1 %v2248_v62, %s4651_s17 }
 0xbd8   : > { %3840 = vmatmul.msk.bf16.vlgmr.msra.gmra.mxu2 %vm1115_vm8, %v2248_v62 }
 0xbd9   : > { %v2220_v51 = vpop.f32.mrf.mxu3  ;;  %2431 = vmatpush.bf16.msrb.mxu2 %v4319_v24  ;;  %v4338_v24 = vld [vmem:[%s5425_s13 + $0x18c] sm:$0xf0] }
 0xbda   : > { %v4349_v51 = vld [vmem:[%s5425_s13 + $0x1ec] sm:$0xf] }
 0xbdd   : > { %2432 = vmatpush.bf16.msrb.mxu2 %v4318_v25  ;;  %v4336_v25 = vld [vmem:[%s5425_s13 + $0x184] sm:$0xf] }
 0xbe1   : > { %2433 = vmatpush.bf16.msrb.mxu2 %v4317_v26 }
 0xbe5   : > { %2434 = vmatpush.bf16.msrb.mxu2 %v4316_v28  ;;  %v3986_v28 = vld [vmem:[%s5425_s13 + $0x188] sm:$0xf] }
 0xbe9   : > { %2435 = vmatpush.bf16.msrb.mxu2 %v4315_v29  ;;  %v4339_v29 = vld [vmem:[%s5425_s13 + $0x194] sm:$0xf0] }
 0xbed   : > { %2436 = vmatpush.bf16.msrb.mxu2 %v4314_v31  ;;  %v3987_v31 = vor.u32 %v4339_v29, %v3986_v28  ;;  %v3877_v28 = vld [vmem:[%s5423_s11 + $0x1] sm:$0x1] }
 0xbf1   : > { %2437 = vmatpush.bf16.msrb.mxu2 %v4313_v32  ;;  %v4337_v32 = vld [vmem:[%s5425_s13 + $0x18c] sm:$0xf] }
 0xbf5   : > { %2438 = vmatpush.bf16.msrb.mxu2 %v4312_v17  ;;  %v3962_v17 = vld [vmem:[%s5425_s13 + $0x160] sm:$0xf] }
 0xc42   : > { %v2306_v52 = vpop.permute.xlu0 %2305 }
 0xc43   : > { %v2311_v36 = vsel %vm1115_vm8, %v2306_v52, 0  ;;  %v4036_v52 = vld [vmem:[%s5425_s13 + $0x1f8] sm:$0xf0] }
 0xc44   : > { %2320 = vmatpush.bf16.xpose.msrb.mxu0 %v2311_v36  ;;  %v4039_v36 = vor.u32 %v4349_v51, %v4036_v52 }
 0xc46   : > { %2729 = vmatpush.bf16.msra.mxu2 %v4039_v36  ;;  %v4329_v36 = vld [vmem:[%s5425_s13 + $0x14c] sm:$0xf] }
 0xc48   : > { %v2303_v53 = vpop.permute.xlu1 %2302 }
 0xc4b   : > { %3842 = vmatmul.msk.bf16.vlgmr.msrb.gmra.mxu0 %vm1115_vm8, %v2303_v53 }
 0xc5b   : > { %v2266_v54 = vpop.f32.mrf.mxu2 }
 0xc5c   : > { %v2267_v63 = vadd.f32 %v2266_v54, %v4857_v57 }
 0xc5e   : > { %v2270_v1 = vsel %vm1135_vm10, %v2267_v63, -inf }
 0xc63   : > { %v2268_v56 = vpop.f32.mrf.mxu2 }
 0xcc8   : > { %v2322_v59 = vpop.f32.mrf.mxu0 }
 0xcc9   : > { %v2323_v60 = vadd.f32 %v2322_v59, %v4857_v57 }
 0xccb   : > { %v2326_v61 = vsel %vm1135_vm10, %v2323_v60, -inf }
 0xccc   : > { %2327 = vmax.xlane.f32.xlu2 %v2326_v61  ;;  %v4346_v61 = vld [vmem:[%s5425_s13 + $0x1cc] sm:$0xf0] }
 0xcd0   : > { %v2324_v0 = vpop.f32.mrf.mxu0 }
 0xcd4   : > { %2271 = vmax.xlane.f32.xlu2 %v2270_v1  ;;  %v4012_v1 = vld [vmem:[%s5425_s13 + $0x1d0] sm:$0xf0] }
 0xcec   : > { %2339 = vrot.lane.b32.xlu2 %v2250_v46, %s4651_s17  ;;  %v4026_v46 = vld [vmem:[%s5425_s13 + $0x1e0] sm:$0xf] }
 0xced   : > { %v4027_v49 = vor.u32 %v4350_v47, %v4026_v46  ;;  %v3972_v46 = vld [vmem:[%s5425_s13 + $0x178] sm:$0xf0] }
 0xcef   : > { %2690 = vmatpush.bf16.msrb.mxu3 %v4027_v49  ;;  %v4330_v49 = vld [vmem:[%s5425_s13 + $0x14c] sm:$0xf0] }
 0xd3f   : > { %v2328_v2 = vpop.xlane.xlu2 %2327 }
 0xd40   : > { %v2329_v3 = vsub.f32 %v2323_v60, %v2328_v2  ;;  %v4010_v60 = vld [vmem:[%s5425_s13 + $0x1c0] sm:$0xf]  ;;  %v4018_v2 = vld [vmem:[%s5425_s13 + $0x1c8] sm:$0xf] }
 0xd41   : > { %v4011_v0 = vor.u32 %v4346_v61, %v4010_v60  ;;  %v4326_v60 = vld [vmem:[%s5425_s13 + $0x12c] sm:$0xf0]  ;;  %v4324_v61 = vld [vmem:[%s5425_s13 + $0x124] sm:$0xf] }
 0xd42   : > { %v2330_v4 = vmul.f32 1.442695, %v2329_v3  ;;  %v4347_v3 = vld [vmem:[%s5425_s13 + $0x1d4] sm:$0xf0] }
 0xd43   : > { %2691 = vmatpush.bf16.msrb.mxu3 %v4011_v0  ;;  %v3932_v0 = vld [vmem:[%s5425_s13 + $0x130] sm:$0xf0] }
 0xd44   : > { %4474 = vpow2.f32 %v2330_v4 }
 0xd47   : > { %v2272_v45 = vpop.xlane.xlu2 %2271 }
 0xd48   : > { %v2273_v7 = vsub.f32 %v2267_v63, %v2272_v45  ;;  %v4344_v63 = vld [vmem:[%s5425_s13 + $0x1c4] sm:$0xf]  ;;  %v4019_v45 = vor.u32 %v4347_v3, %v4018_v2  ;;  %v4327_v2 = vld [vmem:[%s5425_s13 + $0x134] sm:$0xf0]  ;;  %v3935_v3 = vor.u32 %v4324_v61, %v3932_v0  ;;  %v4362_v0 = vld [vmem:[#allocation7 + $0x150] sm:$0xff] }
 0xd49   : > { %v4015_v4 = vor.u32 %v4344_v63, %v4012_v1  ;;  %v3938_v1 = vld [vmem:[%s5425_s13 + $0x128] sm:$0xf]  ;;  %v4380_v61 = vld [vmem:[#allocation7 + $0x1e0] sm:$0xff] }
 0xd4a   : > { %v4475_v8 = vpop.eup %4474  ;;  %v2274_v9 = vmul.f32 1.442695, %v2273_v7  ;;  %v4345_v7 = vld [vmem:[%s5425_s13 + $0x1cc] sm:$0xf] }
 0xd4b   : > { %v2332_v10 = vsel %vm1135_vm10, %v4475_v8, 0.0 }
 0xd4c   : > { %4476 = vpow2.f32 %v2274_v9  ;;  %2333 = vadd.xlane.f32.xlu0 %v2332_v10  ;;  %v3994_v10 = vld [vmem:[%s5425_s13 + $0x1a0] sm:$0xf] }
 0xd4f   : > { %v2340_v11 = vpop.permute.xlu2 %2339 }
 0xd50   : > { %v2345_v57 = vsel %vm1151_vm7, %v2340_v11, 0  ;;  %v4342_v11 = vld [vmem:[%s5425_s13 + $0x1ac] sm:$0xf0] }
 0xd51   : > { %2354 = vmatpush.bf16.msra.mxu1 %v2345_v57  ;;  %v4340_v57 = vld [vmem:[%s5425_s13 + $0x1a4] sm:$0xf] }
 0xd52   : > { %v4477_v12 = vpop.eup %4476 }
 0xd53   : > { %v2276_v13 = vsel %vm1135_vm10, %v4477_v12, 0.0 }
 0xd54   : > { %2277 = vadd.xlane.f32.xlu1 %v2276_v13  ;;  %v3996_v13 = vld [vmem:[%s5425_s13 + $0x1b0] sm:$0xf0] }
 0xd55   : > { %2716 = vmatpush.bf16.msrb.mxu1 %v4035_v33  ;;  %v4331_v33 = vld [vmem:[%s5425_s13 + $0x154] sm:$0xf0] }
 0xd59   : > { %2717 = vmatpush.bf16.msrb.mxu1 %v4019_v45  ;;  %v4325_v45 = vld [vmem:[%s5425_s13 + $0x12c] sm:$0xf] }
 0xdbf   : > { %v2334_v14 = vpop.xlane.xlu0 %2333 }
 0xdc0   : > { %4478 = vrcp.f32 %v2334_v14  ;;  %v4002_v14 = vld [vmem:[%s5425_s13 + $0x1a8] sm:$0xf] }
 0xdc6   : > { %v4479_v15 = vpop.eup %4478 }
 0xdc7   : > { %v2336_v16 = vmul.f32 %v4479_v15, %v4475_v8  ;;  %v2278_v18 = vpop.xlane.xlu1 %2277  ;;  %v4020_v8 = vld [vmem:[%s5425_s13 + $0x1d8] sm:$0xf0]  ;;  %v4343_v15 = vld [vmem:[%s5425_s13 + $0x1b4] sm:$0xf0] }
 0xdc8   : > { %4480 = vrcp.f32 %v2278_v18  ;;  %v4023_v9 = vor.u32 %v4345_v7, %v4020_v8  ;;  %v4003_v18 = vor.u32 %v4343_v15, %v4002_v14  ;;  %v3940_v7 = vld [vmem:[%s5425_s13 + $0x138] sm:$0xf0]  ;;  %v3914_v8 = vld [vmem:[%s5425_s13 + $0x100] sm:$0xf]  ;;  %v4323_v14 = vld [vmem:[%s5425_s13 + $0x114] sm:$0xf0] }
 0xdc9   : > { %v2337_v19 = vpack.c.bf16 %v2336_v16, %v2336_v16  ;;  %v3999_v16 = vor.u32 %v4340_v57, %v3996_v13  ;;  %v3916_v57 = vld [vmem:[%s5425_s13 + $0x110] sm:$0xf0]  ;;  %v3922_v13 = vld [vmem:[%s5425_s13 + $0x108] sm:$0xf]  ;;  %v4321_v15 = vld [vmem:[%s5425_s13 + $0x10c] sm:$0xf] }
 0xdca   : > { %2730 = vmatpush.bf16.msra.mxu2 %v4023_v9  ;;  %2718 = vmatpush.bf16.msrb.mxu1 %v4003_v18  ;;  %v3943_v9 = vor.u32 %v4325_v45, %v3940_v7  ;;  %v3923_v18 = vor.u32 %v4323_v14, %v3922_v13  ;;  %v4354_v13 = vld [vmem:[#allocation7 + $0x110] sm:$0xff] }
 0xdcb   : > { %3843 = vmatmul.msk.bf16.vlgmr.msra.gmra.mxu1 %vm1135_vm10, %v2337_v19  ;;  %v4341_v19 = vld [vmem:[%s5425_s13 + $0x1ac] sm:$0xf]  ;;  %v4378_v14 = vld [vmem:[#allocation7 + $0x1d0] sm:$0xff] }
 0xdce   : > { %v4481_v20 = vpop.eup %4480  ;;  %2719 = vmatpush.bf16.msrb.mxu1 %v3987_v31  ;;  %v2452_v31 = vunpack.c.l.bf16 %v3877_v28 }
 0xdcf   : > { %v2280_v22 = vmul.f32 %v4481_v20, %v4477_v12  ;;  %v3995_v12 = vor.u32 %v4342_v11, %v3994_v10  ;;  %v4004_v20 = vld [vmem:[%s5425_s13 + $0x1b8] sm:$0xf0]  ;;  %v4322_v10 = vld [vmem:[%s5425_s13 + $0x10c] sm:$0xf0]  ;;  %v4320_v11 = vld [vmem:[%s5425_s13 + $0x104] sm:$0xf] }
 0xdd1   : > { %v2281_v23 = vpack.c.bf16 %v2280_v22, %v2280_v22  ;;  %2692 = vmatpush.bf16.msrb.mxu3 %v3995_v12  ;;  %v4007_v22 = vor.u32 %v4341_v19, %v4004_v20  ;;  %v3915_v12 = vor.u32 %v4322_v10, %v3914_v8  ;;  %v3924_v19 = vld [vmem:[%s5425_s13 + $0x118] sm:$0xf0]  ;;  %v4361_v8 = vld [vmem:[#allocation7 + $0x148] sm:$0xff] }
 0xdd2   : > { %v3927_v20 = vor.u32 %v4321_v15, %v3924_v19  ;;  %v4360_v19 = vld [vmem:[#allocation7 + $0x140] sm:$0xff] }
 0xdd3   : > { %3841 = vmatmul.msk.bf16.vlgmr.msra.gmra.mxu3 %vm1135_vm10, %v2281_v23  ;;  %v3978_v23 = vld [vmem:[%s5425_s13 + $0x180] sm:$0xf]  ;;  %2731 = vmatpush.bf16.msra.mxu2 %v4007_v22 }
 0xdd4   : > { %v3979_v26 = vor.u32 %v4338_v24, %v3978_v23 }
 0xdd6   : > { %2693 = vmatpush.bf16.msrb.mxu3 %v3979_v26 }
 0xe48   : > { %v2356_v27 = vpop.f32.mrf.mxu1 }
 0xe49   : > { %2361 = vrot.lane.b32.xlu2 %v2356_v27, %s4651_s17  ;;  %v3980_v27 = vld [vmem:[%s5425_s13 + $0x190] sm:$0xf0] }
 0xe50   : > { %v2358_v30 = vpop.f32.mrf.mxu1 }
 0xe51   : > { %v3983_v30 = vor.u32 %v4336_v25, %v3980_v27 }
 0xe56   : > { %v2297_v34 = vpop.f32.mrf.mxu3 }
 0xe5e   : > { %v2299_v37 = vpop.f32.mrf.mxu3 }
 0xea3   : > { %v2362_v38 = vpop.permute.xlu2 %2361 }
 0xea4   : > { %v2364_v21 = vsel %vm1115_vm8, %v2297_v34, %v2362_v38  ;;  %v3988_v34 = vld [vmem:[%s5425_s13 + $0x198] sm:$0xf0]  ;;  %v4334_v38 = vld [vmem:[%s5425_s13 + $0x16c] sm:$0xf0] }
 0xea5   : > { %v2365_v39 = vpack.c.bf16 %v2364_v21, %v2364_v21  ;;  %v3991_v37 = vor.u32 %v4337_v32, %v3988_v34  ;;  %v4332_v21 = vld [vmem:[%s5425_s13 + $0x164] sm:$0xf] }
 0xea7   : > { %2439 = vmatmul.bf16.vlgmr.msrb.gmra.mxu2 %v2365_v39  ;;  %v3963_v39 = vor.u32 %v4334_v38, %v3962_v17  ;;  %v2476_v17 = vperm.slane %v2452_v31, 0 }
 0xea8   : > { %2732 = vmatpush.bf16.msra.mxu2 %v3991_v37 }
 0xea9   : > { %2694 = vmatpush.bf16.msrb.mxu3 %v3963_v39 }
 0xf2a   : > { %v2440_v5 = vpop.f32.mrf.mxu2 }
 0xf2b   : > { %v2444_v42 = vadd.f32 %v2440_v5, %v5115_v55  ;;  %v4028_v55 = vld [vmem:[%s5425_s13 + $0x1f0] sm:$0xf0]  ;;  %v3967_v5 = vor.u32 %v4332_v21, %v3964_v6 }
 0xf2c   : > { %v4031_v62 = vor.u32 %v4348_v48, %v4028_v55  ;;  %v3946_v48 = vld [vmem:[%s5425_s13 + $0x140] sm:$0xf]  ;;  %v4328_v55 = vld [vmem:[%s5425_s13 + $0x144] sm:$0xf] }
 0xf2d   : > { %v5158_v43 = vadd.f32 %v2448_v41, %v2444_v42  ;;  %v4335_v41 = vld [vmem:[%s5425_s13 + $0x174] sm:$0xf0]  ;;  %v3947_v50 = vor.u32 %v4330_v49, %v3946_v48  ;;  %v3951_v51 = vor.u32 %v4328_v55, %v3948_v58  ;;  %v4373_v49 = vld [vmem:[#allocation7 + $0x1a8] sm:$0xff]  ;;  %v4358_v55 = vld [vmem:[#allocation7 + $0x130] sm:$0xff] }
 0xf2e   : > { %2703 = vmatpush.bf16.msra.mxu0 %v4031_v62  ;;  %v3971_v42 = vor.u32 %v4335_v41, %v3970_v40  ;;  %v3954_v62 = vld [vmem:[%s5425_s13 + $0x148] sm:$0xf]  ;;  %v4383_v48 = vld [vmem:[#allocation7 + $0x1f8] sm:$0xff]  ;;  %v3911_v58 = vld [vmem:[%s5426_s14 + $0x4] sm:$0xf] }
 0xf2f   : > { %2456 = vadd.xlane.f32.xlu2 %v5158_v43  ;;  %v3955_v52 = vor.u32 %v4331_v33, %v3954_v62  ;;  %2695 = vmatpush.bf16.msrb.mxu3 %v3947_v50  ;;  %v4382_v50 = vld [vmem:[#allocation7 + $0x1f0] sm:$0xff]  ;;  %v4364_v62 = vld [vmem:[#allocation7 + $0x160] sm:$0xff] }
 0xf30   : > { %2720 = vmatpush.bf16.msrb.mxu1 %v3971_v42  ;;  %v4375_v42 = vld [vmem:[#allocation7 + $0x1b8] sm:$0xff]  ;;  %v4372_v33 = vld [vmem:[#allocation7 + $0x1a0] sm:$0xff] }
 0xf32   : > { %v2442_v44 = vpop.f32.mrf.mxu2  ;;  %2704 = vmatpush.bf16.msra.mxu0 %v4015_v4  ;;  %v3939_v4 = vor.u32 %v4327_v2, %v3938_v1  ;;  %v4370_v1 = vld [vmem:[#allocation7 + $0x190] sm:$0xff] }
 0xf33   : > { %v4333_v44 = vld [vmem:[%s5425_s13 + $0x16c] sm:$0xf] }
 0xf34   : > { %v3975_v47 = vor.u32 %v4333_v44, %v3972_v46  ;;  %2721 = vmatpush.bf16.msrb.mxu1 %v3955_v52  ;;  %v4366_v44 = vld [vmem:[#allocation7 + $0x170] sm:$0xff]  ;;  %v4357_v52 = vld [vmem:[#allocation7 + $0x128] sm:$0xff] }
 0xf35   : > { %v4374_v46 = vld [vmem:[#allocation7 + $0x1b0] sm:$0xff] }
 0xf36   : > { %2705 = vmatpush.bf16.msra.mxu0 %v3999_v16  ;;  %2733 = vmatpush.bf16.msra.mxu2 %v3975_v47  ;;  %v3919_v16 = vor.u32 %v4320_v11, %v3916_v57  ;;  %v4359_v47 = vld [vmem:[#allocation7 + $0x138] sm:$0xff] }
 0xf38   : > { %2722 = vmatpush.bf16.msrb.mxu1 %v3939_v4  ;;  %v4379_v4 = vld [vmem:[#allocation7 + $0x1d8] sm:$0xff] }
 0xf3a   : > { %2706 = vmatpush.bf16.msra.mxu0 %v3983_v30  ;;  %v3878_v30 = vld [vmem:[%s5424_s12 + $0x1] sm:$0x1] }
 0xf3b   : > { %v2455_v34 = vunpack.c.l.bf16 %v3878_v30 }
 0xf3c   : > { %2723 = vmatpush.bf16.msrb.mxu1 %v3923_v18 }
 0xf3d   : > { %v2478_v39 = vperm.slane %v2455_v34, 0 }
 0xf3e   : > { %2707 = vmatpush.bf16.msra.mxu0 %v3967_v5  ;;  %v4367_v5 = vld [vmem:[#allocation7 + $0x178] sm:$0xff] }
 0xf40   : > { %3113 = vmatpush.bf16.msra.mxu1 %v4375_v42 }
 0xf42   : > { %2708 = vmatpush.bf16.msra.mxu0 %v3951_v51  ;;  %v2516_v51 = vunpack.c.l.bf16 %v3911_v58 }
 0xf44   : > { %3114 = vmatpush.bf16.msra.mxu1 %v4374_v46  ;;  %v2518_v7 = vperm.slane %v2516_v51, 0  ;;  %v2521_v11 = vperm.slane %v2516_v51, 6 }
 0xf46   : > { %2709 = vmatpush.bf16.msra.mxu0 %v3935_v3  ;;  %v4355_v3 = vld [vmem:[#allocation7 + $0x118] sm:$0xff]  ;;  %v2526_v18 = vperm.slane %v2518_v7, 0 }
 0xf48   : > { %3115 = vmatpush.bf16.msra.mxu1 %v4373_v49 }
 0xf4a   : > { %2710 = vmatpush.bf16.msra.mxu0 %v3919_v16 }
 0xf4c   : > { %3116 = vmatpush.bf16.msra.mxu1 %v4372_v33 }
 0xf4e   : > { %3100 = vmatpush.bf16.msrb.mxu0 %v4367_v5 }
 0xf52   : > { %3101 = vmatpush.bf16.msrb.mxu0 %v4366_v44 }
 0xfa2   : > { %v2457_v53 = vpop.xlane.xlu2 %2456 }
 0xfa3   : > { %v2458_v54 = vmul.f32 %v2457_v53, %v4821_v35  ;;  %v3956_v53 = vld [vmem:[%s5425_s13 + $0x158] sm:$0xf0] }
 0xfa5   : > { %v5187_v56 = vsub.f32 %v5158_v43, %v2458_v54  ;;  %v3959_v54 = vor.u32 %v4329_v36, %v3956_v53  ;;  %v4381_v36 = vld [vmem:[#allocation7 + $0x1e8] sm:$0xff]  ;;  %v4363_v53 = vld [vmem:[#allocation7 + $0x158] sm:$0xff] }
 0xfa7   : > { %v2460_v59 = vmul.f32 %v5187_v56, %v5187_v56  ;;  %2734 = vmatpush.bf16.msra.mxu2 %v3959_v54  ;;  %v4371_v54 = vld [vmem:[#allocation7 + $0x198] sm:$0xff] }
 0xfa8   : > { %3117 = vmatpush.bf16.msra.mxu1 %v4371_v54 }
 0xfa9   : > { %2461 = vadd.xlane.f32.xlu0 %v2460_v59  ;;  %v3930_v59 = vld [vmem:[%s5425_s13 + $0x120] sm:$0xf] }
 0xfaa   : > { %v3931_v63 = vor.u32 %v4326_v60, %v3930_v59  ;;  %v2519_v59 = vperm.slane %v2516_v51, 2  ;;  %v4356_v60 = vld [vmem:[#allocation7 + $0x120] sm:$0xff] }
 0xfab   : > { %2735 = vmatpush.bf16.msra.mxu2 %v3943_v9  ;;  %v4369_v9 = vld [vmem:[#allocation7 + $0x188] sm:$0xff] }
 0xfac   : > { %2696 = vmatpush.bf16.msrb.mxu3 %v3931_v63  ;;  %v2520_v63 = vperm.slane %v2516_v51, 4  ;;  %v2527_v2 = vperm.slane %v2519_v59, 0  ;;  %3118 = vmatpush.bf16.msra.mxu1 %v4370_v1 }
 0xfae   : > { %v2528_v45 = vperm.slane %v2520_v63, 0 }
 0xfaf   : > { %2736 = vmatpush.bf16.msra.mxu2 %v3927_v20  ;;  %v4368_v20 = vld [vmem:[#allocation7 + $0x180] sm:$0xff] }
 0xfb0   : > { %2697 = vmatpush.bf16.msrb.mxu3 %v3915_v12  ;;  %3119 = vmatpush.bf16.msra.mxu1 %v4369_v9 }
 0xfb3   : > { %3126 = vmatpush.bf16.msrb.mxu2 %v4383_v48 }
 0xfb4   : > { %3087 = vmatpush.bf16.msra.mxu3 %v4359_v47  ;;  %3120 = vmatpush.bf16.msra.mxu1 %v4368_v20 }
 0xfb7   : > { %3127 = vmatpush.bf16.msrb.mxu2 %v4382_v50 }
 0xfb8   : > { %3088 = vmatpush.bf16.msra.mxu3 %v4358_v55 }
 0xfbb   : > { %3128 = vmatpush.bf16.msrb.mxu2 %v4381_v36 }
 0xfbc   : > { %3089 = vmatpush.bf16.msra.mxu3 %v4357_v52 }
 0xfbf   : > { %3129 = vmatpush.bf16.msrb.mxu2 %v4380_v61 }
 0xfc0   : > { %3090 = vmatpush.bf16.msra.mxu3 %v4356_v60 }
 0xfc3   : > { %3130 = vmatpush.bf16.msrb.mxu2 %v4379_v4 }
 0xfc4   : > { %3091 = vmatpush.bf16.msra.mxu3 %v4355_v3 }
 0xfc7   : > { %3131 = vmatpush.bf16.msrb.mxu2 %v4378_v14 }
 0xfc8   : > { %3092 = vmatpush.bf16.msra.mxu3 %v4354_v13 }
0x101c   : > { %v2462_v22 = vpop.xlane.xlu0 %2461 }
0x101d   : > { %v2463_v23 = vmul.f32 %v2462_v22, %v4821_v35 }
0x101f   : > { %v2464_v24 = vadd.f32 1e-05, %v2463_v23  ;;  %v2529_v23 = vperm.slane %v2521_v11, 0 }
0x1021   : > { %4482 = vrsqrt.f32 %v2464_v24  ;;  %vm2471_vm8 = vweird.f32 %v2464_v24 }
0x1027   : > { %v4483_v25 = vpop.eup %4482 }
0x1028   : > { %v2466_v26 = vmul.f32 %v4483_v25, %v2464_v24  ;;  %vm2472_vm7 = vweird.f32 %v4483_v25 }
0x1029   : > { %vm2473_vm10 = vmor %vm2471_vm8, %vm2472_vm7 }
0x102a   : > { %v2467_v27 = vmul.f32 %v4483_v25, %v2466_v26  ;;  %v4377_v26 = vld [vmem:[#allocation7 + $0x1c8] sm:$0xff] }
0x102b   : > { %3132 = vmatpush.bf16.msrb.mxu2 %v4377_v26 }
0x102c   : > { %v2468_v29 = vmul.f32 0.5, %v2467_v27 }
0x102e   : > { %v2469_v32 = vsub.f32 1.5, %v2468_v29 }
0x1030   : > { %v2470_v37 = vmul.f32 %v4483_v25, %v2469_v32 }
0x1032   : > { %v2474_v38 = vsel %vm2473_vm10, %v4483_v25, %v2470_v37  ;;  %v4353_v25 = vld [vmem:[#allocation7 + $0x108] sm:$0xff] }
0x1033   : > { %v2475_v21 = vmul.f32 %v2474_v38, %v5187_v56  ;;  %v4365_v56 = vld [vmem:[#allocation7 + $0x168] sm:$0xff]  ;;  %3093 = vmatpush.bf16.msra.mxu3 %v4353_v25  ;;  %v4376_v38 = vld [vmem:[#allocation7 + $0x1c0] sm:$0xff] }
0x1034   : > { %3102 = vmatpush.bf16.msrb.mxu0 %v4365_v56  ;;  %3133 = vmatpush.bf16.msrb.mxu2 %v4376_v38 }
0x1035   : > { %v2477_v6 = vmul.f32 %v2476_v17, %v2475_v21  ;;  %v4352_v17 = vld [vmem:[#allocation7 + $0x100] sm:$0xff] }
0x1037   : > { %v2479_v40 = vadd.f32 %v2478_v39, %v2477_v6  ;;  %3094 = vmatpush.bf16.msra.mxu3 %v4352_v17 }
0x1038   : > { %3103 = vmatpush.bf16.msrb.mxu0 %v4364_v62 }
0x1039   : > { %v2480_v41 = vpack.c.bf16 %v2479_v40, %v2479_v40 }
0x103b   : > { %2698 = vmatmul.bf16.vlgmr.msrb.gmra.mxu3 %v2480_v41  ;;  %2711 = vmatmul.bf16.vlgmr.msra.gmra.mxu0 %v2480_v41 }
0x103c   : > { %2724 = vmatmul.bf16.vlgmr.msrb.gmra.mxu1 %v2480_v41  ;;  %2737 = vmatmul.bf16.vlgmr.msra.gmra.mxu2 %v2480_v41 }
0x103d   : > { %3104 = vmatpush.bf16.msrb.mxu0 %v4363_v53 }
0x1041   : > { %3105 = vmatpush.bf16.msrb.mxu0 %v4362_v0 }
0x1045   : > { %3106 = vmatpush.bf16.msrb.mxu0 %v4361_v8 }
0x1049   : > { %3107 = vmatpush.bf16.msrb.mxu0 %v4360_v19 }
0x10b8   : > { %v2712_v10 = vpop.f32.mrf.mxu0 }
0x10b9   : > { %v5370_v57 = vadd.f32 %v2712_v10, %v2527_v2  ;;  %v2725_v12 = vpop.f32.mrf.mxu1 }
0x10ba   : > { %v5372_v15 = vadd.f32 %v2725_v12, %v2528_v45 }
0x10bb   : > { %v4041_v16 = vmul.f32 -1.702, %v5370_v57 }
0x10bc   : > { %v4042_v22 = vmul.f32 -1.702, %v5372_v15 }
0x10bd   : > { %v2752_v24 = vmul.f32 1.442695, %v4041_v16 }
0x10be   : > { %v2754_v27 = vmul.f32 1.442695, %v4042_v22  ;;  %v2699_v28 = vpop.f32.mrf.mxu3 }
0x10bf   : > { %4484 = vpow2.f32 %v2752_v24  ;;  %v5376_v29 = vadd.f32 %v2699_v28, %v2526_v18  ;;  %v2738_v30 = vpop.f32.mrf.mxu2 }
0x10c0   : > { %4486 = vpow2.f32 %v2754_v27  ;;  %v5378_v31 = vadd.f32 %v2738_v30, %v2529_v23  ;;  %v2714_v32 = vpop.f32.mrf.mxu0 }
0x10c1   : > { %v4040_v34 = vmul.f32 -1.702, %v5376_v29  ;;  %v2727_v37 = vpop.f32.mrf.mxu1 }
0x10c2   : > { %v4043_v21 = vmul.f32 -1.702, %v5378_v31 }
0x10c3   : > { %v2750_v39 = vmul.f32 1.442695, %v4040_v34 }
0x10c4   : > { %v2756_v6 = vmul.f32 1.442695, %v4043_v21 }
0x10c5   : > { %v4485_v40 = vpop.eup %4484  ;;  %4488 = vpow2.f32 %v2750_v39 }
0x10c6   : > { %v4487_v41 = vpop.eup %4486  ;;  %v2759_v5 = vadd.f32 1.0, %v4485_v40  ;;  %4490 = vpow2.f32 %v2756_v6  ;;  %v2701_v42 = vpop.f32.mrf.mxu3 }
0x10c7   : > { %v2760_v44 = vadd.f32 1.0, %v4487_v41  ;;  %v2740_v46 = vpop.f32.mrf.mxu2 }
0x10c8   : > { %4492 = vrcp.f32 %v2759_v5  ;;  %v2786_v51 = vand.u32 2147483647, %v2759_v5  ;;  %v2788_v52 = vand.u32 2147483648, %v2759_v5  ;;  %vm2782_vm5 = vweird.f32 %v2759_v5 }
0x10c9   : > { %4494 = vrcp.f32 %v2760_v44  ;;  %v2801_v53 = vand.u32 2147483647, %v2760_v44  ;;  %v2803_v54 = vand.u32 2147483648, %v2760_v44  ;;  %vm2797_vm6 = vweird.f32 %v2760_v44 }
0x10ca   : > { %vm2787_vm11 = vcmp.eq.f32.partialorder %v2786_v51, 8.507059e+37  ;;  %v2789_v1 = vor.u32 1.1754944e-38, %v2788_v52 }
0x10cb   : > { %v4489_v47 = vpop.eup %4488  ;;  %vm2802_vm13 = vcmp.eq.f32.partialorder %v2801_v53, 8.507059e+37  ;;  %v2804_v4 = vor.u32 1.1754944e-38, %v2803_v54 }
0x10cc   : > { %v4491_v48 = vpop.eup %4490  ;;  %v2758_v56 = vadd.f32 1.0, %v4489_v47 }
0x10cd   : > { %v5382_v49 = vadd.f32 1.0, %v4491_v48 }
0x10ce   : > { %v4493_v55 = vpop.eup %4492  ;;  %4496 = vrcp.f32 %v2758_v56  ;;  %v2771_v9 = vand.u32 2147483647, %v2758_v56  ;;  %v2773_v10 = vand.u32 2147483648, %v2758_v56  ;;  %vm2767_vm1 = vweird.f32 %v2758_v56 }
0x10cf   : > { %v4495_v50 = vpop.eup %4494  ;;  %v2778_v58 = vmul.f32 %v4493_v55, %v2759_v5  ;;  %4498 = vrcp.f32 %v5382_v49  ;;  %vm2783_vm4 = vweird.f32 %v4493_v55  ;;  %v2818_v14 = vand.u32 2147483648, %v5382_v49  ;;  %v4172_v5 = vld [vmem:[%s5428_s16 + $0x1] sm:$0x1] }
0x10d0   : > { %v2793_v62 = vmul.f32 %v4495_v50, %v2760_v44  ;;  %vm2798_vm9 = vweird.f32 %v4495_v50  ;;  %vm2784_vm12 = vmor %vm2782_vm5, %vm2783_vm4  ;;  %v2816_v23 = vand.u32 2147483647, %v5382_v49  ;;  %v2774_v27 = vor.u32 1.1754944e-38, %v2773_v10 }
0x10d1   : > { %v2779_v33 = vsub.f32 1.0, %v2778_v58  ;;  %vm2799_vm14 = vmor %vm2797_vm6, %vm2798_vm9  ;;  %vm2812_vm3 = vweird.f32 %v5382_v49  ;;  %vm2772_vm7 = vcmp.eq.f32.partialorder %v2771_v9, 8.507059e+37  ;;  %v3142_v47 = vunpack.c.l.bf16 %v4172_v5 }
0x10d2   : > { %v2794_v36 = vsub.f32 1.0, %v2793_v62  ;;  %vm2817_vm10 = vcmp.eq.f32.partialorder %v2816_v23, 8.507059e+37 }
0x10d3   : > { %v2780_v59 = vmul.f32 %v4493_v55, %v2779_v33 }
0x10d4   : > { %v4497_v60 = vpop.eup %4496  ;;  %v2795_v61 = vmul.f32 %v4495_v50, %v2794_v36 }
0x10d5   : > { %v4499_v63 = vpop.eup %4498  ;;  %v2781_v0 = vadd.f32 %v4493_v55, %v2780_v59  ;;  %v2763_v2 = vmul.f32 %v4497_v60, %v2758_v56  ;;  %vm2768_vm15 = vweird.f32 %v4497_v60  ;;  %v3143_v56 = vperm.slane %v3142_v47, 0 }
0x10d6   : > { %v2796_v3 = vadd.f32 %v4495_v50, %v2795_v61  ;;  %v2808_v45 = vmul.f32 %v4499_v63, %v5382_v49  ;;  %vm2813_vm0 = vweird.f32 %v4499_v63  ;;  %vm2769_vm2 = vmor %vm2767_vm1, %vm2768_vm15  ;;  %v3147_v61 = vld [vmem:[%s5450_s30] sm:$0x1] }
0x10d7   : > { %v2785_v7 = vsel %vm2784_vm12, %v4493_v55, %v2781_v0  ;;  %v2764_v8 = vsub.f32 1.0, %v2763_v2  ;;  %vm2814_vm8 = vmor %vm2812_vm3, %vm2813_vm0  ;;  %v3148_v2 = vunpack.c.l.bf16 %v3147_v61 }
0x10d8   : > { %v2790_v11 = vsel %vm2787_vm11, %v2789_v1, %v2785_v7  ;;  %v2800_v12 = vsel %vm2799_vm14, %v4495_v50, %v2796_v3  ;;  %v2809_v13 = vsub.f32 1.0, %v2808_v45 }
0x10d9   : > { %v2823_v16 = vmul.f32 %v2790_v11, %v5370_v57  ;;  %v2805_v18 = vsel %vm2802_vm13, %v2804_v4, %v2800_v12  ;;  %v2765_v19 = vmul.f32 %v4497_v60, %v2764_v8  ;;  %v2819_v57 = vor.u32 1.1754944e-38, %v2818_v14 }
0x10da   : > { %v2824_v20 = vmul.f32 %v2805_v18, %v5372_v15  ;;  %v2810_v22 = vmul.f32 %v4499_v63, %v2809_v13  ;;  %v3171_v45 = vperm.slane %v3148_v2, 0 }
0x10db   : > { %v2827_v24 = vpack.c.bf16 %v2823_v16, %v2823_v16  ;;  %v2766_v25 = vadd.f32 %v4497_v60, %v2765_v19 }
0x10dc   : > { %v2828_v26 = vpack.c.bf16 %v2824_v20, %v2824_v20  ;;  %v2811_v28 = vadd.f32 %v4499_v63, %v2810_v22 }
0x10dd   : > { %v2770_v30 = vsel %vm2769_vm2, %v4497_v60, %v2766_v25  ;;  %3108 = vmatmul.bf16.vlgmr.msrb.gmra.mxu0 %v2827_v24 }
0x10de   : > { %v2775_v32 = vsel %vm2772_vm7, %v2774_v27, %v2770_v30  ;;  %v2815_v15 = vsel %vm2814_vm8, %v4499_v63, %v2811_v28  ;;  %3121 = vmatmul.bf16.vlgmr.msra.gmra.mxu1 %v2828_v26 }
0x10df   : > { %v2822_v34 = vmul.f32 %v2775_v32, %v5376_v29  ;;  %v2820_v37 = vsel %vm2817_vm10, %v2819_v57, %v2815_v15 }
0x10e0   : > { %v2825_v17 = vmul.f32 %v2820_v37, %v5378_v31 }
0x10e1   : > { %v2826_v38 = vpack.c.bf16 %v2822_v34, %v2822_v34 }
0x10e2   : > { %v2829_v21 = vpack.c.bf16 %v2825_v17, %v2825_v17 }
0x10e3   : > { %3095 = vmatmul.bf16.vlgmr.msra.gmra.mxu3 %v2826_v38 }
0x10e4   : > { %3134 = vmatmul.bf16.vlgmr.msrb.gmra.mxu2 %v2829_v21 }
0x115a   : > { %v3109_v39 = vpop.f32.mrf.mxu0 }
0x115b   : > { %v3122_v6 = vpop.f32.mrf.mxu1 }
0x1162   : > { %v3111_v40 = vpop.f32.mrf.mxu0 }
0x1163   : > { %v3124_v41 = vpop.f32.mrf.mxu1 }
0x1166   : > { %v3096_v42 = vpop.f32.mrf.mxu3 }
0x1167   : > { %v3110_v44 = vadd.f32 %v3109_v39, %v3096_v42  ;;  %v3135_v46 = vpop.f32.mrf.mxu2 }
0x1169   : > { %v3123_v29 = vadd.f32 %v3122_v6, %v3110_v44 }
0x116b   : > { %v3136_v48 = vadd.f32 %v3135_v46, %v3123_v29 }
0x116d   : > { %v3139_v31 = vadd.f32 %v3136_v48, %v5158_v43  ;;  %v3145_v43 = vld [vmem:[%s5449_s26] sm:$0x1] }
0x116e   : > { %v3098_v49 = vpop.f32.mrf.mxu3  ;;  %v3146_v0 = vunpack.c.l.bf16 %v3145_v43 }
0x116f   : > { %v3137_v55 = vpop.f32.mrf.mxu2  ;;  %v3144_v50 = vadd.f32 %v3143_v56, %v3139_v31 }
0x1170   : > { %v3169_v3 = vperm.slane %v3146_v0, 0 }
0x1171   : > { %3149 = vadd.xlane.f32.xlu0 %v3144_v50 }
0x11e4   : > { %v3150_v58 = vpop.xlane.xlu0 %3149 }
0x11e5   : > { %v3151_v62 = vmul.f32 %v3150_v58, %v4821_v35 }
0x11e7   : > { %v3152_v33 = vsub.f32 %v3144_v50, %v3151_v62 }
0x11e9   : > { %v3153_v51 = vmul.f32 %v3152_v33, %v3152_v33 }
0x11eb   : > { %3154 = vadd.xlane.f32.xlu1 %v3153_v51 }
0x125e   : > { %v3155_v52 = vpop.xlane.xlu1 %3154 }
0x125f   : > { %v3156_v36 = vmul.f32 %v3155_v52, %v4821_v35 }
0x1261   : > { %v3157_v53 = vadd.f32 1e-05, %v3156_v36 }
0x1263   : > { %4500 = vrsqrt.f32 %v3157_v53  ;;  %vm3164_vm5 = vweird.f32 %v3157_v53 }
0x1269   : > { %v4501_v54 = vpop.eup %4500 }
0x126a   : > { %v3159_v59 = vmul.f32 %v4501_v54, %v3157_v53  ;;  %vm3165_vm4 = vweird.f32 %v4501_v54 }
0x126b   : > { %vm3166_vm6 = vmor %vm3164_vm5, %vm3165_vm4 }
0x126c   : > { %v3160_v60 = vmul.f32 %v4501_v54, %v3159_v59 }
0x126e   : > { %v3161_v63 = vmul.f32 0.5, %v3160_v60 }
0x1270   : > { %v3162_v1 = vsub.f32 1.5, %v3161_v63 }
0x1272   : > { %v3163_v35 = vmul.f32 %v4501_v54, %v3162_v1 }
0x1274   : > { %v3167_v4 = vsel %vm3166_vm6, %v4501_v54, %v3163_v35 }
0x1275   : > { %v3168_v7 = vmul.f32 %v3167_v4, %v3152_v33 }
0x1277   : > { %v3170_v8 = vmul.f32 %v3169_v3, %v3168_v7 }
0x1279   : > { %v3172_v9 = vadd.f32 %v3171_v45, %v3170_v8 }
0x127b   : > { %v3173_v10 = vpack.c.bf16 %v3172_v9, %v3172_v9 }
0x127d   : > { %3174 = vst [vmem:[%s667_s25] sm:$0xf] %v3173_v10 }
0x127e PF: > { %s5452_s3 = sld [smem:[#allocation12_spill]] }
0x1284   : > { %s32_s0 = sadd.s32 1, %s5452_s3  }
0x1285   : > { %p29_p7 = scmp.ge.s32.totalorder %s32_s0, 4  }
0x1287   :  { %31 = sbr.rel (!%p29_p7) target bundleno = 12 (0xc), region = 155 }
0x128c   :  { %3194 = vsyncpa [#allocation3], 1 }
0x128d   :  { %3196 = vsyncpa [#allocation3 + $0x1], 1 }
0x128e   :  { %3197 = vsyncpa [#allocation5], 1 }
0x128f   :  { %3198 = vsyncpa [#allocation8], 1 }

</bundles_post_ra>
